<compile_context>
chip_gen: v7x
topology: tpu7x:2x2x1
jax: 0.10.0
libtpu: 0.0.40
codegen_flags: <defaults>
</compile_context>

<pallas_src>
import numpy as np
import jax
import jax.numpy as jnp
from jax import lax
from jax.experimental import pallas as pl
from jax.experimental.pallas import tpu as pltpu

LEAKY_SLOPE = 0.01  # PyTorch nn.LeakyReLU / F.leaky_relu default


# --------------------------------------------------------------------------- #
# In-kernel helpers (operate on 2-D (rows=(d,h), lanes=(w,c)) bf16 slabs)
# --------------------------------------------------------------------------- #
def _leaky(x):
    return jnp.where(x >= 0, x, LEAKY_SLOPE * x)


def _kh_concat(a, H):
    """a: (D*H, L) bf16 slab.  Returns (D*H, 3L) with lanes = (kh, w, c);
    the h halo (h==0 / h==H-1) is zero-masked here, the d halo is handled by
    the caller (row padding for stride-1, selection matrix for stride-2)."""
    R, L = a.shape
    zrow = jnp.zeros((1, L), a.dtype)
    ap = jnp.concatenate([zrow, a, zrow], axis=0)                   # (R+2, L)
    h = lax.broadcasted_iota(jnp.int32, (R, 1), 0) % H
    up = jnp.where(h >= 1, ap[0:R, :], 0).astype(a.dtype)           # (d, h-1)
    dn = jnp.where(h <= H - 2, ap[2:R + 2, :], 0).astype(a.dtype)   # (d, h+1)
    return jnp.concatenate([up, a, dn], axis=1)                     # (R, 3L)


def _conv_s1(a_bf, band_ref, H, residual=None, leaky=True):
    """stride-1 3x3x3 conv (padding 1) on a bf16 (D*H, L) slab.
    band_ref: (3, 3L, N) bf16 per-kd banded matrices; the kh tap, the W
    shift/padding and the Cin contraction are folded into the K axis."""
    R, L = a_bf.shape
    N = band_ref.shape[2]
    xs = _kh_concat(a_bf, H)                                        # (R, 3L)
    zpad = jnp.zeros((H, 3 * L), a_bf.dtype)
    xsp = jnp.concatenate([zpad, xs, zpad], axis=0)                 # (R+2H, 3L)
    acc = jnp.zeros((R, N), jnp.float32)
    for kd in range(3):                                             # 3 MXU calls
        acc = acc + jnp.dot(xsp[kd * H:kd * H + R, :], band_ref[kd],
                            preferred_element_type=jnp.float32)
    if residual is not None:
        acc = acc + residual
    return _leaky(acc) if leaky else acc


def _conv_s2(a_bf, band_ref, sel_ref, H, leaky=True):
    """stride-2 3x3x3 conv (padding 1).  sel_ref: (3, Do*Ho, D*H) 0/1 row
    selection matrices with the kd shift, the (d,h) subsample and the d halo
    folded in.  band_ref: (3, 3L, N) with the W stride folded in."""
    N = band_ref.shape[2]
    Ro = sel_ref.shape[1]
    xs = _kh_concat(a_bf, H)                                        # (R, 3L)
    acc = jnp.zeros((Ro, N), jnp.float32)
    for kd in range(3):
        g = jnp.dot(sel_ref[kd], xs, preferred_element_type=jnp.float32)
        acc = acc + jnp.dot(g.astype(a_bf.dtype), band_ref[kd],
                            preferred_element_type=jnp.float32)
    return _leaky(acc) if leaky else acc


def _make_hourglass_kernel(D, H):
    H2, H4 = H // 2, H // 4

    def kernel(x_ref, wb1_ref, wb2_ref, wb3_ref, wb4_ref, wb5_ref, wb6_ref,
               s1_ref, s3_ref, l1_ref, l2_ref,
               out_ref, pre_ref, post_ref):
        bf = jnp.bfloat16
        x = x_ref[0].astype(bf)                                     # (D*H, W*Cin)

        a = _conv_s2(x, wb1_ref, s1_ref, H)                         # conv1 + lrelu
        pre = _conv_s1(a.astype(bf), wb2_ref, H2)                   # conv2, lrelu (postsqu None)
        a = _conv_s2(pre.astype(bf), wb3_ref, s3_ref, H2)           # conv3 + lrelu
        a = _conv_s1(a.astype(bf), wb4_ref, H4)                     # conv4 + lrelu

        # trilinear (align_corners) up to pre's size: rows (d,h) via l1; the
        # W (lane) part is pre-folded into conv5's banded weights.
        a = jnp.dot(l1_ref[...], a.astype(bf),
                    preferred_element_type=jnp.float32)
        post = _conv_s1(a.astype(bf), wb5_ref, H2, residual=pre)    # conv5 + pre, lrelu

        # trilinear up to x's size: rows via l2; W part folded into conv6.
        a = jnp.dot(l2_ref[...], post.astype(bf),
                    preferred_element_type=jnp.float32)
        out = _conv_s1(a.astype(bf), wb6_ref, H, leaky=False)       # conv6

        out_ref[0] = out.astype(out_ref.dtype)
        pre_ref[0] = pre.astype(pre_ref.dtype)
        post_ref[0] = post.astype(post_ref.dtype)

    return kernel


# --------------------------------------------------------------------------- #
# One-time host-side parameter transforms (glue, numpy)
# --------------------------------------------------------------------------- #
def _interp_matrix(out_size, in_size):
    """1-D linear interpolation matrix, align_corners=True (PyTorch semantics)."""
    m = np.zeros((out_size, in_size), np.float64)
    if out_size == 1:
        m[0, 0] = 1.0
        return m
    src = np.arange(out_size) * (in_size - 1) / (out_size - 1)
    i0 = np.clip(np.floor(src).astype(np.int64), 0, in_size - 1)
    i1 = np.clip(i0 + 1, 0, in_size - 1)
    t = src - i0
    m[np.arange(out_size), i0] += 1.0 - t
    m[np.arange(out_size), i1] += t
    return m


def _band_matrix(w, w_in, stride):
    """(Cout,Cin,3,3,3) -> (3, 3*W_in*Cin, W_out*Cout): per-kd banded matrices
    folding the kh tap, the W shift/stride/padding and the Cin contraction."""
    w = np.asarray(w, np.float64)
    c_out, c_in = w.shape[:2]
    w_out = (w_in + 2 - 3) // stride + 1
    band = np.zeros((3, 3 * w_in * c_in, w_out * c_out), np.float64)
    for kd in range(3):
        for kh in range(3):
            for wo in range(w_out):
                for kw in range(3):
                    wi = stride * wo + kw - 1
                    if 0 <= wi < w_in:
                        band[kd,
                             (kh * w_in + wi) * c_in:(kh * w_in + wi + 1) * c_in,
                             wo * c_out:(wo + 1) * c_out] = w[:, :, kd, kh, kw].T
    return band


def _select_matrix(D, H):
    """(3, Do*Ho, D*H) 0/1 matrices: row (do,ho) of slice kd picks input row
    (2*do + kd - 1, 2*ho); rows whose d index is out of range stay all-zero."""
    Do, Ho = D // 2, H // 2
    P = np.zeros((3, Do * Ho, D * H), np.float64)
    for kd in range(3):
        for do in range(Do):
            d = 2 * do + kd - 1
            if 0 <= d < D:
                for ho in range(Ho):
                    P[kd, do * Ho + ho, d * H + 2 * ho] = 1.0
    return P


def make_hourglass3d_params(weights, D, H, W, dtype=jnp.bfloat16):
    """Pre-transform the 6 PyTorch-layout conv weights + geometry into the
    lane-friendly matrices consumed by the fused kernel (done once)."""
    w1, w2, w3, w4, w5, w6 = [np.asarray(w, np.float64) for w in weights]
    mid = w1.shape[1]
    c2 = 2 * mid
    D2, H2, W2 = D // 2, H // 2, W // 2
    D4, H4, W4 = D // 4, H // 4, W // 4

    # lane-axis (W) halves of the two trilinear upsamples, folded into conv5/6
    mw1 = np.kron(_interp_matrix(W2, W4).T, np.eye(c2))      # (W4*c2, W2*c2)
    mw2 = np.kron(_interp_matrix(W, W2).T, np.eye(c2))       # (W2*c2, W*c2)
    b5 = _band_matrix(w5, W2, 1)
    b6 = _band_matrix(w6, W, 1)
    blk1 = np.kron(np.eye(3), mw1)
    blk2 = np.kron(np.eye(3), mw2)
    b5f = np.stack([blk1 @ b5[t] for t in range(3)])          # (3, 3*W4*c2, W2*c2)
    b6f = np.stack([blk2 @ b6[t] for t in range(3)])          # (3, 3*W2*c2, W*mid)

    dev = lambda a: jnp.asarray(np.asarray(a, np.float32), dtype)
    return dict(
        wb1=dev(_band_matrix(w1, W, 2)),
        wb2=dev(_band_matrix(w2, W2, 1)),
        wb3=dev(_band_matrix(w3, W2, 2)),
        wb4=dev(_band_matrix(w4, W4, 1)),
        wb5=dev(b5f),
        wb6=dev(b6f),
        s1=dev(_select_matrix(D, H)),
        s3=dev(_select_matrix(D2, H2)),
        l1=dev(np.kron(_interp_matrix(D2, D4), _interp_matrix(H2, H4))),
        l2=dev(np.kron(_interp_matrix(D, D2), _interp_matrix(H, H2))),
    )


# --------------------------------------------------------------------------- #
# Forward pass (single pallas_call)
# --------------------------------------------------------------------------- #
def hourglass3d_forward(x_ndhwc, params):
    """x_ndhwc: (B, D, H, W, mid) float32.  Returns (out, pre, post) in NDHWC."""
    B, D, H, W, mid = x_ndhwc.shape
    c2 = 2 * mid
    D2, H2, W2 = D // 2, H // 2, W // 2

    x2d = x_ndhwc.reshape(B, D * H, W * mid)        # free metadata reshape

    kernel = _make_hourglass_kernel(D, H)

    def wspec(arr):
        nd = arr.ndim
        return pl.BlockSpec(arr.shape, lambda b: (0,) * nd)

    names = ("wb1", "wb2", "wb3", "wb4", "wb5", "wb6", "s1", "s3", "l1", "l2")
    in_specs = [pl.BlockSpec((1, D * H, W * mid), lambda b: (b, 0, 0))]
    in_specs += [wspec(params[n]) for n in names]

    out_shapes = (
        jax.ShapeDtypeStruct((B, D * H, W * mid), x_ndhwc.dtype),
        jax.ShapeDtypeStruct((B, D2 * H2, W2 * c2), x_ndhwc.dtype),
        jax.ShapeDtypeStruct((B, D2 * H2, W2 * c2), x_ndhwc.dtype),
    )
    out_specs = (
        pl.BlockSpec((1, D * H, W * mid), lambda b: (b, 0, 0)),
        pl.BlockSpec((1, D2 * H2, W2 * c2), lambda b: (b, 0, 0)),
        pl.BlockSpec((1, D2 * H2, W2 * c2), lambda b: (b, 0, 0)),
    )

    out2d, pre2d, post2d = pl.pallas_call(
        kernel,
        out_shape=out_shapes,
        grid=(B,),
        in_specs=in_specs,
        out_specs=out_specs,
        compiler_params=pltpu.CompilerParams(
            dimension_semantics=("parallel",)),     # batch -> 2 TCs on v7x
    )(x2d, *[params[n] for n in names])

    out = out2d.reshape(B, D, H, W, mid)
    pre = pre2d.reshape(B, D2, H2, W2, c2)
    post = post2d.reshape(B, D2, H2, W2, c2)
    return out, pre, post


# --------------------------------------------------------------------------- #
# Pure-JAX float32 reference (for correctness check only)
# --------------------------------------------------------------------------- #
def _conv3d_ref(x, w, stride):
    return lax.conv_general_dilated(
        x, jnp.transpose(jnp.asarray(w, jnp.float32), (2, 3, 4, 1, 0)),
        window_strides=(stride,) * 3, padding=[(1, 1)] * 3,
        dimension_numbers=("NDHWC", "DHWIO", "NDHWC"),
        precision=lax.Precision.HIGHEST)


def _interp_ref(x, do, ho, wo):
    _, D, H, W, _ = x.shape
    ad = jnp.asarray(_interp_matrix(do, D), jnp.float32)
    ah = jnp.asarray(_interp_matrix(ho, H), jnp.float32)
    aw = jnp.asarray(_interp_matrix(wo, W), jnp.float32)
    hp = lax.Precision.HIGHEST
    x = jnp.einsum("ad,bdhwc->bahwc", ad, x, precision=hp)
    x = jnp.einsum("eh,bahwc->baewc", ah, x, precision=hp)
    x = jnp.einsum("fw,baewc->baefc", aw, x, precision=hp)
    return x


def hourglass3d_reference(x, weights):
    w1, w2, w3, w4, w5, w6 = weights
    lrelu = lambda t: jnp.where(t >= 0, t, LEAKY_SLOPE * t)
    o = lrelu(_conv3d_ref(x, w1, 2))
    pre = lrelu(_conv3d_ref(o, w2, 1))
    o = lrelu(_conv3d_ref(pre, w3, 2))
    o = lrelu(_conv3d_ref(o, w4, 1))
    o = _interp_ref(o, pre.shape[1], pre.shape[2], pre.shape[3])
    post = lrelu(_conv3d_ref(o, w5, 1) + pre)
    o = _interp_ref(post, x.shape[1], x.shape[2], x.shape[3])
    out = _conv3d_ref(o, w6, 1)
    return out, pre, post


# --------------------------------------------------------------------------- #
# main
# --------------------------------------------------------------------------- #
if __name__ == "__main__":
    mid = 4                       # mid_channels
    B, D, H, W = 2, 16, 16, 16    # small synthetic shapes

    key = jax.random.PRNGKey(0)
    keys = jax.random.split(key, 7)

    # PyTorch-convention input: NCDHW
    x_ncdhw = jax.random.normal(keys[0], (B, mid, D, H, W), jnp.float32)

    def wgen(k, cout, cin):
        scale = 1.0 / np.sqrt(cin * 27)
        return jax.random.normal(k, (cout, cin, 3, 3, 3), jnp.float32) * scale

    w1 = wgen(keys[1], 2 * mid, mid)
    w2 = wgen(keys[2], 2 * mid, 2 * mid)
    w3 = wgen(keys[3], 2 * mid, 2 * mid)
    w4 = wgen(keys[4], 2 * mid, 2 * mid)
    w5 = wgen(keys[5], 2 * mid, 2 * mid)
    w6 = wgen(keys[6], mid, 2 * mid)
    weights = (w1, w2, w3, w4, w5, w6)

    # one-time weight / geometry transform (glue, not per-step work)
    params = make_hourglass3d_params([np.asarray(w) for w in weights], D, H, W)

    # NCDHW -> NDHWC
    x = jnp.transpose(x_ncdhw, (0, 2, 3, 4, 1))

    fwd = jax.jit(hourglass3d_forward)
    out, pre, post = fwd(x, params)
    jax.block_until_ready((out, pre, post))

    # back to PyTorch NCDHW convention
    out_ncdhw = jnp.transpose(out, (0, 4, 1, 2, 3))    # (B, mid, 16, 16, 16)
    pre_ncdhw = jnp.transpose(pre, (0, 4, 1, 2, 3))    # (B, 2*mid, 8, 8, 8)
    post_ncdhw = jnp.transpose(post, (0, 4, 1, 2, 3))  # (B, 2*mid, 8, 8, 8)
    jax.block_until_ready((out_ncdhw, pre_ncdhw, post_ncdhw))

    assert out_ncdhw.shape == (B, mid, D, H, W)
    assert pre_ncdhw.shape == (B, 2 * mid, D // 2, H // 2, W // 2)
    assert post_ncdhw.shape == (B, 2 * mid, D // 2, H // 2, W // 2)

    # correctness vs pure-JAX f32 reference (kernel uses bf16 MXU operands)
    r_out, r_pre, r_post = hourglass3d_reference(x, weights)
    np.testing.assert_allclose(np.asarray(out), np.asarray(r_out), rtol=0.05, atol=0.05)
    np.testing.assert_allclose(np.asarray(pre), np.asarray(r_pre), rtol=0.05, atol=0.05)
    np.testing.assert_allclose(np.asarray(post), np.asarray(r_post), rtol=0.05, atol=0.05)

    print("KERNEL_OK")
</pallas_src>

<mosaic_0001>
module attributes {stable_mosaic.version = 11 : i64} {
  func.func @kernel(%arg0: i32, %arg1: memref<1x256x64xf32, #tpu.memory_space<vmem>>, %arg2: memref<3x192x64xbf16, #tpu.memory_space<vmem>>, %arg3: memref<3x192x64xbf16, #tpu.memory_space<vmem>>, %arg4: memref<3x192x32xbf16, #tpu.memory_space<vmem>>, %arg5: memref<3x96x32xbf16, #tpu.memory_space<vmem>>, %arg6: memref<3x96x64xbf16, #tpu.memory_space<vmem>>, %arg7: memref<3x192x64xbf16, #tpu.memory_space<vmem>>, %arg8: memref<3x64x256xbf16, #tpu.memory_space<vmem>>, %arg9: memref<3x16x64xbf16, #tpu.memory_space<vmem>>, %arg10: memref<64x16xbf16, #tpu.memory_space<vmem>>, %arg11: memref<256x64xbf16, #tpu.memory_space<vmem>>, %arg12: memref<1x256x64xf32, #tpu.memory_space<vmem>>, %arg13: memref<1x64x64xf32, #tpu.memory_space<vmem>>, %arg14: memref<1x64x64xf32, #tpu.memory_space<vmem>>) attributes {dimension_semantics = [#tpu.dimension_semantics<parallel>], iteration_bounds = array<i64: 2>, scalar_prefetch = 0 : i64, scratch_operands = 0 : i64, tpu.core_type = #tpu.core_type<tc>, window_params = [{transform_indices = @transform_0, window_bounds = array<i64: 1, 256, 64>}, {pipeline_mode = #tpu.pipeline_mode<synchronous>, transform_indices = @transform_1, window_bounds = array<i64: 3, 192, 64>}, {pipeline_mode = #tpu.pipeline_mode<synchronous>, transform_indices = @transform_2, window_bounds = array<i64: 3, 192, 64>}, {pipeline_mode = #tpu.pipeline_mode<synchronous>, transform_indices = @transform_3, window_bounds = array<i64: 3, 192, 32>}, {pipeline_mode = #tpu.pipeline_mode<synchronous>, transform_indices = @transform_4, window_bounds = array<i64: 3, 96, 32>}, {pipeline_mode = #tpu.pipeline_mode<synchronous>, transform_indices = @transform_5, window_bounds = array<i64: 3, 96, 64>}, {pipeline_mode = #tpu.pipeline_mode<synchronous>, transform_indices = @transform_6, window_bounds = array<i64: 3, 192, 64>}, {pipeline_mode = #tpu.pipeline_mode<synchronous>, transform_indices = @transform_7, window_bounds = array<i64: 3, 64, 256>}, {pipeline_mode = #tpu.pipeline_mode<synchronous>, transform_indices = @transform_8, window_bounds = array<i64: 3, 16, 64>}, {pipeline_mode = #tpu.pipeline_mode<synchronous>, transform_indices = @transform_9, window_bounds = array<i64: 64, 16>}, {pipeline_mode = #tpu.pipeline_mode<synchronous>, transform_indices = @transform_10, window_bounds = array<i64: 256, 64>}, {transform_indices = @transform_11, window_bounds = array<i64: 1, 256, 64>}, {transform_indices = @transform_12, window_bounds = array<i64: 1, 64, 64>}, {transform_indices = @transform_13, window_bounds = array<i64: 1, 64, 64>}]} {
    %c0 = arith.constant 0 : index
    %c0_0 = arith.constant 0 : index
    %c0_1 = arith.constant 0 : index
    %0 = vector.load %arg1[%c0, %c0_0, %c0_1] : memref<1x256x64xf32, #tpu.memory_space<vmem>>, vector<1x256x64xf32>
    %1 = vector.shape_cast %0 : vector<1x256x64xf32> to vector<256x64xf32>
    %2 = arith.truncf %1 : vector<256x64xf32> to vector<256x64xbf16>
    %cst = arith.constant 0.000000e+00 : bf16
    %3 = vector.broadcast %cst : bf16 to vector<1x64xbf16>
    %4 = tpu.concatenate %3, %2, %3 in 0 : vector<1x64xbf16>, vector<256x64xbf16>, vector<1x64xbf16> -> vector<258x64xbf16>
    %5 = tpu.iota {dimensions = array<i32: 0>} : vector<256x1xi32>
    %c16_i32 = arith.constant 16 : i32
    %c0_i32 = arith.constant 0 : i32
    %6 = arith.cmpi eq, %c16_i32, %c0_i32 : i32
    %c1_i32 = arith.constant 1 : i32
    %7 = arith.select %6, %c1_i32, %c16_i32 : i32
    %8 = vector.broadcast %7 : i32 to vector<256x1xi32>
    %9 = arith.remsi %5, %8 : vector<256x1xi32>
    %c0_i32_2 = arith.constant 0 : i32
    %10 = vector.broadcast %c0_i32_2 : i32 to vector<256x1xi32>
    %11 = arith.cmpi ne, %9, %10 : vector<256x1xi32>
    %c0_i32_3 = arith.constant 0 : i32
    %12 = vector.broadcast %c0_i32_3 : i32 to vector<256x1xi32>
    %13 = arith.cmpi slt, %9, %12 : vector<256x1xi32>
    %c0_i32_4 = arith.constant 0 : i32
    %14 = arith.cmpi slt, %7, %c0_i32_4 : i32
    %15 = vector.broadcast %14 : i1 to vector<256x1xi1>
    %16 = vector.broadcast %15 : vector<256x1xi1> to vector<256x1xi1>
    %17 = arith.xori %13, %16 : vector<256x1xi1>
    %18 = arith.andi %17, %11 : vector<256x1xi1>
    %19 = vector.broadcast %7 : i32 to vector<256x1xi32>
    %20 = arith.addi %9, %19 : vector<256x1xi32>
    %21 = arith.select %18, %20, %9 : vector<256x1xi1>, vector<256x1xi32>
    %c1_i32_5 = arith.constant 1 : i32
    %22 = vector.broadcast %c1_i32_5 : i32 to vector<256x1xi32>
    %23 = arith.cmpi sge, %21, %22 : vector<256x1xi32>
    %24 = vector.extract_strided_slice %4 {offsets = [0, 0], sizes = [256, 64], strides = [1, 1]} : vector<258x64xbf16> to vector<256x64xbf16>
    %c0_i32_6 = arith.constant 0 : i32
    %25 = arith.sitofp %c0_i32_6 : i32 to bf16
    %26 = vector.shape_cast %23 : vector<256x1xi1> to vector<256x1xi1>
    %27 = vector.broadcast %26 : vector<256x1xi1> to vector<256x64xi1>
    %28 = vector.broadcast %25 : bf16 to vector<256x64xbf16>
    %29 = arith.select %27, %24, %28 : vector<256x64xi1>, vector<256x64xbf16>
    %c14_i32 = arith.constant 14 : i32
    %30 = vector.broadcast %c14_i32 : i32 to vector<256x1xi32>
    %31 = arith.cmpi sle, %21, %30 : vector<256x1xi32>
    %32 = vector.extract_strided_slice %4 {offsets = [2, 0], sizes = [256, 64], strides = [1, 1]} : vector<258x64xbf16> to vector<256x64xbf16>
    %c0_i32_7 = arith.constant 0 : i32
    %33 = arith.sitofp %c0_i32_7 : i32 to bf16
    %34 = vector.shape_cast %31 : vector<256x1xi1> to vector<256x1xi1>
    %35 = vector.broadcast %34 : vector<256x1xi1> to vector<256x64xi1>
    %36 = vector.broadcast %33 : bf16 to vector<256x64xbf16>
    %37 = arith.select %35, %32, %36 : vector<256x64xi1>, vector<256x64xbf16>
    %38 = tpu.concatenate %29, %2, %37 in 1 : vector<256x64xbf16>, vector<256x64xbf16>, vector<256x64xbf16> -> vector<256x192xbf16>
    %cst_8 = arith.constant 0.000000e+00 : f32
    %39 = vector.broadcast %cst_8 : f32 to vector<64x64xf32>
    %c0_9 = arith.constant 0 : index
    %c0_10 = arith.constant 0 : index
    %c0_11 = arith.constant 0 : index
    %40 = vector.load %arg8[%c0_9, %c0_10, %c0_11] : memref<3x64x256xbf16, #tpu.memory_space<vmem>>, vector<1x64x256xbf16>
    %41 = vector.shape_cast %40 : vector<1x64x256xbf16> to vector<64x256xbf16>
    %cst_12 = arith.constant dense<0.000000e+00> : vector<64x192xf32>
    %42 = tpu.matmul %41, %38, %cst_12 {dimension_numbers = #tpu.dot_dimension_numbers<[1], [0], [0], [1], [0, 0, 1, 1], [], []>} : vector<64x256xbf16>, vector<256x192xbf16>, vector<64x192xf32> -> vector<64x192xf32>
    %43 = arith.truncf %42 : vector<64x192xf32> to vector<64x192xbf16>
    %c0_13 = arith.constant 0 : index
    %c0_14 = arith.constant 0 : index
    %c0_15 = arith.constant 0 : index
    %44 = vector.load %arg2[%c0_13, %c0_14, %c0_15] : memref<3x192x64xbf16, #tpu.memory_space<vmem>>, vector<1x192x64xbf16>
    %45 = vector.shape_cast %44 : vector<1x192x64xbf16> to vector<192x64xbf16>
    %cst_16 = arith.constant dense<0.000000e+00> : vector<64x64xf32>
    %46 = tpu.matmul %43, %45, %cst_16 {dimension_numbers = #tpu.dot_dimension_numbers<[1], [0], [0], [1], [0, 0, 1, 1], [], []>} : vector<64x192xbf16>, vector<192x64xbf16>, vector<64x64xf32> -> vector<64x64xf32>
    %47 = arith.addf %39, %46 : vector<64x64xf32>
    %c1 = arith.constant 1 : index
    %c0_17 = arith.constant 0 : index
    %c0_18 = arith.constant 0 : index
    %48 = vector.load %arg8[%c1, %c0_17, %c0_18] : memref<3x64x256xbf16, #tpu.memory_space<vmem>>, vector<1x64x256xbf16>
    %49 = vector.shape_cast %48 : vector<1x64x256xbf16> to vector<64x256xbf16>
    %cst_19 = arith.constant dense<0.000000e+00> : vector<64x192xf32>
    %50 = tpu.matmul %49, %38, %cst_19 {dimension_numbers = #tpu.dot_dimension_numbers<[1], [0], [0], [1], [0, 0, 1, 1], [], []>} : vector<64x256xbf16>, vector<256x192xbf16>, vector<64x192xf32> -> vector<64x192xf32>
    %51 = arith.truncf %50 : vector<64x192xf32> to vector<64x192xbf16>
    %c1_20 = arith.constant 1 : index
    %c0_21 = arith.constant 0 : index
    %c0_22 = arith.constant 0 : index
    %52 = vector.load %arg2[%c1_20, %c0_21, %c0_22] : memref<3x192x64xbf16, #tpu.memory_space<vmem>>, vector<1x192x64xbf16>
    %53 = vector.shape_cast %52 : vector<1x192x64xbf16> to vector<192x64xbf16>
    %cst_23 = arith.constant dense<0.000000e+00> : vector<64x64xf32>
    %54 = tpu.matmul %51, %53, %cst_23 {dimension_numbers = #tpu.dot_dimension_numbers<[1], [0], [0], [1], [0, 0, 1, 1], [], []>} : vector<64x192xbf16>, vector<192x64xbf16>, vector<64x64xf32> -> vector<64x64xf32>
    %55 = arith.addf %47, %54 : vector<64x64xf32>
    %c2 = arith.constant 2 : index
    %c0_24 = arith.constant 0 : index
    %c0_25 = arith.constant 0 : index
    %56 = vector.load %arg8[%c2, %c0_24, %c0_25] : memref<3x64x256xbf16, #tpu.memory_space<vmem>>, vector<1x64x256xbf16>
    %57 = vector.shape_cast %56 : vector<1x64x256xbf16> to vector<64x256xbf16>
    %cst_26 = arith.constant dense<0.000000e+00> : vector<64x192xf32>
    %58 = tpu.matmul %57, %38, %cst_26 {dimension_numbers = #tpu.dot_dimension_numbers<[1], [0], [0], [1], [0, 0, 1, 1], [], []>} : vector<64x256xbf16>, vector<256x192xbf16>, vector<64x192xf32> -> vector<64x192xf32>
    %59 = arith.truncf %58 : vector<64x192xf32> to vector<64x192xbf16>
    %c2_27 = arith.constant 2 : index
    %c0_28 = arith.constant 0 : index
    %c0_29 = arith.constant 0 : index
    %60 = vector.load %arg2[%c2_27, %c0_28, %c0_29] : memref<3x192x64xbf16, #tpu.memory_space<vmem>>, vector<1x192x64xbf16>
    %61 = vector.shape_cast %60 : vector<1x192x64xbf16> to vector<192x64xbf16>
    %cst_30 = arith.constant dense<0.000000e+00> : vector<64x64xf32>
    %62 = tpu.matmul %59, %61, %cst_30 {dimension_numbers = #tpu.dot_dimension_numbers<[1], [0], [0], [1], [0, 0, 1, 1], [], []>} : vector<64x192xbf16>, vector<192x64xbf16>, vector<64x64xf32> -> vector<64x64xf32>
    %63 = arith.addf %55, %62 : vector<64x64xf32>
    %cst_31 = arith.constant 0.000000e+00 : f32
    %64 = vector.broadcast %cst_31 : f32 to vector<64x64xf32>
    %65 = arith.cmpf oge, %63, %64 : vector<64x64xf32>
    %cst_32 = arith.constant 0.00999999977 : f32
    %66 = vector.broadcast %cst_32 : f32 to vector<64x64xf32>
    %67 = arith.mulf %66, %63 : vector<64x64xf32>
    %68 = arith.select %65, %63, %67 : vector<64x64xi1>, vector<64x64xf32>
    %69 = arith.truncf %68 : vector<64x64xf32> to vector<64x64xbf16>
    %cst_33 = arith.constant 0.000000e+00 : bf16
    %70 = vector.broadcast %cst_33 : bf16 to vector<1x64xbf16>
    %71 = tpu.concatenate %70, %69, %70 in 0 : vector<1x64xbf16>, vector<64x64xbf16>, vector<1x64xbf16> -> vector<66x64xbf16>
    %72 = tpu.iota {dimensions = array<i32: 0>} : vector<64x1xi32>
    %c8_i32 = arith.constant 8 : i32
    %c0_i32_34 = arith.constant 0 : i32
    %73 = arith.cmpi eq, %c8_i32, %c0_i32_34 : i32
    %c1_i32_35 = arith.constant 1 : i32
    %74 = arith.select %73, %c1_i32_35, %c8_i32 : i32
    %75 = vector.broadcast %74 : i32 to vector<64x1xi32>
    %76 = arith.remsi %72, %75 : vector<64x1xi32>
    %c0_i32_36 = arith.constant 0 : i32
    %77 = vector.broadcast %c0_i32_36 : i32 to vector<64x1xi32>
    %78 = arith.cmpi ne, %76, %77 : vector<64x1xi32>
    %c0_i32_37 = arith.constant 0 : i32
    %79 = vector.broadcast %c0_i32_37 : i32 to vector<64x1xi32>
    %80 = arith.cmpi slt, %76, %79 : vector<64x1xi32>
    %c0_i32_38 = arith.constant 0 : i32
    %81 = arith.cmpi slt, %74, %c0_i32_38 : i32
    %82 = vector.broadcast %81 : i1 to vector<64x1xi1>
    %83 = vector.broadcast %82 : vector<64x1xi1> to vector<64x1xi1>
    %84 = arith.xori %80, %83 : vector<64x1xi1>
    %85 = arith.andi %84, %78 : vector<64x1xi1>
    %86 = vector.broadcast %74 : i32 to vector<64x1xi32>
    %87 = arith.addi %76, %86 : vector<64x1xi32>
    %88 = arith.select %85, %87, %76 : vector<64x1xi1>, vector<64x1xi32>
    %c1_i32_39 = arith.constant 1 : i32
    %89 = vector.broadcast %c1_i32_39 : i32 to vector<64x1xi32>
    %90 = arith.cmpi sge, %88, %89 : vector<64x1xi32>
    %91 = vector.extract_strided_slice %71 {offsets = [0, 0], sizes = [64, 64], strides = [1, 1]} : vector<66x64xbf16> to vector<64x64xbf16>
    %c0_i32_40 = arith.constant 0 : i32
    %92 = arith.sitofp %c0_i32_40 : i32 to bf16
    %93 = vector.shape_cast %90 : vector<64x1xi1> to vector<64x1xi1>
    %94 = vector.broadcast %93 : vector<64x1xi1> to vector<64x64xi1>
    %95 = vector.broadcast %92 : bf16 to vector<64x64xbf16>
    %96 = arith.select %94, %91, %95 : vector<64x64xi1>, vector<64x64xbf16>
    %c6_i32 = arith.constant 6 : i32
    %97 = vector.broadcast %c6_i32 : i32 to vector<64x1xi32>
    %98 = arith.cmpi sle, %88, %97 : vector<64x1xi32>
    %99 = vector.extract_strided_slice %71 {offsets = [2, 0], sizes = [64, 64], strides = [1, 1]} : vector<66x64xbf16> to vector<64x64xbf16>
    %c0_i32_41 = arith.constant 0 : i32
    %100 = arith.sitofp %c0_i32_41 : i32 to bf16
    %101 = vector.shape_cast %98 : vector<64x1xi1> to vector<64x1xi1>
    %102 = vector.broadcast %101 : vector<64x1xi1> to vector<64x64xi1>
    %103 = vector.broadcast %100 : bf16 to vector<64x64xbf16>
    %104 = arith.select %102, %99, %103 : vector<64x64xi1>, vector<64x64xbf16>
    %105 = tpu.concatenate %96, %69, %104 in 1 : vector<64x64xbf16>, vector<64x64xbf16>, vector<64x64xbf16> -> vector<64x192xbf16>
    %cst_42 = arith.constant 0.000000e+00 : bf16
    %106 = vector.broadcast %cst_42 : bf16 to vector<8x192xbf16>
    %107 = tpu.concatenate %106, %105, %106 in 0 : vector<8x192xbf16>, vector<64x192xbf16>, vector<8x192xbf16> -> vector<80x192xbf16>
    %cst_43 = arith.constant 0.000000e+00 : f32
    %108 = vector.broadcast %cst_43 : f32 to vector<64x64xf32>
    %109 = vector.extract_strided_slice %107 {offsets = [0, 0], sizes = [64, 192], strides = [1, 1]} : vector<80x192xbf16> to vector<64x192xbf16>
    %c0_44 = arith.constant 0 : index
    %c0_45 = arith.constant 0 : index
    %c0_46 = arith.constant 0 : index
    %110 = vector.load %arg3[%c0_44, %c0_45, %c0_46] : memref<3x192x64xbf16, #tpu.memory_space<vmem>>, vector<1x192x64xbf16>
    %111 = vector.shape_cast %110 : vector<1x192x64xbf16> to vector<192x64xbf16>
    %cst_47 = arith.constant dense<0.000000e+00> : vector<64x64xf32>
    %112 = tpu.matmul %109, %111, %cst_47 {dimension_numbers = #tpu.dot_dimension_numbers<[1], [0], [0], [1], [0, 0, 1, 1], [], []>} : vector<64x192xbf16>, vector<192x64xbf16>, vector<64x64xf32> -> vector<64x64xf32>
    %113 = arith.addf %108, %112 : vector<64x64xf32>
    %114 = vector.extract_strided_slice %107 {offsets = [8, 0], sizes = [64, 192], strides = [1, 1]} : vector<80x192xbf16> to vector<64x192xbf16>
    %c1_48 = arith.constant 1 : index
    %c0_49 = arith.constant 0 : index
    %c0_50 = arith.constant 0 : index
    %115 = vector.load %arg3[%c1_48, %c0_49, %c0_50] : memref<3x192x64xbf16, #tpu.memory_space<vmem>>, vector<1x192x64xbf16>
    %116 = vector.shape_cast %115 : vector<1x192x64xbf16> to vector<192x64xbf16>
    %cst_51 = arith.constant dense<0.000000e+00> : vector<64x64xf32>
    %117 = tpu.matmul %114, %116, %cst_51 {dimension_numbers = #tpu.dot_dimension_numbers<[1], [0], [0], [1], [0, 0, 1, 1], [], []>} : vector<64x192xbf16>, vector<192x64xbf16>, vector<64x64xf32> -> vector<64x64xf32>
    %118 = arith.addf %113, %117 : vector<64x64xf32>
    %119 = vector.extract_strided_slice %107 {offsets = [16, 0], sizes = [64, 192], strides = [1, 1]} : vector<80x192xbf16> to vector<64x192xbf16>
    %c2_52 = arith.constant 2 : index
    %c0_53 = arith.constant 0 : index
    %c0_54 = arith.constant 0 : index
    %120 = vector.load %arg3[%c2_52, %c0_53, %c0_54] : memref<3x192x64xbf16, #tpu.memory_space<vmem>>, vector<1x192x64xbf16>
    %121 = vector.shape_cast %120 : vector<1x192x64xbf16> to vector<192x64xbf16>
    %cst_55 = arith.constant dense<0.000000e+00> : vector<64x64xf32>
    %122 = tpu.matmul %119, %121, %cst_55 {dimension_numbers = #tpu.dot_dimension_numbers<[1], [0], [0], [1], [0, 0, 1, 1], [], []>} : vector<64x192xbf16>, vector<192x64xbf16>, vector<64x64xf32> -> vector<64x64xf32>
    %123 = arith.addf %118, %122 : vector<64x64xf32>
    %cst_56 = arith.constant 0.000000e+00 : f32
    %124 = vector.broadcast %cst_56 : f32 to vector<64x64xf32>
    %125 = arith.cmpf oge, %123, %124 : vector<64x64xf32>
    %cst_57 = arith.constant 0.00999999977 : f32
    %126 = vector.broadcast %cst_57 : f32 to vector<64x64xf32>
    %127 = arith.mulf %126, %123 : vector<64x64xf32>
    %128 = arith.select %125, %123, %127 : vector<64x64xi1>, vector<64x64xf32>
    %129 = arith.truncf %128 : vector<64x64xf32> to vector<64x64xbf16>
    %cst_58 = arith.constant 0.000000e+00 : bf16
    %130 = vector.broadcast %cst_58 : bf16 to vector<1x64xbf16>
    %131 = tpu.concatenate %130, %129, %130 in 0 : vector<1x64xbf16>, vector<64x64xbf16>, vector<1x64xbf16> -> vector<66x64xbf16>
    %132 = tpu.iota {dimensions = array<i32: 0>} : vector<64x1xi32>
    %c8_i32_59 = arith.constant 8 : i32
    %c0_i32_60 = arith.constant 0 : i32
    %133 = arith.cmpi eq, %c8_i32_59, %c0_i32_60 : i32
    %c1_i32_61 = arith.constant 1 : i32
    %134 = arith.select %133, %c1_i32_61, %c8_i32_59 : i32
    %135 = vector.broadcast %134 : i32 to vector<64x1xi32>
    %136 = arith.remsi %132, %135 : vector<64x1xi32>
    %c0_i32_62 = arith.constant 0 : i32
    %137 = vector.broadcast %c0_i32_62 : i32 to vector<64x1xi32>
    %138 = arith.cmpi ne, %136, %137 : vector<64x1xi32>
    %c0_i32_63 = arith.constant 0 : i32
    %139 = vector.broadcast %c0_i32_63 : i32 to vector<64x1xi32>
    %140 = arith.cmpi slt, %136, %139 : vector<64x1xi32>
    %c0_i32_64 = arith.constant 0 : i32
    %141 = arith.cmpi slt, %134, %c0_i32_64 : i32
    %142 = vector.broadcast %141 : i1 to vector<64x1xi1>
    %143 = vector.broadcast %142 : vector<64x1xi1> to vector<64x1xi1>
    %144 = arith.xori %140, %143 : vector<64x1xi1>
    %145 = arith.andi %144, %138 : vector<64x1xi1>
    %146 = vector.broadcast %134 : i32 to vector<64x1xi32>
    %147 = arith.addi %136, %146 : vector<64x1xi32>
    %148 = arith.select %145, %147, %136 : vector<64x1xi1>, vector<64x1xi32>
    %c1_i32_65 = arith.constant 1 : i32
    %149 = vector.broadcast %c1_i32_65 : i32 to vector<64x1xi32>
    %150 = arith.cmpi sge, %148, %149 : vector<64x1xi32>
    %151 = vector.extract_strided_slice %131 {offsets = [0, 0], sizes = [64, 64], strides = [1, 1]} : vector<66x64xbf16> to vector<64x64xbf16>
    %c0_i32_66 = arith.constant 0 : i32
    %152 = arith.sitofp %c0_i32_66 : i32 to bf16
    %153 = vector.shape_cast %150 : vector<64x1xi1> to vector<64x1xi1>
    %154 = vector.broadcast %153 : vector<64x1xi1> to vector<64x64xi1>
    %155 = vector.broadcast %152 : bf16 to vector<64x64xbf16>
    %156 = arith.select %154, %151, %155 : vector<64x64xi1>, vector<64x64xbf16>
    %c6_i32_67 = arith.constant 6 : i32
    %157 = vector.broadcast %c6_i32_67 : i32 to vector<64x1xi32>
    %158 = arith.cmpi sle, %148, %157 : vector<64x1xi32>
    %159 = vector.extract_strided_slice %131 {offsets = [2, 0], sizes = [64, 64], strides = [1, 1]} : vector<66x64xbf16> to vector<64x64xbf16>
    %c0_i32_68 = arith.constant 0 : i32
    %160 = arith.sitofp %c0_i32_68 : i32 to bf16
    %161 = vector.shape_cast %158 : vector<64x1xi1> to vector<64x1xi1>
    %162 = vector.broadcast %161 : vector<64x1xi1> to vector<64x64xi1>
    %163 = vector.broadcast %160 : bf16 to vector<64x64xbf16>
    %164 = arith.select %162, %159, %163 : vector<64x64xi1>, vector<64x64xbf16>
    %165 = tpu.concatenate %156, %129, %164 in 1 : vector<64x64xbf16>, vector<64x64xbf16>, vector<64x64xbf16> -> vector<64x192xbf16>
    %cst_69 = arith.constant 0.000000e+00 : f32
    %166 = vector.broadcast %cst_69 : f32 to vector<16x32xf32>
    %c0_70 = arith.constant 0 : index
    %c0_71 = arith.constant 0 : index
    %c0_72 = arith.constant 0 : index
    %167 = vector.load %arg9[%c0_70, %c0_71, %c0_72] : memref<3x16x64xbf16, #tpu.memory_space<vmem>>, vector<1x16x64xbf16>
    %168 = vector.shape_cast %167 : vector<1x16x64xbf16> to vector<16x64xbf16>
    %cst_73 = arith.constant dense<0.000000e+00> : vector<16x192xf32>
    %169 = tpu.matmul %168, %165, %cst_73 {dimension_numbers = #tpu.dot_dimension_numbers<[1], [0], [0], [1], [0, 0, 1, 1], [], []>} : vector<16x64xbf16>, vector<64x192xbf16>, vector<16x192xf32> -> vector<16x192xf32>
    %170 = arith.truncf %169 : vector<16x192xf32> to vector<16x192xbf16>
    %c0_74 = arith.constant 0 : index
    %c0_75 = arith.constant 0 : index
    %c0_76 = arith.constant 0 : index
    %171 = vector.load %arg4[%c0_74, %c0_75, %c0_76] : memref<3x192x32xbf16, #tpu.memory_space<vmem>>, vector<1x192x32xbf16>
    %172 = vector.shape_cast %171 : vector<1x192x32xbf16> to vector<192x32xbf16>
    %cst_77 = arith.constant dense<0.000000e+00> : vector<16x32xf32>
    %173 = tpu.matmul %170, %172, %cst_77 {dimension_numbers = #tpu.dot_dimension_numbers<[1], [0], [0], [1], [0, 0, 1, 1], [], []>} : vector<16x192xbf16>, vector<192x32xbf16>, vector<16x32xf32> -> vector<16x32xf32>
    %174 = arith.addf %166, %173 : vector<16x32xf32>
    %c1_78 = arith.constant 1 : index
    %c0_79 = arith.constant 0 : index
    %c0_80 = arith.constant 0 : index
    %175 = vector.load %arg9[%c1_78, %c0_79, %c0_80] : memref<3x16x64xbf16, #tpu.memory_space<vmem>>, vector<1x16x64xbf16>
    %176 = vector.shape_cast %175 : vector<1x16x64xbf16> to vector<16x64xbf16>
    %cst_81 = arith.constant dense<0.000000e+00> : vector<16x192xf32>
    %177 = tpu.matmul %176, %165, %cst_81 {dimension_numbers = #tpu.dot_dimension_numbers<[1], [0], [0], [1], [0, 0, 1, 1], [], []>} : vector<16x64xbf16>, vector<64x192xbf16>, vector<16x192xf32> -> vector<16x192xf32>
    %178 = arith.truncf %177 : vector<16x192xf32> to vector<16x192xbf16>
    %c1_82 = arith.constant 1 : index
    %c0_83 = arith.constant 0 : index
    %c0_84 = arith.constant 0 : index
    %179 = vector.load %arg4[%c1_82, %c0_83, %c0_84] : memref<3x192x32xbf16, #tpu.memory_space<vmem>>, vector<1x192x32xbf16>
    %180 = vector.shape_cast %179 : vector<1x192x32xbf16> to vector<192x32xbf16>
    %cst_85 = arith.constant dense<0.000000e+00> : vector<16x32xf32>
    %181 = tpu.matmul %178, %180, %cst_85 {dimension_numbers = #tpu.dot_dimension_numbers<[1], [0], [0], [1], [0, 0, 1, 1], [], []>} : vector<16x192xbf16>, vector<192x32xbf16>, vector<16x32xf32> -> vector<16x32xf32>
    %182 = arith.addf %174, %181 : vector<16x32xf32>
    %c2_86 = arith.constant 2 : index
    %c0_87 = arith.constant 0 : index
    %c0_88 = arith.constant 0 : index
    %183 = vector.load %arg9[%c2_86, %c0_87, %c0_88] : memref<3x16x64xbf16, #tpu.memory_space<vmem>>, vector<1x16x64xbf16>
    %184 = vector.shape_cast %183 : vector<1x16x64xbf16> to vector<16x64xbf16>
    %cst_89 = arith.constant dense<0.000000e+00> : vector<16x192xf32>
    %185 = tpu.matmul %184, %165, %cst_89 {dimension_numbers = #tpu.dot_dimension_numbers<[1], [0], [0], [1], [0, 0, 1, 1], [], []>} : vector<16x64xbf16>, vector<64x192xbf16>, vector<16x192xf32> -> vector<16x192xf32>
    %186 = arith.truncf %185 : vector<16x192xf32> to vector<16x192xbf16>
    %c2_90 = arith.constant 2 : index
    %c0_91 = arith.constant 0 : index
    %c0_92 = arith.constant 0 : index
    %187 = vector.load %arg4[%c2_90, %c0_91, %c0_92] : memref<3x192x32xbf16, #tpu.memory_space<vmem>>, vector<1x192x32xbf16>
    %188 = vector.shape_cast %187 : vector<1x192x32xbf16> to vector<192x32xbf16>
    %cst_93 = arith.constant dense<0.000000e+00> : vector<16x32xf32>
    %189 = tpu.matmul %186, %188, %cst_93 {dimension_numbers = #tpu.dot_dimension_numbers<[1], [0], [0], [1], [0, 0, 1, 1], [], []>} : vector<16x192xbf16>, vector<192x32xbf16>, vector<16x32xf32> -> vector<16x32xf32>
    %190 = arith.addf %182, %189 : vector<16x32xf32>
    %cst_94 = arith.constant 0.000000e+00 : f32
    %191 = vector.broadcast %cst_94 : f32 to vector<16x32xf32>
    %192 = arith.cmpf oge, %190, %191 : vector<16x32xf32>
    %cst_95 = arith.constant 0.00999999977 : f32
    %193 = vector.broadcast %cst_95 : f32 to vector<16x32xf32>
    %194 = arith.mulf %193, %190 : vector<16x32xf32>
    %195 = arith.select %192, %190, %194 : vector<16x32xi1>, vector<16x32xf32>
    %196 = arith.truncf %195 : vector<16x32xf32> to vector<16x32xbf16>
    %cst_96 = arith.constant 0.000000e+00 : bf16
    %197 = vector.broadcast %cst_96 : bf16 to vector<1x32xbf16>
    %198 = tpu.concatenate %197, %196, %197 in 0 : vector<1x32xbf16>, vector<16x32xbf16>, vector<1x32xbf16> -> vector<18x32xbf16>
    %199 = tpu.iota {dimensions = array<i32: 0>} : vector<16x1xi32>
    %c4_i32 = arith.constant 4 : i32
    %c0_i32_97 = arith.constant 0 : i32
    %200 = arith.cmpi eq, %c4_i32, %c0_i32_97 : i32
    %c1_i32_98 = arith.constant 1 : i32
    %201 = arith.select %200, %c1_i32_98, %c4_i32 : i32
    %202 = vector.broadcast %201 : i32 to vector<16x1xi32>
    %203 = arith.remsi %199, %202 : vector<16x1xi32>
    %c0_i32_99 = arith.constant 0 : i32
    %204 = vector.broadcast %c0_i32_99 : i32 to vector<16x1xi32>
    %205 = arith.cmpi ne, %203, %204 : vector<16x1xi32>
    %c0_i32_100 = arith.constant 0 : i32
    %206 = vector.broadcast %c0_i32_100 : i32 to vector<16x1xi32>
    %207 = arith.cmpi slt, %203, %206 : vector<16x1xi32>
    %c0_i32_101 = arith.constant 0 : i32
    %208 = arith.cmpi slt, %201, %c0_i32_101 : i32
    %209 = vector.broadcast %208 : i1 to vector<16x1xi1>
    %210 = vector.broadcast %209 : vector<16x1xi1> to vector<16x1xi1>
    %211 = arith.xori %207, %210 : vector<16x1xi1>
    %212 = arith.andi %211, %205 : vector<16x1xi1>
    %213 = vector.broadcast %201 : i32 to vector<16x1xi32>
    %214 = arith.addi %203, %213 : vector<16x1xi32>
    %215 = arith.select %212, %214, %203 : vector<16x1xi1>, vector<16x1xi32>
    %c1_i32_102 = arith.constant 1 : i32
    %216 = vector.broadcast %c1_i32_102 : i32 to vector<16x1xi32>
    %217 = arith.cmpi sge, %215, %216 : vector<16x1xi32>
    %218 = vector.extract_strided_slice %198 {offsets = [0, 0], sizes = [16, 32], strides = [1, 1]} : vector<18x32xbf16> to vector<16x32xbf16>
    %c0_i32_103 = arith.constant 0 : i32
    %219 = arith.sitofp %c0_i32_103 : i32 to bf16
    %220 = vector.shape_cast %217 : vector<16x1xi1> to vector<16x1xi1>
    %221 = vector.broadcast %220 : vector<16x1xi1> to vector<16x32xi1>
    %222 = vector.broadcast %219 : bf16 to vector<16x32xbf16>
    %223 = arith.select %221, %218, %222 : vector<16x32xi1>, vector<16x32xbf16>
    %c2_i32 = arith.constant 2 : i32
    %224 = vector.broadcast %c2_i32 : i32 to vector<16x1xi32>
    %225 = arith.cmpi sle, %215, %224 : vector<16x1xi32>
    %226 = vector.extract_strided_slice %198 {offsets = [2, 0], sizes = [16, 32], strides = [1, 1]} : vector<18x32xbf16> to vector<16x32xbf16>
    %c0_i32_104 = arith.constant 0 : i32
    %227 = arith.sitofp %c0_i32_104 : i32 to bf16
    %228 = vector.shape_cast %225 : vector<16x1xi1> to vector<16x1xi1>
    %229 = vector.broadcast %228 : vector<16x1xi1> to vector<16x32xi1>
    %230 = vector.broadcast %227 : bf16 to vector<16x32xbf16>
    %231 = arith.select %229, %226, %230 : vector<16x32xi1>, vector<16x32xbf16>
    %232 = tpu.concatenate %223, %196, %231 in 1 : vector<16x32xbf16>, vector<16x32xbf16>, vector<16x32xbf16> -> vector<16x96xbf16>
    %cst_105 = arith.constant 0.000000e+00 : bf16
    %233 = vector.broadcast %cst_105 : bf16 to vector<4x96xbf16>
    %234 = tpu.concatenate %233, %232, %233 in 0 : vector<4x96xbf16>, vector<16x96xbf16>, vector<4x96xbf16> -> vector<24x96xbf16>
    %cst_106 = arith.constant 0.000000e+00 : f32
    %235 = vector.broadcast %cst_106 : f32 to vector<16x32xf32>
    %236 = vector.extract_strided_slice %234 {offsets = [0, 0], sizes = [16, 96], strides = [1, 1]} : vector<24x96xbf16> to vector<16x96xbf16>
    %c0_107 = arith.constant 0 : index
    %c0_108 = arith.constant 0 : index
    %c0_109 = arith.constant 0 : index
    %237 = vector.load %arg5[%c0_107, %c0_108, %c0_109] : memref<3x96x32xbf16, #tpu.memory_space<vmem>>, vector<1x96x32xbf16>
    %238 = vector.shape_cast %237 : vector<1x96x32xbf16> to vector<96x32xbf16>
    %cst_110 = arith.constant dense<0.000000e+00> : vector<16x32xf32>
    %239 = tpu.matmul %236, %238, %cst_110 {dimension_numbers = #tpu.dot_dimension_numbers<[1], [0], [0], [1], [0, 0, 1, 1], [], []>} : vector<16x96xbf16>, vector<96x32xbf16>, vector<16x32xf32> -> vector<16x32xf32>
    %240 = arith.addf %235, %239 : vector<16x32xf32>
    %241 = vector.extract_strided_slice %234 {offsets = [4, 0], sizes = [16, 96], strides = [1, 1]} : vector<24x96xbf16> to vector<16x96xbf16>
    %c1_111 = arith.constant 1 : index
    %c0_112 = arith.constant 0 : index
    %c0_113 = arith.constant 0 : index
    %242 = vector.load %arg5[%c1_111, %c0_112, %c0_113] : memref<3x96x32xbf16, #tpu.memory_space<vmem>>, vector<1x96x32xbf16>
    %243 = vector.shape_cast %242 : vector<1x96x32xbf16> to vector<96x32xbf16>
    %cst_114 = arith.constant dense<0.000000e+00> : vector<16x32xf32>
    %244 = tpu.matmul %241, %243, %cst_114 {dimension_numbers = #tpu.dot_dimension_numbers<[1], [0], [0], [1], [0, 0, 1, 1], [], []>} : vector<16x96xbf16>, vector<96x32xbf16>, vector<16x32xf32> -> vector<16x32xf32>
    %245 = arith.addf %240, %244 : vector<16x32xf32>
    %246 = vector.extract_strided_slice %234 {offsets = [8, 0], sizes = [16, 96], strides = [1, 1]} : vector<24x96xbf16> to vector<16x96xbf16>
    %c2_115 = arith.constant 2 : index
    %c0_116 = arith.constant 0 : index
    %c0_117 = arith.constant 0 : index
    %247 = vector.load %arg5[%c2_115, %c0_116, %c0_117] : memref<3x96x32xbf16, #tpu.memory_space<vmem>>, vector<1x96x32xbf16>
    %248 = vector.shape_cast %247 : vector<1x96x32xbf16> to vector<96x32xbf16>
    %cst_118 = arith.constant dense<0.000000e+00> : vector<16x32xf32>
    %249 = tpu.matmul %246, %248, %cst_118 {dimension_numbers = #tpu.dot_dimension_numbers<[1], [0], [0], [1], [0, 0, 1, 1], [], []>} : vector<16x96xbf16>, vector<96x32xbf16>, vector<16x32xf32> -> vector<16x32xf32>
    %250 = arith.addf %245, %249 : vector<16x32xf32>
    %cst_119 = arith.constant 0.000000e+00 : f32
    %251 = vector.broadcast %cst_119 : f32 to vector<16x32xf32>
    %252 = arith.cmpf oge, %250, %251 : vector<16x32xf32>
    %cst_120 = arith.constant 0.00999999977 : f32
    %253 = vector.broadcast %cst_120 : f32 to vector<16x32xf32>
    %254 = arith.mulf %253, %250 : vector<16x32xf32>
    %255 = arith.select %252, %250, %254 : vector<16x32xi1>, vector<16x32xf32>
    %c0_121 = arith.constant 0 : index
    %c0_122 = arith.constant 0 : index
    %256 = vector.load %arg10[%c0_121, %c0_122] : memref<64x16xbf16, #tpu.memory_space<vmem>>, vector<64x16xbf16>
    %257 = arith.truncf %255 : vector<16x32xf32> to vector<16x32xbf16>
    %cst_123 = arith.constant dense<0.000000e+00> : vector<64x32xf32>
    %258 = tpu.matmul %256, %257, %cst_123 {dimension_numbers = #tpu.dot_dimension_numbers<[1], [0], [0], [1], [0, 0, 1, 1], [], []>} : vector<64x16xbf16>, vector<16x32xbf16>, vector<64x32xf32> -> vector<64x32xf32>
    %259 = arith.truncf %258 : vector<64x32xf32> to vector<64x32xbf16>
    %cst_124 = arith.constant 0.000000e+00 : bf16
    %260 = vector.broadcast %cst_124 : bf16 to vector<1x32xbf16>
    %261 = tpu.concatenate %260, %259, %260 in 0 : vector<1x32xbf16>, vector<64x32xbf16>, vector<1x32xbf16> -> vector<66x32xbf16>
    %262 = tpu.iota {dimensions = array<i32: 0>} : vector<64x1xi32>
    %c8_i32_125 = arith.constant 8 : i32
    %c0_i32_126 = arith.constant 0 : i32
    %263 = arith.cmpi eq, %c8_i32_125, %c0_i32_126 : i32
    %c1_i32_127 = arith.constant 1 : i32
    %264 = arith.select %263, %c1_i32_127, %c8_i32_125 : i32
    %265 = vector.broadcast %264 : i32 to vector<64x1xi32>
    %266 = arith.remsi %262, %265 : vector<64x1xi32>
    %c0_i32_128 = arith.constant 0 : i32
    %267 = vector.broadcast %c0_i32_128 : i32 to vector<64x1xi32>
    %268 = arith.cmpi ne, %266, %267 : vector<64x1xi32>
    %c0_i32_129 = arith.constant 0 : i32
    %269 = vector.broadcast %c0_i32_129 : i32 to vector<64x1xi32>
    %270 = arith.cmpi slt, %266, %269 : vector<64x1xi32>
    %c0_i32_130 = arith.constant 0 : i32
    %271 = arith.cmpi slt, %264, %c0_i32_130 : i32
    %272 = vector.broadcast %271 : i1 to vector<64x1xi1>
    %273 = vector.broadcast %272 : vector<64x1xi1> to vector<64x1xi1>
    %274 = arith.xori %270, %273 : vector<64x1xi1>
    %275 = arith.andi %274, %268 : vector<64x1xi1>
    %276 = vector.broadcast %264 : i32 to vector<64x1xi32>
    %277 = arith.addi %266, %276 : vector<64x1xi32>
    %278 = arith.select %275, %277, %266 : vector<64x1xi1>, vector<64x1xi32>
    %c1_i32_131 = arith.constant 1 : i32
    %279 = vector.broadcast %c1_i32_131 : i32 to vector<64x1xi32>
    %280 = arith.cmpi sge, %278, %279 : vector<64x1xi32>
    %281 = vector.extract_strided_slice %261 {offsets = [0, 0], sizes = [64, 32], strides = [1, 1]} : vector<66x32xbf16> to vector<64x32xbf16>
    %c0_i32_132 = arith.constant 0 : i32
    %282 = arith.sitofp %c0_i32_132 : i32 to bf16
    %283 = vector.shape_cast %280 : vector<64x1xi1> to vector<64x1xi1>
    %284 = vector.broadcast %283 : vector<64x1xi1> to vector<64x32xi1>
    %285 = vector.broadcast %282 : bf16 to vector<64x32xbf16>
    %286 = arith.select %284, %281, %285 : vector<64x32xi1>, vector<64x32xbf16>
    %c6_i32_133 = arith.constant 6 : i32
    %287 = vector.broadcast %c6_i32_133 : i32 to vector<64x1xi32>
    %288 = arith.cmpi sle, %278, %287 : vector<64x1xi32>
    %289 = vector.extract_strided_slice %261 {offsets = [2, 0], sizes = [64, 32], strides = [1, 1]} : vector<66x32xbf16> to vector<64x32xbf16>
    %c0_i32_134 = arith.constant 0 : i32
    %290 = arith.sitofp %c0_i32_134 : i32 to bf16
    %291 = vector.shape_cast %288 : vector<64x1xi1> to vector<64x1xi1>
    %292 = vector.broadcast %291 : vector<64x1xi1> to vector<64x32xi1>
    %293 = vector.broadcast %290 : bf16 to vector<64x32xbf16>
    %294 = arith.select %292, %289, %293 : vector<64x32xi1>, vector<64x32xbf16>
    %295 = tpu.concatenate %286, %259, %294 in 1 : vector<64x32xbf16>, vector<64x32xbf16>, vector<64x32xbf16> -> vector<64x96xbf16>
    %cst_135 = arith.constant 0.000000e+00 : bf16
    %296 = vector.broadcast %cst_135 : bf16 to vector<8x96xbf16>
    %297 = tpu.concatenate %296, %295, %296 in 0 : vector<8x96xbf16>, vector<64x96xbf16>, vector<8x96xbf16> -> vector<80x96xbf16>
    %cst_136 = arith.constant 0.000000e+00 : f32
    %298 = vector.broadcast %cst_136 : f32 to vector<64x64xf32>
    %299 = vector.extract_strided_slice %297 {offsets = [0, 0], sizes = [64, 96], strides = [1, 1]} : vector<80x96xbf16> to vector<64x96xbf16>
    %c0_137 = arith.constant 0 : index
    %c0_138 = arith.constant 0 : index
    %c0_139 = arith.constant 0 : index
    %300 = vector.load %arg6[%c0_137, %c0_138, %c0_139] : memref<3x96x64xbf16, #tpu.memory_space<vmem>>, vector<1x96x64xbf16>
    %301 = vector.shape_cast %300 : vector<1x96x64xbf16> to vector<96x64xbf16>
    %cst_140 = arith.constant dense<0.000000e+00> : vector<64x64xf32>
    %302 = tpu.matmul %299, %301, %cst_140 {dimension_numbers = #tpu.dot_dimension_numbers<[1], [0], [0], [1], [0, 0, 1, 1], [], []>} : vector<64x96xbf16>, vector<96x64xbf16>, vector<64x64xf32> -> vector<64x64xf32>
    %303 = arith.addf %298, %302 : vector<64x64xf32>
    %304 = vector.extract_strided_slice %297 {offsets = [8, 0], sizes = [64, 96], strides = [1, 1]} : vector<80x96xbf16> to vector<64x96xbf16>
    %c1_141 = arith.constant 1 : index
    %c0_142 = arith.constant 0 : index
    %c0_143 = arith.constant 0 : index
    %305 = vector.load %arg6[%c1_141, %c0_142, %c0_143] : memref<3x96x64xbf16, #tpu.memory_space<vmem>>, vector<1x96x64xbf16>
    %306 = vector.shape_cast %305 : vector<1x96x64xbf16> to vector<96x64xbf16>
    %cst_144 = arith.constant dense<0.000000e+00> : vector<64x64xf32>
    %307 = tpu.matmul %304, %306, %cst_144 {dimension_numbers = #tpu.dot_dimension_numbers<[1], [0], [0], [1], [0, 0, 1, 1], [], []>} : vector<64x96xbf16>, vector<96x64xbf16>, vector<64x64xf32> -> vector<64x64xf32>
    %308 = arith.addf %303, %307 : vector<64x64xf32>
    %309 = vector.extract_strided_slice %297 {offsets = [16, 0], sizes = [64, 96], strides = [1, 1]} : vector<80x96xbf16> to vector<64x96xbf16>
    %c2_145 = arith.constant 2 : index
    %c0_146 = arith.constant 0 : index
    %c0_147 = arith.constant 0 : index
    %310 = vector.load %arg6[%c2_145, %c0_146, %c0_147] : memref<3x96x64xbf16, #tpu.memory_space<vmem>>, vector<1x96x64xbf16>
    %311 = vector.shape_cast %310 : vector<1x96x64xbf16> to vector<96x64xbf16>
    %cst_148 = arith.constant dense<0.000000e+00> : vector<64x64xf32>
    %312 = tpu.matmul %309, %311, %cst_148 {dimension_numbers = #tpu.dot_dimension_numbers<[1], [0], [0], [1], [0, 0, 1, 1], [], []>} : vector<64x96xbf16>, vector<96x64xbf16>, vector<64x64xf32> -> vector<64x64xf32>
    %313 = arith.addf %308, %312 : vector<64x64xf32>
    %314 = arith.addf %313, %128 : vector<64x64xf32>
    %cst_149 = arith.constant 0.000000e+00 : f32
    %315 = vector.broadcast %cst_149 : f32 to vector<64x64xf32>
    %316 = arith.cmpf oge, %314, %315 : vector<64x64xf32>
    %cst_150 = arith.constant 0.00999999977 : f32
    %317 = vector.broadcast %cst_150 : f32 to vector<64x64xf32>
    %318 = arith.mulf %317, %314 : vector<64x64xf32>
    %319 = arith.select %316, %314, %318 : vector<64x64xi1>, vector<64x64xf32>
    %c0_151 = arith.constant 0 : index
    %c0_152 = arith.constant 0 : index
    %320 = vector.load %arg11[%c0_151, %c0_152] : memref<256x64xbf16, #tpu.memory_space<vmem>>, vector<256x64xbf16>
    %321 = arith.truncf %319 : vector<64x64xf32> to vector<64x64xbf16>
    %cst_153 = arith.constant dense<0.000000e+00> : vector<256x64xf32>
    %322 = tpu.matmul %320, %321, %cst_153 {dimension_numbers = #tpu.dot_dimension_numbers<[1], [0], [0], [1], [0, 0, 1, 1], [], []>} : vector<256x64xbf16>, vector<64x64xbf16>, vector<256x64xf32> -> vector<256x64xf32>
    %323 = arith.truncf %322 : vector<256x64xf32> to vector<256x64xbf16>
    %cst_154 = arith.constant 0.000000e+00 : bf16
    %324 = vector.broadcast %cst_154 : bf16 to vector<1x64xbf16>
    %325 = tpu.concatenate %324, %323, %324 in 0 : vector<1x64xbf16>, vector<256x64xbf16>, vector<1x64xbf16> -> vector<258x64xbf16>
    %326 = tpu.iota {dimensions = array<i32: 0>} : vector<256x1xi32>
    %c16_i32_155 = arith.constant 16 : i32
    %c0_i32_156 = arith.constant 0 : i32
    %327 = arith.cmpi eq, %c16_i32_155, %c0_i32_156 : i32
    %c1_i32_157 = arith.constant 1 : i32
    %328 = arith.select %327, %c1_i32_157, %c16_i32_155 : i32
    %329 = vector.broadcast %328 : i32 to vector<256x1xi32>
    %330 = arith.remsi %326, %329 : vector<256x1xi32>
    %c0_i32_158 = arith.constant 0 : i32
    %331 = vector.broadcast %c0_i32_158 : i32 to vector<256x1xi32>
    %332 = arith.cmpi ne, %330, %331 : vector<256x1xi32>
    %c0_i32_159 = arith.constant 0 : i32
    %333 = vector.broadcast %c0_i32_159 : i32 to vector<256x1xi32>
    %334 = arith.cmpi slt, %330, %333 : vector<256x1xi32>
    %c0_i32_160 = arith.constant 0 : i32
    %335 = arith.cmpi slt, %328, %c0_i32_160 : i32
    %336 = vector.broadcast %335 : i1 to vector<256x1xi1>
    %337 = vector.broadcast %336 : vector<256x1xi1> to vector<256x1xi1>
    %338 = arith.xori %334, %337 : vector<256x1xi1>
    %339 = arith.andi %338, %332 : vector<256x1xi1>
    %340 = vector.broadcast %328 : i32 to vector<256x1xi32>
    %341 = arith.addi %330, %340 : vector<256x1xi32>
    %342 = arith.select %339, %341, %330 : vector<256x1xi1>, vector<256x1xi32>
    %c1_i32_161 = arith.constant 1 : i32
    %343 = vector.broadcast %c1_i32_161 : i32 to vector<256x1xi32>
    %344 = arith.cmpi sge, %342, %343 : vector<256x1xi32>
    %345 = vector.extract_strided_slice %325 {offsets = [0, 0], sizes = [256, 64], strides = [1, 1]} : vector<258x64xbf16> to vector<256x64xbf16>
    %c0_i32_162 = arith.constant 0 : i32
    %346 = arith.sitofp %c0_i32_162 : i32 to bf16
    %347 = vector.shape_cast %344 : vector<256x1xi1> to vector<256x1xi1>
    %348 = vector.broadcast %347 : vector<256x1xi1> to vector<256x64xi1>
    %349 = vector.broadcast %346 : bf16 to vector<256x64xbf16>
    %350 = arith.select %348, %345, %349 : vector<256x64xi1>, vector<256x64xbf16>
    %c14_i32_163 = arith.constant 14 : i32
    %351 = vector.broadcast %c14_i32_163 : i32 to vector<256x1xi32>
    %352 = arith.cmpi sle, %342, %351 : vector<256x1xi32>
    %353 = vector.extract_strided_slice %325 {offsets = [2, 0], sizes = [256, 64], strides = [1, 1]} : vector<258x64xbf16> to vector<256x64xbf16>
    %c0_i32_164 = arith.constant 0 : i32
    %354 = arith.sitofp %c0_i32_164 : i32 to bf16
    %355 = vector.shape_cast %352 : vector<256x1xi1> to vector<256x1xi1>
    %356 = vector.broadcast %355 : vector<256x1xi1> to vector<256x64xi1>
    %357 = vector.broadcast %354 : bf16 to vector<256x64xbf16>
    %358 = arith.select %356, %353, %357 : vector<256x64xi1>, vector<256x64xbf16>
    %359 = tpu.concatenate %350, %323, %358 in 1 : vector<256x64xbf16>, vector<256x64xbf16>, vector<256x64xbf16> -> vector<256x192xbf16>
    %cst_165 = arith.constant 0.000000e+00 : bf16
    %360 = vector.broadcast %cst_165 : bf16 to vector<16x192xbf16>
    %361 = tpu.concatenate %360, %359, %360 in 0 : vector<16x192xbf16>, vector<256x192xbf16>, vector<16x192xbf16> -> vector<288x192xbf16>
    %cst_166 = arith.constant 0.000000e+00 : f32
    %362 = vector.broadcast %cst_166 : f32 to vector<256x64xf32>
    %363 = vector.extract_strided_slice %361 {offsets = [0, 0], sizes = [256, 192], strides = [1, 1]} : vector<288x192xbf16> to vector<256x192xbf16>
    %c0_167 = arith.constant 0 : index
    %c0_168 = arith.constant 0 : index
    %c0_169 = arith.constant 0 : index
    %364 = vector.load %arg7[%c0_167, %c0_168, %c0_169] : memref<3x192x64xbf16, #tpu.memory_space<vmem>>, vector<1x192x64xbf16>
    %365 = vector.shape_cast %364 : vector<1x192x64xbf16> to vector<192x64xbf16>
    %cst_170 = arith.constant dense<0.000000e+00> : vector<256x64xf32>
    %366 = tpu.matmul %363, %365, %cst_170 {dimension_numbers = #tpu.dot_dimension_numbers<[1], [0], [0], [1], [0, 0, 1, 1], [], []>} : vector<256x192xbf16>, vector<192x64xbf16>, vector<256x64xf32> -> vector<256x64xf32>
    %367 = arith.addf %362, %366 : vector<256x64xf32>
    %368 = vector.extract_strided_slice %361 {offsets = [16, 0], sizes = [256, 192], strides = [1, 1]} : vector<288x192xbf16> to vector<256x192xbf16>
    %c1_171 = arith.constant 1 : index
    %c0_172 = arith.constant 0 : index
    %c0_173 = arith.constant 0 : index
    %369 = vector.load %arg7[%c1_171, %c0_172, %c0_173] : memref<3x192x64xbf16, #tpu.memory_space<vmem>>, vector<1x192x64xbf16>
    %370 = vector.shape_cast %369 : vector<1x192x64xbf16> to vector<192x64xbf16>
    %cst_174 = arith.constant dense<0.000000e+00> : vector<256x64xf32>
    %371 = tpu.matmul %368, %370, %cst_174 {dimension_numbers = #tpu.dot_dimension_numbers<[1], [0], [0], [1], [0, 0, 1, 1], [], []>} : vector<256x192xbf16>, vector<192x64xbf16>, vector<256x64xf32> -> vector<256x64xf32>
    %372 = arith.addf %367, %371 : vector<256x64xf32>
    %373 = vector.extract_strided_slice %361 {offsets = [32, 0], sizes = [256, 192], strides = [1, 1]} : vector<288x192xbf16> to vector<256x192xbf16>
    %c2_175 = arith.constant 2 : index
    %c0_176 = arith.constant 0 : index
    %c0_177 = arith.constant 0 : index
    %374 = vector.load %arg7[%c2_175, %c0_176, %c0_177] : memref<3x192x64xbf16, #tpu.memory_space<vmem>>, vector<1x192x64xbf16>
    %375 = vector.shape_cast %374 : vector<1x192x64xbf16> to vector<192x64xbf16>
    %cst_178 = arith.constant dense<0.000000e+00> : vector<256x64xf32>
    %376 = tpu.matmul %373, %375, %cst_178 {dimension_numbers = #tpu.dot_dimension_numbers<[1], [0], [0], [1], [0, 0, 1, 1], [], []>} : vector<256x192xbf16>, vector<192x64xbf16>, vector<256x64xf32> -> vector<256x64xf32>
    %377 = arith.addf %372, %376 : vector<256x64xf32>
    %c0_179 = arith.constant 0 : index
    %c0_180 = arith.constant 0 : index
    %c0_181 = arith.constant 0 : index
    %378 = vector.load %arg12[%c0_179, %c0_180, %c0_181] : memref<1x256x64xf32, #tpu.memory_space<vmem>>, vector<1x256x64xf32>
    %379 = vector.shape_cast %378 : vector<1x256x64xf32> to vector<256x64xf32>
    %380 = vector.shape_cast %377 : vector<256x64xf32> to vector<1x256x64xf32>
    tpu.vector_store %arg12[%c0_179, %c0_180, %c0_181], %380 {strides = array<i32>} : memref<1x256x64xf32, #tpu.memory_space<vmem>>, vector<1x256x64xf32>,
    %c0_182 = arith.constant 0 : index
    %c0_183 = arith.constant 0 : index
    %c0_184 = arith.constant 0 : index
    %381 = vector.load %arg13[%c0_182, %c0_183, %c0_184] : memref<1x64x64xf32, #tpu.memory_space<vmem>>, vector<1x64x64xf32>
    %382 = vector.shape_cast %381 : vector<1x64x64xf32> to vector<64x64xf32>
    %383 = vector.shape_cast %128 : vector<64x64xf32> to vector<1x64x64xf32>
    tpu.vector_store %arg13[%c0_182, %c0_183, %c0_184], %383 {strides = array<i32>} : memref<1x64x64xf32, #tpu.memory_space<vmem>>, vector<1x64x64xf32>,
    %c0_185 = arith.constant 0 : index
    %c0_186 = arith.constant 0 : index
    %c0_187 = arith.constant 0 : index
    %384 = vector.load %arg14[%c0_185, %c0_186, %c0_187] : memref<1x64x64xf32, #tpu.memory_space<vmem>>, vector<1x64x64xf32>
    %385 = vector.shape_cast %384 : vector<1x64x64xf32> to vector<64x64xf32>
    %386 = vector.shape_cast %319 : vector<64x64xf32> to vector<1x64x64xf32>
    tpu.vector_store %arg14[%c0_185, %c0_186, %c0_187], %386 {strides = array<i32>} : memref<1x64x64xf32, #tpu.memory_space<vmem>>, vector<1x64x64xf32>,
    return
  }
  func.func @transform_0(%arg0: i32) -> (i32, i32, i32) {
    %c0_i32 = arith.constant 0 : i32
    %c0_i32_0 = arith.constant 0 : i32
    %c0_i32_1 = arith.constant 0 : i32
    return %arg0, %c0_i32, %c0_i32_0 : i32, i32, i32
  }
  func.func @transform_1(%arg0: i32) -> (i32, i32, i32) {
    %c0_i32 = arith.constant 0 : i32
    %c0_i32_0 = arith.constant 0 : i32
    %c0_i32_1 = arith.constant 0 : i32
    %c0_i32_2 = arith.constant 0 : i32
    return %c0_i32, %c0_i32_0, %c0_i32_1 : i32, i32, i32
  }
  func.func @transform_2(%arg0: i32) -> (i32, i32, i32) {
    %c0_i32 = arith.constant 0 : i32
    %c0_i32_0 = arith.constant 0 : i32
    %c0_i32_1 = arith.constant 0 : i32
    %c0_i32_2 = arith.constant 0 : i32
    return %c0_i32, %c0_i32_0, %c0_i32_1 : i32, i32, i32
  }
  func.func @transform_3(%arg0: i32) -> (i32, i32, i32) {
    %c0_i32 = arith.constant 0 : i32
    %c0_i32_0 = arith.constant 0 : i32
    %c0_i32_1 = arith.constant 0 : i32
    %c0_i32_2 = arith.constant 0 : i32
    return %c0_i32, %c0_i32_0, %c0_i32_1 : i32, i32, i32
  }
  func.func @transform_4(%arg0: i32) -> (i32, i32, i32) {
    %c0_i32 = arith.constant 0 : i32
    %c0_i32_0 = arith.constant 0 : i32
    %c0_i32_1 = arith.constant 0 : i32
    %c0_i32_2 = arith.constant 0 : i32
    return %c0_i32, %c0_i32_0, %c0_i32_1 : i32, i32, i32
  }
  func.func @transform_5(%arg0: i32) -> (i32, i32, i32) {
    %c0_i32 = arith.constant 0 : i32
    %c0_i32_0 = arith.constant 0 : i32
    %c0_i32_1 = arith.constant 0 : i32
    %c0_i32_2 = arith.constant 0 : i32
    return %c0_i32, %c0_i32_0, %c0_i32_1 : i32, i32, i32
  }
  func.func @transform_6(%arg0: i32) -> (i32, i32, i32) {
    %c0_i32 = arith.constant 0 : i32
    %c0_i32_0 = arith.constant 0 : i32
    %c0_i32_1 = arith.constant 0 : i32
    %c0_i32_2 = arith.constant 0 : i32
    return %c0_i32, %c0_i32_0, %c0_i32_1 : i32, i32, i32
  }
  func.func @transform_7(%arg0: i32) -> (i32, i32, i32) {
    %c0_i32 = arith.constant 0 : i32
    %c0_i32_0 = arith.constant 0 : i32
    %c0_i32_1 = arith.constant 0 : i32
    %c0_i32_2 = arith.constant 0 : i32
    return %c0_i32, %c0_i32_0, %c0_i32_1 : i32, i32, i32
  }
  func.func @transform_8(%arg0: i32) -> (i32, i32, i32) {
    %c0_i32 = arith.constant 0 : i32
    %c0_i32_0 = arith.constant 0 : i32
    %c0_i32_1 = arith.constant 0 : i32
    %c0_i32_2 = arith.constant 0 : i32
    return %c0_i32, %c0_i32_0, %c0_i32_1 : i32, i32, i32
  }
  func.func @transform_9(%arg0: i32) -> (i32, i32) {
    %c0_i32 = arith.constant 0 : i32
    %c0_i32_0 = arith.constant 0 : i32
    %c0_i32_1 = arith.constant 0 : i32
    return %c0_i32, %c0_i32_0 : i32, i32
  }
  func.func @transform_10(%arg0: i32) -> (i32, i32) {
    %c0_i32 = arith.constant 0 : i32
    %c0_i32_0 = arith.constant 0 : i32
    %c0_i32_1 = arith.constant 0 : i32
    return %c0_i32, %c0_i32_0 : i32, i32
  }
  func.func @transform_11(%arg0: i32) -> (i32, i32, i32) {
    %c0_i32 = arith.constant 0 : i32
    %c0_i32_0 = arith.constant 0 : i32
    %c0_i32_1 = arith.constant 0 : i32
    return %arg0, %c0_i32, %c0_i32_0 : i32, i32, i32
  }
  func.func @transform_12(%arg0: i32) -> (i32, i32, i32) {
    %c0_i32 = arith.constant 0 : i32
    %c0_i32_0 = arith.constant 0 : i32
    %c0_i32_1 = arith.constant 0 : i32
    return %arg0, %c0_i32, %c0_i32_0 : i32, i32, i32
  }
  func.func @transform_13(%arg0: i32) -> (i32, i32, i32) {
    %c0_i32 = arith.constant 0 : i32
    %c0_i32_0 = arith.constant 0 : i32
    %c0_i32_1 = arith.constant 0 : i32
    return %arg0, %c0_i32, %c0_i32_0 : i32, i32, i32
  }
}

</mosaic_0001>

<bundles_post_ra>
// kernel: hourglass3d_forward.1
= control target key start
LH: loop header
LB: loop body
LE: loop exit
PB: predicated region body
PF: predicated region fallthrough
CT: control target
= control target key end

     0   :  { %s8471_s25 = smov 0   ;;  %s11457_s0 = inlined_call_operand.vmem [shape: f32[2,256,64], index: 0, kind: input, shape index: {}]   ;;  %s11458_s1 = inlined_call_operand.vmem [shape: bf16[3,192,64], index: 1, kind: input, shape index: {}]   ;;  %s11459_s2 = inlined_call_operand.vmem [shape: bf16[3,192,64], index: 2, kind: input, shape index: {}]   ;;  %s11460_s3 = inlined_call_operand.vmem [shape: bf16[3,192,32], index: 3, kind: input, shape index: {}]   ;;  %s11461_s4 = inlined_call_operand.vmem [shape: bf16[3,96,32], index: 4, kind: input, shape index: {}]   ;;  %s11462_s5 = inlined_call_operand.vmem [shape: bf16[3,96,64], index: 5, kind: input, shape index: {}]   ;;  %s11463_s6 = inlined_call_operand.vmem [shape: bf16[3,192,64], index: 6, kind: input, shape index: {}]   ;;  %s11464_s7 = inlined_call_operand.vmem [shape: bf16[3,64,256], index: 7, kind: input, shape index: {}]   ;;  %s11465_s8 = inlined_call_operand.vmem [shape: bf16[3,16,64], index: 8, kind: input, shape index: {}]   ;;  %s11466_s9 = inlined_call_operand.vmem [shape: bf16[64,16], index: 9, kind: input, shape index: {}]   ;;  %s11467_s10 = inlined_call_operand.vmem [shape: bf16[256,64], index: 10, kind: input, shape index: {}]   ;;  %s11468_s11 = inlined_call_operand.vmem [shape: f32[2,256,64], index: 11, kind: output, shape index: {0}]   ;;  %s11469_s12 = inlined_call_operand.vmem [shape: f32[2,64,64], index: 12, kind: output, shape index: {1}]   ;;  %s11470_s13 = inlined_call_operand.vmem [shape: f32[2,64,64], index: 13, kind: output, shape index: {2}]  }
   0x1 LB: > { %s7054_s26 = sadd.s32 4294967295, %s8393_s25   ;;  %p7058_p0 = scmp.ge.s32.totalorder %s8393_s25, 1  ;;  %s8393_s25 = sphi %s8471_s25, %s24_s25  }
   0x2   : > { %p392_p1 = scmp.lt.s32.totalorder %s8393_s25, 3 }
   0x4   : > { %p393_p2 = pnand %p7058_p0, %p392_p1 }
   0x6   : > { %396 = sbr.rel (%p393_p2) target bundleno = 3897 (0xf39), region = 64 }
   0xd   : > { %p446_p3 = scmp.lt.s32.totalorder %s7054_s26, 1  ;;  %v666_v0 = vlaneseq  ;;  %vm8395_vm0 = vmmov 1   ;;  %s8396_s14 = smov 64   ;;  %v11503_v24 = vmov 0   ;;  %vm11489_vm5 = vsmask.f32 256 }
   0xe   : > { %vm8494_vm1 = vmpackc.low %vm8395_vm0, %vm8395_vm0  ;;  %vm11496_vm6 = vcmask 1040384   ;;  %vm11494_vm10 = vcmask 1046528   ;;  %s8399_s22 = smov 32  }
   0xf   : > { %s11991_s26 = smov (!%p446_p3, %s7054_s26), 1  ;;  %v8481_v1 = vshrl.u32 %v666_v0, 7  ;;  %v8533_v25 = vsel %vm8494_vm1, 65537, %v11503_v24  ;;  %vm8664_vm12 = vmand %vm11496_vm6, %vm11489_vm5 }
  0x10   : > { %s7712_s27 = sshll.u32 %s11991_s26, 8  ;;  %s7714_s28 = sshll.u32 %s11991_s26, 6 }
  0x11   : > { %s8489_s30 = scalar_lea.vmem %s11457_s0, %s7712_s27  ;;  %v8492_v2 = vadd.s32 8, %v8481_v1  ;;  %v8502_v7 = vadd.s32 24, %v8481_v1  ;;  %v8514_v15 = vadd.s32 40, %v8481_v1  ;;  %v703_v26 = vand.u32 15, %v8481_v1  ;;  %s10198_s15 = scalar_lea.vmem %s11469_s12, %s7714_s28 }
  0x12   : > { %v469_v4 = vld [vmem:[%s8489_s30] sm:$0xff]  ;;  %v470_v5 = vld [vmem:[%s8489_s30 + $0x8] sm:$0xff]  ;;  %v471_v6 = vld [vmem:[%s8489_s30 + $0x10] sm:$0xff]  ;;  %v8537_v27 = vadd.s32 16, %v8481_v1  ;;  %v8540_v28 = vadd.s32 56, %v8481_v1  ;;  %v8543_v29 = vadd.s32 32, %v8481_v1 }
  0x13   : > { %11555 = vst [vmem:[#allocation2_spill] sm:$0xff] %v8502_v7  ;;  %v8504_v8 = vpack.c.bf16 %v470_v5, %v469_v4  ;;  %v472_v9 = vld [vmem:[%s8489_s30 + $0x18] sm:$0xff]  ;;  %v473_v10 = vld [vmem:[%s8489_s30 + $0x20] sm:$0xff]  ;;  %v474_v11 = vld [vmem:[%s8489_s30 + $0x28] sm:$0xff]  ;;  %v710_v18 = vand.u32 15, %v8492_v2  ;;  %v724_v23 = vand.u32 15, %v8502_v7 }
  0x14   : > { %v8509_v12 = vpack.c.bf16 %v474_v11, %v473_v10  ;;  %v475_v13 = vld [vmem:[%s8489_s30 + $0x30] sm:$0xff]  ;;  %v476_v14 = vld [vmem:[%s8489_s30 + $0x38] sm:$0xff]  ;;  %11556 = vst [vmem:[#allocation3_spill] sm:$0xff] %v8514_v15  ;;  %v8518_v16 = vpack.c.bf16 %v472_v9, %v471_v6  ;;  %v477_v17 = vld [vmem:[%s8489_s30 + $0x40] sm:$0xff]  ;;  %v738_v35 = vand.u32 15, %v8514_v15  ;;  %v8560_v41 = vadd.s32 72, %v8481_v1 }
  0x15   : > { %1612 = vrot.lane.b32.xlu0 %v8504_v8, %s8396_s14  ;;  %v8524_v19 = vpack.c.bf16 %v476_v14, %v475_v13  ;;  %v478_v20 = vld [vmem:[%s8489_s30 + $0x48] sm:$0xff]  ;;  %v479_v21 = vld [vmem:[%s8489_s30 + $0x50] sm:$0xff]  ;;  %v480_v22 = vld [vmem:[%s8489_s30 + $0x58] sm:$0xff]  ;;  %11557 = vst [vmem:[#allocation4_spill] sm:$0xff] %v8537_v27  ;;  %vm8555_vm2 = vcmp.le.s32.totalorder %v710_v18, 14  ;;  %v519_v42 = vshrl.u32 %v8504_v8, 16 }
  0x16   : > { %1616 = vrot.lane.b32.xlu1 %v8509_v12, %s8396_s14  ;;  %11558 = vst [vmem:[#allocation5_spill] sm:$0xff] %v8540_v28  ;;  %11559 = vst [vmem:[#allocation6_spill] sm:$0xff] %v8543_v29  ;;  %v526_v30 = vshrl.u32 %v8518_v16, 16  ;;  %v534_v31 = vshrl.u32 %v8509_v12, 16  ;;  %v481_v33 = vld [vmem:[%s8489_s30 + $0x60] sm:$0xff]  ;;  %v482_v34 = vld [vmem:[%s8489_s30 + $0x68] sm:$0xff]  ;;  %v505_v36 = vpack.c.bf16 %v478_v20, %v477_v17  ;;  %v506_v37 = vpack.c.bf16 %v480_v22, %v479_v21 }
  0x17   : > { %v542_v32 = vshrl.u32 %v8524_v19, 16  ;;  %v483_v38 = vld [vmem:[%s8489_s30 + $0x70] sm:$0xff]  ;;  %v484_v39 = vld [vmem:[%s8489_s30 + $0x78] sm:$0xff]  ;;  %v522_v43 = vshll.u32 %v8504_v8, 16  ;;  %v529_v44 = vshll.u32 %v8518_v16, 16  ;;  %v537_v45 = vshll.u32 %v8509_v12, 16  ;;  %vm1420_vm8 = vmpackc.low %vm8555_vm2, %vm8555_vm2 }
  0x18   : > { %vm8568_vm3 = vcmp.le.s32.totalorder %v724_v23, 14  ;;  %v545_v47 = vshll.u32 %v8524_v19, 16  ;;  %v550_v48 = vshrl.u32 %v505_v36, 16  ;;  %v558_v49 = vshrl.u32 %v506_v37, 16  ;;  %v485_v51 = vld [vmem:[%s8489_s30 + $0x80] sm:$0xff]  ;;  %v486_v52 = vld [vmem:[%s8489_s30 + $0x88] sm:$0xff] }
  0x19   : > { %1614 = vrot.lane.b32.xlu0 %v8518_v16, %s8396_s14  ;;  %v507_v50 = vpack.c.bf16 %v482_v34, %v481_v33  ;;  %v8575_v53 = vrot.slane %v526_v30, 7  ;;  %v8577_v54 = vrot.slane %v534_v31, 7  ;;  %v8579_v55 = vrot.slane %v542_v32, 7  ;;  %v487_v57 = vld [vmem:[%s8489_s30 + $0x90] sm:$0xff]  ;;  %v488_v58 = vld [vmem:[%s8489_s30 + $0x98] sm:$0xff]  ;;  %v489_v59 = vld [vmem:[%s8489_s30 + $0xa0] sm:$0xff] }
  0x1a   : > { %1618 = vrot.lane.b32.xlu1 %v8524_v19, %s8396_s14  ;;  %v508_v56 = vpack.c.bf16 %v484_v39, %v483_v38  ;;  %vm8584_vm4 = vcmp.le.s32.totalorder %v738_v35, 14  ;;  %v490_v62 = vld [vmem:[%s8489_s30 + $0xa8] sm:$0xff]  ;;  %v553_v63 = vshll.u32 %v505_v36, 16  ;;  %v561_v0 = vshll.u32 %v506_v37, 16  ;;  %v491_v14 = vld [vmem:[%s8489_s30 + $0xb0] sm:$0xff]  ;;  %v492_v16 = vld [vmem:[%s8489_s30 + $0xb8] sm:$0xff] }
  0x1b   : > { %v566_v61 = vshrl.u32 %v507_v50, 16  ;;  %v509_v4 = vpack.c.bf16 %v486_v52, %v485_v51  ;;  %v8591_v5 = vrot.slane %v550_v48, 7  ;;  %v8593_v6 = vrot.slane %v558_v49, 7  ;;  %v493_v19 = vld [vmem:[%s8489_s30 + $0xc0] sm:$0xff]  ;;  %v494_v20 = vld [vmem:[%s8489_s30 + $0xc8] sm:$0xff]  ;;  %v495_v30 = vld [vmem:[%s8489_s30 + $0xd0] sm:$0xff] }
  0x1c   : > { %v574_v3 = vshrl.u32 %v508_v56, 16  ;;  %v569_v9 = vshll.u32 %v507_v50, 16  ;;  %v510_v10 = vpack.c.bf16 %v488_v58, %v487_v57  ;;  %v577_v11 = vshll.u32 %v508_v56, 16  ;;  %v496_v34 = vld [vmem:[%s8489_s30 + $0xd8] sm:$0xff]  ;;  %v497_v39 = vld [vmem:[%s8489_s30 + $0xe0] sm:$0xff]  ;;  %v498_v48 = vld [vmem:[%s8489_s30 + $0xe8] sm:$0xff] }
  0x1d   : > { %1620 = vrot.lane.b32.xlu0 %v505_v36, %s8396_s14  ;;  %v582_v12 = vshrl.u32 %v509_v4, 16  ;;  %v511_v13 = vpack.c.bf16 %v490_v62, %v489_v59  ;;  %v8597_v17 = vrot.slane %v566_v61, 7  ;;  %vm8602_vm7 = vcmp.ge.s32.totalorder %v703_v26, 1  ;;  %vm1422_vm9 = vmpackc.low %vm8568_vm3, %vm8568_vm3 }
  0x1e   : > { %1622 = vrot.lane.b32.xlu1 %v506_v37, %s8396_s14  ;;  %v590_v18 = vshrl.u32 %v510_v10, 16  ;;  %v8606_v22 = vrot.slane %v574_v3, 7  ;;  %v521_v31 = vrot.slane %v519_v42, 7  ;;  %v531_v32 = vor.u32 %v529_v44, %v8575_v53  ;;  %vm1424_vm11 = vmpackc.low %vm8584_vm4, %vm8584_vm4 }
  0x1f   : > { %v598_v23 = vshrl.u32 %v511_v13, 16  ;;  %v539_v33 = vor.u32 %v537_v45, %v8577_v54  ;;  %v8616_v26 = vor.u32 %v545_v47, %v8579_v55  ;;  %v8620_v35 = vor.u32 %v553_v63, %v8591_v5  ;;  %vm1179_vm13 = vmpackc.low %vm8602_vm7, %vm8602_vm7 }
  0x20   : > { %v8623_v36 = vor.u32 %v561_v0, %v8593_v6  ;;  %v8625_v37 = vrot.slane %v582_v12, 7  ;;  %v585_v38 = vshll.u32 %v509_v4, 16  ;;  %v8630_v42 = vor.u32 %v569_v9, %v8597_v17  ;;  %v500_v9 = vld [vmem:[%s8489_s30 + $0xf8] sm:$0xff] }
  0x21   : > { %1624 = vrot.lane.b32.xlu0 %v507_v50, %s8396_s14  ;;  %v8633_v44 = vrot.slane %v590_v18, 7  ;;  %v593_v45 = vshll.u32 %v510_v10, 16  ;;  %v8635_v47 = vpack.c.bf16 %v492_v16, %v491_v14  ;;  %v8641_v49 = vor.u32 %v577_v11, %v8606_v22 }
  0x22   : > { %1626 = vrot.lane.b32.xlu1 %v508_v56, %s8396_s14  ;;  %v8644_v50 = vrot.slane %v598_v23, 7  ;;  %v601_v51 = vshll.u32 %v511_v13, 16  ;;  %v8646_v52 = vpack.c.bf16 %v494_v20, %v493_v19  ;;  %v8650_v58 = vpack.c.bf16 %v496_v34, %v495_v30 }
  0x23   : > { %v606_v56 = vshrl.u32 %v8635_v47, 16  ;;  %v609_v57 = vshll.u32 %v8635_v47, 16  ;;  %v524_v59 = vor.u32 %v522_v43, %v521_v31  ;;  %v8658_v61 = vor.u32 %v585_v38, %v8625_v37 }
  0x24   : > { %v8660_v62 = vpack.c.bf16 %v498_v48, %v497_v39  ;;  %v1452_v8 = vsel %vm1420_vm8, 65537, %v11503_v24  ;;  %v1454_v43 = vsel %vm1422_vm9, 65537, %v11503_v24  ;;  %v8681_v0 = vor.u32 %v593_v45, %v8633_v44 }
  0x25   : > { %1628 = vrot.lane.b32.xlu0 %v509_v4, %s8396_s14  ;;  %v614_v3 = vshrl.u32 %v8646_v52, 16  ;;  %v499_v4 = vld [vmem:[%s8489_s30 + $0xf0] sm:$0xff]  ;;  %v7083_v40 = vcombine.low %v8533_v25, %v1452_v8  ;;  %v8690_v11 = vor.u32 %v601_v51, %v8644_v50  ;;  %v617_v46 = vshll.u32 %v8646_v52, 16  ;;  %s10700_s30 = scalar_lea.vmem %s11470_s13, %s7714_s28 }
  0x26   : > { %1630 = vrot.lane.b32.xlu1 %v510_v10, %s8396_s14  ;;  %v7084_v10 = vcombine.low %v8533_v25, %v1454_v43  ;;  %v8697_v12 = vsel %vm11489_vm5, %v8575_v53, %v539_v33  ;;  %v8707_v14 = vsel %vm8664_vm12, 0, %v524_v59  ;;  %v8712_v20 = vrot.slane %v606_v56, 7 }
  0x27   : > { %v8709_v16 = vrot.slane %v7083_v40, 7  ;;  %v622_v53 = vshrl.u32 %v8650_v58, 16  ;;  %v8716_v23 = vsel %vm11489_vm5, %v521_v31, %v531_v32  ;;  %v717_v60 = vand.u32 15, %v8537_v27 }
  0x28   : > { %v1532_v18 = vrot.slane %v7084_v10, 7  ;;  %v630_v30 = vshrl.u32 %v8660_v62, 16  ;;  %v8730_v31 = vrot.slane %v614_v3, 7  ;;  %v8734_v21 = vpack.c.bf16 %v500_v9, %v499_v4 }
  0x29   : > { %1632 = vrot.lane.b32.xlu0 %v511_v13, %s8396_s14  ;;  %v1456_v13 = vsel %vm1424_vm11, 65537, %v11503_v24  ;;  %11570 = vst [vmem:[#allocation7_spill] sm:$0xff] %v8709_v16  ;;  %vm11477_vm14 = vcmp.ne.s16.totalorder %v8709_v16, 0  ;;  %v1211_v48 = vsel %vm1179_vm13, 65537, %v11503_v24  ;;  %vm8748_vm1 = vcmp.ge.s32.totalorder %v717_v60, 1 }
  0x2a   : > { %1634 = vrot.lane.b32.xlu1 %v8635_v47, %s8396_s14  ;;  %v7085_v19 = vcombine.low %v8533_v25, %v1456_v13  ;;  %v8727_v33 = vsel %vm11496_vm6, %v8709_v16, %v1532_v18  ;;  %v1579_v32 = vsel %vm11477_vm14, %v8707_v14, 0  ;;  %v625_v56 = vshll.u32 %v8650_v58, 16  ;;  %vm1181_vm2 = vmpackc.low %vm8748_vm1, %vm8748_vm1 }
  0x2b   : > { %11571 = vst [vmem:[#allocation8_spill] sm:$0xff] %v8727_v33  ;;  %vm11488_vm15 = vcmp.ne.s16.totalorder %v8727_v33, 0  ;;  %v1662_v39 = vrot.slane %v1579_v32, 1  ;;  %v633_v59 = vshll.u32 %v8660_v62, 16  ;;  %v752_v43 = vand.u32 15, %v8540_v28 }
  0x2c   : > { %v1534_v34 = vrot.slane %v7085_v19, 7  ;;  %v1580_v38 = vsel %vm11488_vm15, %v8716_v23, 0  ;;  %v8768_v3 = vor.u32 %v609_v57, %v8712_v20  ;;  %v11471_v57 = vand.u32 7, %v8540_v28 }
  0x2d   : > { %1636 = vrot.lane.b32.xlu0 %v8646_v52, %s8396_s14  ;;  %v1663_v47 = vrot.slane %v1580_v38, 1  ;;  %v8755_v52 = vsel %vm11489_vm5, %v8577_v54, %v8616_v26  ;;  %v7067_v26 = vcombine.low %v1211_v48, %v8533_v25  ;;  %vm1330_vm3 = vcmp.le.s32.totalorder %v752_v43, 14 }
  0x2e   : > { %1638 = vrot.lane.b32.xlu1 %v8650_v58, %s8396_s14  ;;  %v8745_v45 = vsel %vm11496_vm6, %v1532_v18, %v1534_v34  ;;  %v731_v4 = vand.u32 15, %v8543_v29  ;;  %v8787_v9 = vor.u32 %v617_v46, %v8730_v31  ;;  %v8789_v40 = vrot.slane %v630_v30, 7  ;;  %vm1426_vm4 = vmpackc.low %vm1330_vm3, %vm1330_vm3 }
  0x2f   : > { %11572 = vst [vmem:[#allocation9_spill] sm:$0xff] %v8745_v45  ;;  %vm11475_vm0 = vcmp.ne.s16.totalorder %v8745_v45, 0  ;;  %v8773_v54 = vsel %vm11494_vm10, %v1662_v39, %v1663_v47  ;;  %v638_v10 = vshrl.u32 %v8734_v21, 16  ;;  %v1458_v19 = vsel %vm1426_vm4, 65537, %v11503_v24 }
  0x30   : > { %v8764_v8 = vsel %vm11475_vm0, %v8697_v12, 0  ;;  %1824 = vmatprep.subr.bf16.mxu0 %v8773_v54  ;;  %1978 = vmatprep.subr.bf16.mxu1 %v8773_v54  ;;  %vm8797_vm7 = vcmp.ge.s32.totalorder %v731_v4, 1  ;;  %v8804_v46 = vsel %vm11489_vm5, %v8579_v55, %v8620_v35  ;;  %vm8806_vm8 = vcmp.ne.s16.totalorder %v7067_v26, 0 }
  0x31   : > { %1640 = vrot.lane.b32.xlu0 %v8660_v62, %s8396_s14  ;;  %v1665_v58 = vrot.slane %v8764_v8, 1  ;;  %v8777_v62 = vrot.slane %v622_v53, 7  ;;  %v7086_v30 = vcombine.low %v8533_v25, %v1458_v19  ;;  %v766_v32 = vand.u32 15, %v8560_v41  ;;  %vm1183_vm9 = vmpackc.low %vm8797_vm7, %vm8797_vm7 }
  0x32   : > { %1642 = vrot.lane.b32.xlu1 %v8734_v21, %s8396_s14  ;;  %v8813_v38 = vadd.s32 48, %v8481_v1  ;;  %v1213_v39 = vsel %vm1181_vm2, 65537, %v11503_v24  ;;  %vm8826_vm11 = vcmp.le.s32.totalorder %v11471_v57, 6  ;;  %v8833_v41 = vsel %vm11489_vm5, %v8591_v5, %v8623_v36 }
  0x33   : > { %v8793_v13 = vsel %vm11494_vm10, %v1663_v47, %v1665_v58  ;;  %v678_v35 = vadd.s32 88, %v8481_v1  ;;  %v8837_v48 = vor.u32 %v625_v56, %v8777_v62  ;;  %v8840_v47 = vor.u32 %v633_v59, %v8789_v40  ;;  %vm2947_vm1 = vmpackc.low %vm8826_vm11, %vm8826_vm11 }
  0x34   : > { %11579 = vst [vmem:[#allocation10_spill] sm:$0xff] %v8813_v38  ;;  %v1536_v51 = vrot.slane %v7086_v30, 7  ;;  %vm1332_vm13 = vcmp.le.s32.totalorder %v766_v32, 14  ;;  %v8845_v8 = vrot.slane %v638_v10, 7  ;;  %v745_v36 = vand.u32 15, %v8813_v38 }
  0x35   : > { %vm1428_vm2 = vmpackc.low %vm1332_vm13, %vm1332_vm13  ;;  %v11472_v56 = vand.u32 7, %v8813_v38  ;;  %v7068_v59 = vcombine.low %v1213_v39, %v8533_v25  ;;  %v780_v4 = vand.u32 15, %v678_v35  ;;  %v1215_v10 = vsel %vm1183_vm9, 65537, %v11503_v24 }
  0x36   : > { %v8854_v43 = vsel %vm11496_vm6, %v1534_v34, %v1536_v51  ;;  %v1460_v26 = vsel %vm1428_vm2, 65537, %v11503_v24  ;;  %v8866_v30 = vsel %vm2947_vm1, 65537, %v11503_v24  ;;  %vm1089_vm4 = vcmp.ge.s32.totalorder %v745_v36, 1 }
  0x37   : > { %11582 = vst [vmem:[#allocation11_spill] sm:$0xff] %v8854_v43  ;;  %vm11476_vm3 = vcmp.ne.s16.totalorder %v8854_v43, 0  ;;  %v7087_v19 = vcombine.low %v8533_v25, %v1460_v26  ;;  %11583 = vst [vmem:[#allocation12_spill] sm:$0xff] %v8866_v30  ;;  %vm8873_vm11 = vcmp.le.s32.totalorder %v11472_v56, 6  ;;  %vm8877_vm13 = vcmp.le.s32.totalorder %v780_v4, 14 }
  0x38   : > { %v1582_v34 = vsel %vm11476_vm3, %v8755_v52, 0  ;;  %vm1185_vm7 = vmpackc.low %vm1089_vm4, %vm1089_vm4  ;;  %v675_v35 = vadd.s32 64, %v8481_v1  ;;  %v8885_v26 = vsel %vm11489_vm5, %v8593_v6, %v8630_v42  ;;  %v680_v4 = vadd.s32 104, %v8481_v1 }
  0x39   : > { %v1667_v39 = vrot.slane %v1582_v34, 1  ;;  %v1538_v55 = vrot.slane %v7087_v19, 7  ;;  %v1217_v36 = vsel %vm1185_vm7, 65537, %v11503_v24  ;;  %vm2946_vm9 = vmpackc.low %vm8873_vm11, %vm8873_vm11  ;;  %v677_v57 = vadd.s32 80, %v8481_v1 }
  0x3a   : > { %v8896_v19 = vsel %vm11489_vm5, %v8597_v17, %v8641_v49  ;;  %v7069_v6 = vcombine.low %v1215_v10, %v8533_v25  ;;  %v8906_v32 = vsel %vm2946_vm9, 65537, %v11503_v24  ;;  %vm1430_vm1 = vmpackc.low %vm8877_vm13, %vm8877_vm13  ;;  %v7070_v10 = vcombine.low %v1217_v36, %v8533_v25 }
  0x3b   : > { %v8899_v34 = vsel %vm11494_vm10, %v1665_v58, %v1667_v39  ;;  %v8903_v42 = vsel %vm11496_vm6, %v1536_v51, %v1538_v55  ;;  %11589 = vst [vmem:[#allocation14_spill] sm:$0xff] %v8906_v32  ;;  %v1462_v49 = vsel %vm1430_vm1, 65537, %v11503_v24  ;;  %v759_v58 = vand.u32 15, %v675_v35 }
  0x3c   : > { %11588 = vst [vmem:[#allocation13_spill] sm:$0xff] %v8903_v42  ;;  %vm11474_vm2 = vcmp.ne.s16.totalorder %v8903_v42, 0  ;;  %v7088_v56 = vcombine.low %v8533_v25, %v1462_v49  ;;  %v794_v5 = vand.u32 15, %v680_v4  ;;  %vm8920_vm4 = vcmp.ne.s16.totalorder %v7068_v59, 0 }
  0x3d   : > { %v1583_v51 = vsel %vm11474_vm2, %v8804_v46, 0  ;;  %vm8924_vm11 = vcmp.ge.s32.totalorder %v759_v58, 1  ;;  %v773_v17 = vand.u32 15, %v677_v57  ;;  %v682_v36 = vadd.s32 120, %v8481_v1 }
  0x3e   : > { %v1669_v18 = vrot.slane %v1583_v51, 1  ;;  %v1540_v35 = vrot.slane %v7088_v56, 7  ;;  %vm1187_vm13 = vmpackc.low %vm8924_vm11, %vm8924_vm11  ;;  %vm1336_vm7 = vcmp.le.s32.totalorder %v794_v5, 14  ;;  %v679_v4 = vadd.s32 96, %v8481_v1 }
  0x3f   : > { %vm8933_vm9 = vcmp.ne.s16.totalorder %v7069_v6, 0  ;;  %vm1432_vm1 = vmpackc.low %vm1336_vm7, %vm1336_vm7  ;;  %vm8940_vm2 = vcmp.ge.s32.totalorder %v773_v17, 1  ;;  %v8947_v45 = vsel %vm11489_vm5, %v8606_v22, %v8658_v61  ;;  %vm8949_vm11 = vcmp.ne.s16.totalorder %v7070_v10, 0  ;;  %v8150_v17 = vld [vmem:[%s11464_s7 + $0x44] ss:$8 sps:$4 sm:$0xff]  }
  0x40   : > { %v8938_v49 = vsel %vm11494_vm10, %v1667_v39, %v1669_v18  ;;  %v8954_v56 = vsel %vm11496_vm6, %v1538_v55, %v1540_v35  ;;  %v1464_v39 = vsel %vm1432_vm1, 65537, %v11503_v24  ;;  %v808_v6 = vand.u32 15, %v682_v36  ;;  %vm1189_vm1 = vmpackc.low %vm8940_vm2, %vm8940_vm2  ;;  %2010 = vmatprep.mubr.bf16.mxu1 %v8150_v17 }
  0x41   : > { %11600 = vst [vmem:[#allocation15_spill] sm:$0xff] %v8954_v56  ;;  %vm11487_vm7 = vcmp.ne.s16.totalorder %v8954_v56, 0  ;;  %v1219_v58 = vsel %vm1187_vm13, 65537, %v11503_v24  ;;  %v7089_v22 = vcombine.low %v8533_v25, %v1464_v39  ;;  %v787_v61 = vand.u32 15, %v679_v4 }
  0x42   : > { %v1584_v10 = vsel %vm11487_vm7, %v8833_v41, 0  ;;  %vm1338_vm13 = vcmp.le.s32.totalorder %v808_v6, 14  ;;  %v7071_v55 = vcombine.low %v1219_v58, %v8533_v25  ;;  %v684_v42 = vadd.s32 136, %v8481_v1 }
  0x43   : > { %v1671_v4 = vrot.slane %v1584_v10, 1  ;;  %v1542_v39 = vrot.slane %v7089_v22, 7  ;;  %vm1434_vm0 = vmpackc.low %vm1338_vm13, %vm1338_vm13  ;;  %vm1095_vm3 = vcmp.ge.s32.totalorder %v787_v61, 1  ;;  %v681_v57 = vadd.s32 112, %v8481_v1 }
  0x44   : > { %v1466_v51 = vsel %vm1434_vm0, 65537, %v11503_v24  ;;  %vm1191_vm14 = vmpackc.low %vm1095_vm3, %vm1095_vm3  ;;  %v1221_v10 = vsel %vm1189_vm1, 65537, %v11503_v24  ;;  %v822_v61 = vand.u32 15, %v684_v42  ;;  %v11602_v56 = vshll.u32 %v8734_v21, 16 }
  0x45   : > { %v8983_v6 = vsel %vm11494_vm10, %v1669_v18, %v1671_v4  ;;  %v8986_v17 = vsel %vm11496_vm6, %v1540_v35, %v1542_v39  ;;  %v7090_v22 = vcombine.low %v8533_v25, %v1466_v51  ;;  %v1223_v58 = vsel %vm1191_vm14, 65537, %v11503_v24 }
  0x46   : > { %11601 = vst [vmem:[#allocation16_spill] sm:$0xff] %v8986_v17  ;;  %vm11485_vm2 = vcmp.ne.s16.totalorder %v8986_v17, 0  ;;  %v801_v36 = vand.u32 15, %v681_v57  ;;  %v8995_v43 = vor.u32 %v11602_v56, %v8845_v8  ;;  %v9003_v51 = vsel %vm11489_vm5, %v8625_v37, %v8681_v0 }
  0x47   : > { %v1585_v18 = vsel %vm11485_vm2, %v8885_v26, 0  ;;  %v1544_v35 = vrot.slane %v7090_v22, 7  ;;  %vm1340_vm0 = vcmp.le.s32.totalorder %v822_v61, 14  ;;  %v686_v21 = vadd.s32 152, %v8481_v1 }
  0x48   : > { %v1673_v16 = vrot.slane %v1585_v18, 1  ;;  %vm9005_vm14 = vcmp.ge.s32.totalorder %v801_v36, 1  ;;  %vm9010_vm3 = vcmp.ne.s16.totalorder %v7071_v55, 0  ;;  %v11605_v56 = vmov 0  ;;  %vm1436_vm1 = vmpackc.low %vm1340_vm0, %vm1340_vm0 }
  0x49   : > { %v11606_v56 = vsel %vm9010_vm3, 4294967295, %v11605_v56  ;;  %v9015_v57 = vsel %vm11496_vm6, %v1542_v39, %v1544_v35  ;;  %v683_v22 = vadd.s32 128, %v8481_v1  ;;  %v9021_v37 = vsel %vm11489_vm5, %v8633_v44, %v8690_v11  ;;  %vm1193_vm0 = vmpackc.low %vm9005_vm14, %vm9005_vm14 }
  0x4a   : > { %11607 = vst [vmem:[#allocation17_spill] sm:$0xff] %v9015_v57  ;;  %v9024_v0 = vsel %vm11494_vm10, %v1671_v4, %v1673_v16  ;;  %v7072_v36 = vcombine.low %v1221_v10, %v8533_v25  ;;  %vm11486_vm13 = vcmp.ne.s16.totalorder %v9015_v57, 0  ;;  %v1468_v55 = vsel %vm1436_vm1, 65537, %v11503_v24 }
  0x4b   : > { %v1586_v39 = vsel %vm11486_vm13, %v8896_v19, 0  ;;  %v7073_v44 = vcombine.low %v1223_v58, %v8533_v25  ;;  %v7091_v11 = vcombine.low %v8533_v25, %v1468_v55  ;;  %v836_v4 = vand.u32 15, %v686_v21 }
  0x4c   : > { %v1675_v61 = vrot.slane %v1586_v39, 1  ;;  %v1225_v10 = vsel %vm1193_vm0, 65537, %v11503_v24  ;;  %v815_v18 = vand.u32 15, %v683_v22  ;;  %v688_v17 = vadd.s32 168, %v8481_v1 }
  0x4d   : > { %v1546_v33 = vrot.slane %v7091_v11, 7  ;;  %vm1342_vm1 = vcmp.le.s32.totalorder %v836_v4, 14  ;;  %v685_v42 = vadd.s32 144, %v8481_v1  ;;  %v9043_v57 = vsel %vm11489_vm5, %v8644_v50, %v8768_v3 }
  0x4e   : > { %vm9045_vm14 = vcmp.ne.s16.totalorder %v7072_v36, 0  ;;  %v11608_v58 = vmov 0  ;;  %v9050_v21 = vsel %vm11494_vm10, %v1673_v16, %v1675_v61  ;;  %vm1438_vm0 = vmpackc.low %vm1342_vm1, %vm1342_vm1  ;;  %vm9052_vm2 = vcmp.ge.s32.totalorder %v815_v18, 1 }
  0x4f   : > { %v11609_v58 = vsel %vm9045_vm14, 4294967295, %v11608_v58  ;;  %v850_v55 = vand.u32 15, %v688_v17  ;;  %vm9056_vm13 = vcmp.ne.s16.totalorder %v7073_v44, 0  ;;  %v11612_v39 = vmov 0  ;;  %vm1195_vm1 = vmpackc.low %vm9052_vm2, %vm9052_vm2 }
  0x50   : > { %v11613_v39 = vsel %vm9056_vm13, 4294967295, %v11612_v39  ;;  %v9061_v50 = vsel %vm11496_vm6, %v1544_v35, %v1546_v33  ;;  %v7074_v3 = vcombine.low %v1225_v10, %v8533_v25  ;;  %v1470_v36 = vsel %vm1438_vm0, 65537, %v11503_v24 }
  0x51   : > { %11614 = vst [vmem:[#allocation18_spill] sm:$0xff] %v9061_v50  ;;  %vm11493_vm7 = vcmp.ne.s16.totalorder %v9061_v50, 0  ;;  %v7092_v16 = vcombine.low %v8533_v25, %v1470_v36  ;;  %vm1344_vm15 = vcmp.le.s32.totalorder %v850_v55, 14  ;;  %v829_v17 = vand.u32 15, %v685_v42 }
  0x52   : > { %v1587_v11 = vsel %vm11493_vm7, %v8947_v45, 0  ;;  %vm1440_vm0 = vmpackc.low %vm1344_vm15, %vm1344_vm15  ;;  %v690_v4 = vadd.s32 184, %v8481_v1  ;;  %v687_v42 = vadd.s32 160, %v8481_v1  ;;  %vm9085_vm5 = vcmp.ne.s16.totalorder %v7074_v3, 0 }
  0x53   : > { %v1677_v10 = vrot.slane %v1587_v11, 1  ;;  %v1548_v18 = vrot.slane %v7092_v16, 7  ;;  %v1472_v55 = vsel %vm1440_vm0, 65537, %v11503_v24  ;;  %v11615_v44 = vmov 0 }
  0x54   : > { %v11616_v44 = vsel %vm9085_vm5, 4294967295, %v11615_v44  ;;  %v7093_v35 = vcombine.low %v8533_v25, %v1472_v55  ;;  %v864_v50 = vand.u32 15, %v690_v4  ;;  %v1227_v11 = vsel %vm1195_vm1, 65537, %v11503_v24 }
  0x55   : > { %v9091_v27 = vsel %vm11494_vm10, %v1675_v61, %v1677_v10  ;;  %v9094_v16 = vsel %vm11496_vm6, %v1546_v33, %v1548_v18  ;;  %vm9102_vm15 = vcmp.ge.s32.totalorder %v829_v17, 1  ;;  %v843_v61 = vand.u32 15, %v687_v42 }
  0x56   : > { %11617 = vst [vmem:[#allocation19_spill] sm:$0xff] %v9094_v16  ;;  %vm11495_vm0 = vcmp.ne.s16.totalorder %v9094_v16, 0  ;;  %v1550_v4 = vrot.slane %v7093_v35, 7  ;;  %vm1346_vm7 = vcmp.le.s32.totalorder %v864_v50, 14  ;;  %vm11620_vm2 = vsmask.f32 256  ;;  %vm1197_vm1 = vmpackc.low %vm9102_vm15, %vm9102_vm15 }
  0x57   : > { %v1588_v55 = vsel %vm11495_vm0, %v9003_v51, 0  ;;  %vm1442_vm10 = vmpackc.low %vm1346_vm7, %vm1346_vm7  ;;  %v9116_v22 = vsel %vm11620_vm2, %v8712_v20, %v8787_v9  ;;  %v692_v17 = vadd.s32 200, %v8481_v1  ;;  %v7075_v50 = vcombine.low %v1227_v11, %v8533_v25 }
  0x58   : > { %v1679_v36 = vrot.slane %v1588_v55, 1  ;;  %v9121_v35 = vsel %vm11496_vm6, %v1548_v18, %v1550_v4  ;;  %v1474_v42 = vsel %vm1442_vm10, 65537, %v11503_v24  ;;  %vm1103_vm2 = vcmp.ge.s32.totalorder %v843_v61, 1 }
  0x59   : > { %11621 = vst [vmem:[#allocation20_spill] sm:$0xff] %v9121_v35  ;;  %vm11501_vm7 = vcmp.ne.s16.totalorder %v9121_v35, 0  ;;  %v7094_v33 = vcombine.low %v8533_v25, %v1474_v42  ;;  %v878_v20 = vand.u32 15, %v692_v17  ;;  %vm11622_vm0 = vcmask 1046528   ;;  %vm1199_vm6 = vmpackc.low %vm1103_vm2, %vm1103_vm2 }
  0x5a   : > { %v9130_v9 = vsel %vm11622_vm0, %v1677_v10, %v1679_v36  ;;  %v1589_v18 = vsel %vm11501_vm7, %v9021_v37, 0  ;;  %v689_v11 = vadd.s32 176, %v8481_v1  ;;  %vm11623_vm15 = vsmask.f32 256 }
  0x5b   : > { %v9139_v3 = vsel %vm11623_vm15, %v8730_v31, %v8837_v48  ;;  %v1681_v55 = vrot.slane %v1589_v18, 1  ;;  %v1229_v42 = vsel %vm1197_vm1, 65537, %v11503_v24  ;;  %v1552_v61 = vrot.slane %v7094_v33, 7  ;;  %vm11627_vm1 = vmmov %vm11623_vm15 }
  0x5c   : > { %vm1348_vm10 = vcmp.le.s32.totalorder %v878_v20, 14  ;;  %v1231_v10 = vsel %vm1199_vm6, 65537, %v11503_v24  ;;  %v857_v17 = vand.u32 15, %v689_v11  ;;  %v694_v35 = vadd.s32 216, %v8481_v1 }
  0x5d   : > { %vm1444_vm0 = vmpackc.low %vm1348_vm10, %vm1348_vm10  ;;  %v691_v16 = vadd.s32 192, %v8481_v1  ;;  %vm11624_vm2 = vcmask 1046528   ;;  %vm11625_vm7 = vcmask 1040384   ;;  %v9155_v48 = vsel %vm11627_vm1, %v8777_v62, %v8840_v47 }
  0x5e   : > { %v9146_v7 = vsel %vm11624_vm2, %v1679_v36, %v1681_v55  ;;  %v9149_v28 = vsel %vm11625_vm7, %v1550_v4, %v1552_v61  ;;  %v1476_v31 = vsel %vm1444_vm0, 65537, %v11503_v24  ;;  %vm9157_vm6 = vcmp.ne.s16.totalorder %v7075_v50, 0 }
  0x5f   : > { %11626 = vst [vmem:[#allocation21_spill] sm:$0xff] %v9149_v28  ;;  %v11628_v33 = vmov 0  ;;  %vm11505_vm15 = vcmp.ne.s16.totalorder %v9149_v28, 0  ;;  %v7095_v20 = vcombine.low %v8533_v25, %v1476_v31  ;;  %vm9163_vm10 = vcmp.ge.s32.totalorder %v857_v17, 1 }
  0x60   : > { %v11629_v33 = vsel %vm9157_vm6, 4294967295, %v11628_v33  ;;  %v7076_v4 = vcombine.low %v1229_v42, %v8533_v25  ;;  %v1590_v18 = vsel %vm11505_vm15, %v9043_v57, 0  ;;  %v892_v62 = vand.u32 15, %v694_v35  ;;  %vm1201_vm7 = vmpackc.low %vm9163_vm10, %vm9163_vm10 }
  0x61   : > { %v871_v47 = vand.u32 15, %v691_v16  ;;  %v1683_v50 = vrot.slane %v1590_v18, 1  ;;  %v7077_v11 = vcombine.low %v1231_v10, %v8533_v25  ;;  %v1554_v24 = vrot.slane %v7095_v20, 7 }
  0x62   : > { %v696_v17 = vadd.s32 232, %v8481_v1  ;;  %vm1350_vm0 = vcmp.le.s32.totalorder %v892_v62, 14  ;;  %v693_v16 = vadd.s32 208, %v8481_v1  ;;  %vm11634_vm1 = vcmask 1046528  }
  0x63   : > { %vm9179_vm2 = vcmp.ge.s32.totalorder %v871_v47, 1  ;;  %v9185_v35 = vsel %vm11634_vm1, %v1681_v55, %v1683_v50  ;;  %vm11635_vm15 = vcmask 1040384   ;;  %vm1446_vm10 = vmpackc.low %vm1350_vm0, %vm1350_vm0  ;;  %vm11637_vm5 = vsmask.f32 256 }
  0x64   : > { %v9188_v10 = vsel %vm11635_vm15, %v1552_v61, %v1554_v24  ;;  %v906_v20 = vand.u32 15, %v696_v17  ;;  %v9193_v36 = vsel %vm11637_vm5, %v8789_v40, %v8995_v43  ;;  %v11638_v18 = vmov 0   ;;  %vm1203_vm1 = vmpackc.low %vm9179_vm2, %vm9179_vm2 }
  0x65   : > { %11636 = vst [vmem:[#allocation22_spill] sm:$0xff] %v9188_v10  ;;  %vm11519_vm6 = vcmp.ne.s16.totalorder %v9188_v10, 0  ;;  %v1233_v62 = vsel %vm1201_vm7, 65537, %v11638_v18  ;;  %v1478_v47 = vsel %vm1446_vm10, 65537, %v11638_v18  ;;  %v885_v55 = vand.u32 15, %v693_v16 }
  0x66   : > { %vm9201_vm15 = vcmp.ne.s16.totalorder %v7076_v4, 0  ;;  %v11639_v61 = vmov 0  ;;  %vm9205_vm0 = vcmp.ne.s16.totalorder %v7077_v11, 0  ;;  %v11641_v17 = vmov 0 }
  0x67   : > { %v11640_v61 = vsel %vm9201_vm15, 4294967295, %v11639_v61  ;;  %v11642_v17 = vsel %vm9205_vm0, 4294967295, %v11641_v17  ;;  %v1591_v40 = vsel %vm11519_vm6, %v9116_v22, 0  ;;  %v7096_v43 = vcombine.low %v8533_v25, %v1478_v47 }
  0x68   : > { %v1685_v42 = vrot.slane %v1591_v40, 1  ;;  %v1235_v31 = vsel %vm1203_vm1, 65537, %v11638_v18  ;;  %vm1352_vm5 = vcmp.le.s32.totalorder %v906_v20, 14  ;;  %vm9214_vm7 = vcmp.ge.s32.totalorder %v885_v55, 1 }
  0x69   : > { %v7078_v4 = vcombine.low %v1233_v62, %v8533_v25  ;;  %v1556_v11 = vrot.slane %v7096_v43, 7  ;;  %vm1448_vm2 = vmpackc.low %vm1352_vm5, %vm1352_vm5  ;;  %v698_v28 = vadd.s32 248, %v8481_v1  ;;  %v695_v38 = vadd.s32 224, %v8481_v1 }
  0x6a   : > { %vm11645_vm10 = vcmask 1046528   ;;  %v1480_v20 = vsel %vm1448_vm2, 65537, %v11638_v18  ;;  %vm1205_vm1 = vmpackc.low %vm9214_vm7, %vm9214_vm7  ;;  %v697_v62 = vadd.s32 240, %v8481_v1  ;;  %vm11646_vm5 = vcmask 1040384  }
  0x6b   : > { %v9225_v40 = vsel %vm11645_vm10, %v1683_v50, %v1685_v42  ;;  %v9236_v43 = vsel %vm11646_vm5, %v1554_v24, %v1556_v11  ;;  %v7079_v47 = vcombine.low %v1235_v31, %v8533_v25  ;;  %v7097_v50 = vcombine.low %v8533_v25, %v1480_v20 }
  0x6c   : > { %vm11522_vm10 = vcmp.ne.s16.totalorder %v9236_v43, 0  ;;  %v1237_v10 = vsel %vm1205_vm1, 65537, %v11638_v18  ;;  %v920_v16 = vand.u32 15, %v698_v28  ;;  %v899_v30 = vand.u32 15, %v695_v38 }
  0x6d   : > { %vm9242_vm7 = vcmp.ne.s16.totalorder %v7078_v4, 0  ;;  %v11647_v32 = vmov 0  ;;  %v1592_v55 = vsel %vm11522_vm10, %v9139_v3, 0  ;;  %v1558_v24 = vrot.slane %v7097_v50, 7 }
  0x6e   : > { %v11648_v32 = vsel %vm9242_vm7, 4294967295, %v11647_v32  ;;  %v913_v29 = vand.u32 15, %v697_v62  ;;  %v1687_v15 = vrot.slane %v1592_v55, 1  ;;  %vm1354_vm2 = vcmp.le.s32.totalorder %v920_v16, 14 }
  0x6f   : > { %vm1111_vm5 = vcmp.ge.s32.totalorder %v899_v30, 1  ;;  %v665_v31 = vsel %vm8664_vm12, %v8845_v8, 0  ;;  %vm9252_vm1 = vcmp.ne.s16.totalorder %v7079_v47, 0  ;;  %v11649_v28 = vmov 0  ;;  %vm1450_vm0 = vmpackc.low %vm1354_vm2, %vm1354_vm2 }
  0x70   : > { %v11650_v28 = vsel %vm9252_vm1, 4294967295, %v11649_v28  ;;  %vm11651_vm6 = vcmask 1040384   ;;  %v7080_v4 = vcombine.low %v1237_v10, %v8533_v25  ;;  %vm1113_vm10 = vcmp.ge.s32.totalorder %v913_v29, 1  ;;  %vm1207_vm14 = vmpackc.low %vm1111_vm5, %vm1111_vm5 }
  0x71   : > { %v9257_v38 = vsel %vm11651_vm6, %v1556_v11, %v1558_v24  ;;  %vm11653_vm15 = vcmask 1046528   ;;  %v1482_v30 = vsel %vm1450_vm0, 65537, %v11638_v18  ;;  %v1239_v11 = vsel %vm1207_vm14, 65537, %v11638_v18  ;;  %vm1209_vm6 = vmpackc.low %vm1113_vm10, %vm1113_vm10 }
  0x72   : > { %11652 = vst [vmem:[#allocation23_spill] sm:$0xff] %v9257_v38  ;;  %v9261_v20 = vsel %vm11653_vm15, %v1685_v42, %v1687_v15  ;;  %vm11529_vm13 = vcmp.ne.s16.totalorder %v9257_v38, 0  ;;  %v7098_v47 = vcombine.low %v8533_v25, %v1482_v30  ;;  %v7081_v29 = vcombine.low %v1239_v11, %v8533_v25 }
  0x73   : > { %v1593_v8 = vsel %vm11529_vm13, %v9155_v48, 0  ;;  %v1241_v42 = vsel %vm1209_vm6, 65537, %v11638_v18  ;;  %vm9272_vm15 = vcmp.ne.s16.totalorder %v7080_v4, 0  ;;  %v11654_v62 = vmov 0 }
  0x74   : > { %v1689_v10 = vrot.slane %v1593_v8, 1  ;;  %v11655_v62 = vsel %vm9272_vm15, 4294967295, %v11654_v62  ;;  %v9276_v55 = vrot.slane %v7098_v47, 7  ;;  %v7082_v50 = vcombine.low %v1241_v42, %v8533_v25 }
  0x75   : > { %vm11656_vm0 = vcmask 1046528   ;;  %vm9285_vm14 = vcmp.ne.s16.totalorder %v7081_v29, 0  ;;  %v11657_v8 = vmov 0  ;;  %vm11660_vm10 = vcmask 1040384  }
  0x76   : > { %v9283_v30 = vsel %vm11656_vm0, %v1687_v15, %v1689_v10  ;;  %v11658_v8 = vsel %vm9285_vm14, 4294967295, %v11657_v8  ;;  %v9294_v47 = vsel %vm11660_vm10, %v1558_v24, %v9276_v55  ;;  %vm11532_vm2 = vcmp.ne.s16.totalorder %v9276_v55, 0  ;;  %vm11664_vm10 = vmmov %vm11656_vm0 }
  0x77   : > { %11659 = vst [vmem:[#allocation24_spill] sm:$0xff] %v11658_v8  ;;  %vm9297_vm5 = vcmp.ne.s16.totalorder %v7082_v50, 0  ;;  %v11661_v25 = vmov 0  ;;  %vm11531_vm6 = vcmp.ne.s16.totalorder %v9294_v47, 0  ;;  %v1595_v24 = vsel %vm11532_vm2, %v665_v31, 0 }
  0x78   : > { %v11662_v25 = vsel %vm9297_vm5, 4294967295, %v11661_v25  ;;  %v1594_v29 = vsel %vm11531_vm6, %v9193_v36, 0  ;;  %v1693_v42 = vrot.slane %v1595_v24, 1  ;;  %v1322_v4 = vsel %vm9297_vm5, %v9193_v36, 0  ;;  %v8161_v36 = vld [vmem:[%s11458_s1 + $0x68] sm:$0xff]  }
  0x79   : > { %11663 = vst [vmem:[#allocation25_spill] sm:$0xff] %v11662_v25  ;;  %v1691_v50 = vrot.slane %v1594_v29, 1  ;;  %vm11539_vm13 = vcmask 523264   ;;  %v11665_v31 = vsel %vm8806_vm8, %v8707_v14, 0  ;;  %v11666_v29 = vsel %vm8920_vm4, %v8716_v23, 0 }
  0x7a   : > { %v11667_v14 = vsel %vm8933_vm9, %v8697_v12, 0  ;;  %v11668_v23 = vsel %vm8949_vm11, %v8755_v52, 0  ;;  %vm11674_vm6 = vnez %v11616_v44  ;;  %vm11676_vm2 = vnez %v11629_v33 }
  0x7b   : > { %v9317_v15 = vsel %vm11656_vm0, %v1689_v10, %v1691_v50  ;;  %v9320_v16 = vsel %vm11664_vm10, %v1691_v50, %v1693_v42  ;;  %vm11670_vm0 = vnez %v11609_v58  ;;  %vm11672_vm10 = vnez %v11613_v39 }
  0x87   : > { %v1613_v11 = vpop.permute.xlu0 %1612 }
  0x88   : > { %v9327_v38 = vsel %vm11539_vm13, %v11665_v31, %v1613_v11  ;;  %v1617_v24 = vpop.permute.xlu1 %1616 }
  0x89   : > { %1825 = vmatpush1.bf16.msra.mxu0 %v9327_v38  ;;  %1979 = vmatpush1.bf16.msra.mxu1 %v9327_v38  ;;  %v9349_v11 = vsel %vm11539_vm13, %v11667_v14, %v1617_v24  ;;  %v11669_v24 = vsel %vm9010_vm3, %v8804_v46, 0  ;;  %vm4436_vm3 = vcmask 1045504  }
  0x8a   : > { %1826 = vmatprep.subr.bf16.mxu0 %v8793_v13  ;;  %1980 = vmatprep.subr.bf16.mxu1 %v8793_v13 }
  0x8b   : > { %v1615_v10 = vpop.permute.xlu0 %1614 }
  0x8c   : > { %v9338_v42 = vsel %vm11539_vm13, %v11666_v29, %v1615_v10  ;;  %v1619_v50 = vpop.permute.xlu1 %1618  ;;  %v11671_v29 = vsel %vm11670_vm0, %v8833_v41, 0 }
  0x8d   : > { %1827 = vmatpush1.bf16.msra.mxu0 %v9338_v42  ;;  %1981 = vmatpush1.bf16.msra.mxu1 %v9338_v42  ;;  %v9360_v31 = vsel %vm11539_vm13, %v11668_v23, %v1619_v50  ;;  %v11673_v50 = vsel %vm11672_vm10, %v8885_v26, 0 }
  0x8e   : > { %1828 = vmatprep.subr.bf16.mxu0 %v8899_v34  ;;  %1982 = vmatprep.subr.bf16.mxu1 %v8899_v34 }
  0x8f   : > { %v1621_v12 = vpop.permute.xlu0 %1620 }
  0x90   : > { %v9371_v10 = vsel %vm11539_vm13, %v11669_v24, %v1621_v12  ;;  %v1623_v52 = vpop.permute.xlu1 %1622  ;;  %v11675_v12 = vsel %vm11674_vm6, %v8896_v19, 0  ;;  %vm11678_vm6 = vnez %v11640_v61 }
  0x91   : > { %1829 = vmatpush1.bf16.msra.mxu0 %v9349_v11  ;;  %1983 = vmatpush1.bf16.msra.mxu1 %v9349_v11  ;;  %v9382_v14 = vsel %vm11539_vm13, %v11671_v29, %v1623_v52  ;;  %v11677_v52 = vsel %vm11676_vm2, %v8947_v45, 0  ;;  %vm11680_vm2 = vnez %v11642_v17 }
  0x92   : > { %1830 = vmatprep.subr.bf16.mxu0 %v8938_v49  ;;  %1984 = vmatprep.subr.bf16.mxu1 %v8938_v49 }
  0x93   : > { %v1625_v46 = vpop.permute.xlu0 %1624 }
  0x94   : > { %v9393_v23 = vsel %vm11539_vm13, %v11673_v50, %v1625_v46  ;;  %v1627_v41 = vpop.permute.xlu1 %1626  ;;  %v11679_v46 = vsel %vm11678_vm6, %v9003_v51, 0 }
  0x95   : > { %1831 = vmatpush1.bf16.msra.mxu0 %v9360_v31  ;;  %1985 = vmatpush1.bf16.msra.mxu1 %v9360_v31  ;;  %v9404_v24 = vsel %vm11539_vm13, %v11675_v12, %v1627_v41  ;;  %v11681_v41 = vsel %vm11680_vm2, %v9021_v37, 0 }
  0x96   : > { %1832 = vmatprep.subr.bf16.mxu0 %v8983_v6  ;;  %1986 = vmatprep.subr.bf16.mxu1 %v8983_v6 }
  0x97   : > { %v1629_v26 = vpop.permute.xlu0 %1628 }
  0x98   : > { %v9415_v29 = vsel %vm11539_vm13, %v11677_v52, %v1629_v26  ;;  %v1631_v19 = vpop.permute.xlu1 %1630  ;;  %v11682_v26 = vsel %vm9242_vm7, %v9043_v57, 0 }
  0x99   : > { %1833 = vmatpush1.bf16.msra.mxu0 %v9371_v10  ;;  %1987 = vmatpush1.bf16.msra.mxu1 %v9371_v10  ;;  %v9426_v50 = vsel %vm11539_vm13, %v11679_v46, %v1631_v19  ;;  %v11683_v19 = vsel %vm9252_vm1, %v9116_v22, 0 }
  0x9a   : > { %1834 = vmatprep.subr.bf16.mxu0 %v9024_v0  ;;  %1988 = vmatprep.subr.bf16.mxu1 %v9024_v0 }
  0x9b   : > { %v1633_v45 = vpop.permute.xlu0 %1632 }
  0x9c   : > { %v9437_v12 = vsel %vm11539_vm13, %v11681_v41, %v1633_v45  ;;  %v1635_v51 = vpop.permute.xlu1 %1634  ;;  %v11684_v45 = vsel %vm9272_vm15, %v9139_v3, 0 }
  0x9d   : > { %1835 = vmatpush1.bf16.msra.mxu0 %v9382_v14  ;;  %1989 = vmatpush1.bf16.msra.mxu1 %v9382_v14  ;;  %v9448_v52 = vsel %vm11539_vm13, %v11682_v26, %v1635_v51  ;;  %v11685_v51 = vsel %vm9285_vm14, %v9155_v48, 0  ;;  %v8148_v48 = vld [vmem:[%s11464_s7 + $0x40] ss:$8 sps:$4 sm:$0xff]  }
  0x9e   : > { %1836 = vmatprep.subr.bf16.mxu0 %v9050_v21  ;;  %1990 = vmatprep.subr.bf16.mxu1 %v9050_v21 }
  0x9f   : > { %v1637_v37 = vpop.permute.xlu0 %1636 }
  0xa0   : > { %v9459_v46 = vsel %vm11539_vm13, %v11683_v19, %v1637_v37  ;;  %v1639_v57 = vpop.permute.xlu1 %1638  ;;  %v8151_v19 = vld [vmem:[%s11464_s7 + $0x54] ss:$8 sps:$4 sm:$0xff]  }
  0xa1   : > { %1837 = vmatpush1.bf16.msra.mxu0 %v9393_v23  ;;  %1991 = vmatpush1.bf16.msra.mxu1 %v9393_v23  ;;  %v9470_v41 = vsel %vm11539_vm13, %v11684_v45, %v1639_v57  ;;  %v8160_v57 = vld [vmem:[%s11458_s1 + $0x60] sm:$0xff]  }
  0xa2   : > { %1838 = vmatprep.subr.bf16.mxu0 %v9091_v27  ;;  %1992 = vmatprep.subr.bf16.mxu1 %v9091_v27  ;;  %v8154_v45 = vld [vmem:[%s11464_s7 + $0x64] ss:$8 sps:$4 sm:$0xff]  }
  0xa3   : > { %v1641_v22 = vpop.permute.xlu0 %1640 }
  0xa4   : > { %v9481_v26 = vsel %vm11539_vm13, %v11685_v51, %v1641_v22  ;;  %v1643_v3 = vpop.permute.xlu1 %1642  ;;  %v8162_v22 = vld [vmem:[%s11458_s1 + $0x70] sm:$0xff]   ;;  %v8163_v51 = vld [vmem:[%s11458_s1 + $0x78] sm:$0xff]  }
  0xa5   : > { %1839 = vmatpush1.bf16.msra.mxu0 %v9404_v24  ;;  %1993 = vmatpush1.bf16.msra.mxu1 %v9404_v24  ;;  %v9492_v37 = vsel %vm11539_vm13, %v1322_v4, %v1643_v3  ;;  %v8153_v4 = vld [vmem:[%s11464_s7 + $0x50] ss:$8 sps:$4 sm:$0xff]   ;;  %v8156_v3 = vld [vmem:[%s11464_s7 + $0x60] ss:$8 sps:$4 sm:$0xff]  }
  0xa6   : > { %1840 = vmatprep.subr.bf16.mxu0 %v9130_v9  ;;  %1994 = vmatprep.subr.bf16.mxu1 %v9130_v9 }
  0xa9   : > { %1841 = vmatpush1.bf16.msra.mxu0 %v9415_v29  ;;  %1995 = vmatpush1.bf16.msra.mxu1 %v9415_v29 }
  0xaa   : > { %1842 = vmatprep.subr.bf16.mxu0 %v9146_v7  ;;  %1996 = vmatprep.subr.bf16.mxu1 %v9146_v7 }
  0xad   : > { %1843 = vmatpush1.bf16.msra.mxu0 %v9426_v50  ;;  %1997 = vmatpush1.bf16.msra.mxu1 %v9426_v50 }
  0xae   : > { %1844 = vmatprep.subr.bf16.mxu0 %v9185_v35  ;;  %1998 = vmatprep.subr.bf16.mxu1 %v9185_v35 }
  0xb1   : > { %1845 = vmatpush1.bf16.msra.mxu0 %v9437_v12  ;;  %1999 = vmatpush1.bf16.msra.mxu1 %v9437_v12 }
  0xb2   : > { %1846 = vmatprep.subr.bf16.mxu0 %v9225_v40  ;;  %2000 = vmatprep.subr.bf16.mxu1 %v9225_v40 }
  0xb5   : > { %1847 = vmatpush1.bf16.msra.mxu0 %v9448_v52  ;;  %2001 = vmatpush1.bf16.msra.mxu1 %v9448_v52 }
  0xb6   : > { %1848 = vmatprep.subr.bf16.mxu0 %v9261_v20  ;;  %2002 = vmatprep.subr.bf16.mxu1 %v9261_v20 }
  0xb9   : > { %1849 = vmatpush1.bf16.msra.mxu0 %v9459_v46  ;;  %2003 = vmatpush1.bf16.msra.mxu1 %v9459_v46 }
  0xba   : > { %1850 = vmatprep.subr.bf16.mxu0 %v9283_v30  ;;  %2004 = vmatprep.subr.bf16.mxu1 %v9283_v30 }
  0xbd   : > { %1851 = vmatpush1.bf16.msra.mxu0 %v9470_v41  ;;  %2005 = vmatpush1.bf16.msra.mxu1 %v9470_v41 }
  0xbe   : > { %1852 = vmatprep.subr.bf16.mxu0 %v9317_v15  ;;  %2006 = vmatprep.subr.bf16.mxu1 %v9317_v15 }
  0xc1   : > { %1853 = vmatpush1.bf16.msra.mxu0 %v9481_v26  ;;  %2007 = vmatpush1.bf16.msra.mxu1 %v9481_v26 }
  0xc2   : > { %1854 = vmatprep.subr.bf16.mxu0 %v9320_v16  ;;  %2008 = vmatprep.subr.bf16.mxu1 %v9320_v16 }
  0xc5   : > { %1855 = vmatpush1.bf16.msra.mxu0 %v9492_v37  ;;  %2009 = vmatpush1.bf16.msra.mxu1 %v9492_v37 }
  0xc6   : > { %2168 = vmatprep.subr.bf16.mxu1 %v11638_v18  ;;  %2317 = vmatprep.subr.bf16.mxu0 %v11638_v18 }
  0xc8   : > { %2011 = vmatmul.mubr.bf16.vlgmr.msra.gmra.mrb[0].mxu1 %v8148_v48  ;;  %v8157_v48 = vld [vmem:[%s11464_s7 + $0x74] ss:$8 sps:$4 sm:$0xff]  }
  0xc9   : > { %2020 = vmatprep.mubr.bf16.mxu1 %v8151_v19  ;;  %2169 = vmatpush1.bf16.msra.mxu1 %v8160_v57  ;;  %v8164_v19 = vld [vmem:[%s11458_s1 + $0x80] sm:$0xff]   ;;  %v8165_v57 = vld [vmem:[%s11458_s1 + $0x88] sm:$0xff]  }
  0xca   : > { %2170 = vmatprep.subr.bf16.mxu1 %v11638_v18 }
  0xcd   : > { %2171 = vmatpush1.bf16.msra.mxu1 %v8161_v36  ;;  %v8159_v36 = vld [vmem:[%s11464_s7 + $0x70] ss:$8 sps:$4 sm:$0xff]  }
  0xce   : > { %2172 = vmatprep.subr.bf16.mxu1 %v11638_v18 }
  0xd0   : > { %2021 = vmatmul.mubr.bf16.gmra.mrb[4].mxu1 %v8153_v4  ;;  %v8166_v4 = vld [vmem:[%s11458_s1 + $0x90] sm:$0xff]  }
  0xd1   : > { %2030 = vmatprep.mubr.bf16.mxu1 %v8154_v45  ;;  %2173 = vmatpush1.bf16.msra.mxu1 %v8162_v22  ;;  %v8167_v45 = vld [vmem:[%s11458_s1 + $0x98] sm:$0xff]   ;;  %v8168_v22 = vld [vmem:[%s11458_s1 + $0xa0] sm:$0xff]  }
  0xd2   : > { %2174 = vmatprep.subr.bf16.mxu1 %v11638_v18 }
  0xd5   : > { %2175 = vmatpush1.bf16.msra.mxu1 %v8163_v51  ;;  %v8169_v51 = vld [vmem:[%s11458_s1 + $0xa8] sm:$0xff]  }
  0xd6   : > { %2176 = vmatprep.subr.bf16.mxu1 %v11638_v18 }
  0xd8   : > { %2031 = vmatmul.mubr.bf16.gmra.mrb[8].mxu1 %v8156_v3  ;;  %v8170_v3 = vld [vmem:[%s11458_s1 + $0xb0] sm:$0xff]  }
  0xd9   : > { %2040 = vmatprep.mubr.bf16.mxu1 %v8157_v48  ;;  %2177 = vmatpush1.bf16.msra.mxu1 %v8164_v19  ;;  %v8171_v48 = vld [vmem:[%s11458_s1 + $0xb8] sm:$0xff]   ;;  %v8172_v19 = vld [vmem:[%s11464_s7] ss:$8 sps:$4 sm:$0xff]  }
  0xda   : > { %2178 = vmatprep.subr.bf16.mxu1 %v11638_v18 }
  0xdd   : > { %2179 = vmatpush1.bf16.msra.mxu1 %v8165_v57  ;;  %v8174_v57 = vld [vmem:[%s11464_s7 + $0x4] ss:$8 sps:$4 sm:$0xff]  }
  0xde   : > { %2180 = vmatprep.subr.bf16.mxu1 %v11638_v18  ;;  %1856 = vmatprep.mubr.bf16.mxu0 %v8174_v57  ;;  %v8199_v57 = vld [vmem:[%s11458_s1 + $0x18] sm:$0xff]  }
  0xdf   : > { %1857 = vmatmul.mubr.bf16.vlgmr.msra.gmra.mrb[0].mxu0 %v8172_v19  ;;  %v8198_v19 = vld [vmem:[%s11458_s1 + $0x10] sm:$0xff]  }
  0xe0   : > { %2041 = vmatmul.mubr.bf16.gmra.mrb[12].mxu1 %v8159_v36  ;;  %v8175_v36 = vld [vmem:[%s11464_s7 + $0x14] ss:$8 sps:$4 sm:$0xff]  }
  0xe1   : > { %2181 = vmatpush1.bf16.msra.mxu1 %v8166_v4  ;;  %v8177_v4 = vld [vmem:[%s11464_s7 + $0x10] ss:$8 sps:$4 sm:$0xff]   ;;  %1866 = vmatprep.mubr.bf16.mxu0 %v8175_v36  ;;  %v8200_v36 = vld [vmem:[%s11458_s1 + $0x20] sm:$0xff]  }
  0xe2   : > { %2182 = vmatprep.subr.bf16.mxu1 %v11638_v18 }
  0xe5   : > { %2183 = vmatpush1.bf16.msra.mxu1 %v8167_v45  ;;  %v8180_v45 = vld [vmem:[%s11464_s7 + $0x20] ss:$8 sps:$4 sm:$0xff]  }
  0xe6   : > { %2184 = vmatprep.subr.bf16.mxu1 %v11638_v18 }
  0xe7   : > { %1867 = vmatmul.mubr.bf16.gmra.mrb[4].mxu0 %v8177_v4  ;;  %v8201_v4 = vld [vmem:[%s11458_s1 + $0x28] sm:$0xff]  }
  0xe9   : > { %2185 = vmatpush1.bf16.msra.mxu1 %v8168_v22  ;;  %v8181_v22 = vld [vmem:[%s11464_s7 + $0x34] ss:$8 sps:$4 sm:$0xff]  }
  0xea   : > { %2186 = vmatprep.subr.bf16.mxu1 %v11638_v18 }
  0xed   : > { %2187 = vmatpush1.bf16.msra.mxu1 %v8169_v51  ;;  %v8183_v51 = vld [vmem:[%s11464_s7 + $0x30] ss:$8 sps:$4 sm:$0xff]  }
  0xee   : > { %2188 = vmatprep.subr.bf16.mxu1 %v11638_v18 }
  0xf1   : > { %2189 = vmatpush1.bf16.msra.mxu1 %v8170_v3  ;;  %v8196_v3 = vld [vmem:[%s11458_s1] sm:$0xff]  }
  0xf2   : > { %2190 = vmatprep.subr.bf16.mxu1 %v11638_v18  ;;  %2318 = vmatpush1.bf16.msra.mxu0 %v8196_v3 }
  0xf3   : > { %2319 = vmatprep.subr.bf16.mxu0 %v11638_v18 }
  0xf5   : > { %2191 = vmatpush1.bf16.msra.mxu1 %v8171_v48  ;;  %v8197_v48 = vld [vmem:[%s11458_s1 + $0x8] sm:$0xff]  }
  0xf6   : > { %2431 = vmatprep.subr.bf16.mxu1 %v8773_v54  ;;  %v8178_v54 = vld [vmem:[%s11464_s7 + $0x24] ss:$8 sps:$4 sm:$0xff]   ;;  %2320 = vmatpush1.bf16.msra.mxu0 %v8197_v48 }
  0xf7   : > { %1876 = vmatprep.mubr.bf16.mxu0 %v8178_v54  ;;  %2321 = vmatprep.subr.bf16.mxu0 %v11638_v18  ;;  %v8202_v54 = vld [vmem:[%s11458_s1 + $0x30] sm:$0xff]  }
  0xf8   : > { %1877 = vmatmul.mubr.bf16.gmra.mrb[8].mxu0 %v8180_v45 }
  0xf9   : > { %1886 = vmatprep.mubr.bf16.mxu0 %v8181_v22 }
  0xfa   : > { %2322 = vmatpush1.bf16.msra.mxu0 %v8198_v19 }
  0xfb   : > { %2323 = vmatprep.subr.bf16.mxu0 %v11638_v18 }
  0xfe   : > { %2324 = vmatpush1.bf16.msra.mxu0 %v8199_v57 }
  0xff   : > { %2325 = vmatprep.subr.bf16.mxu0 %v11638_v18 }
 0x100   : > { %1887 = vmatmul.mubr.bf16.gmra.mrb[12].mxu0 %v8183_v51 }
 0x102   : > { %2326 = vmatpush1.bf16.msra.mxu0 %v8200_v36 }
 0x103   : > { %2327 = vmatprep.subr.bf16.mxu0 %v11638_v18 }
 0x106   : > { %2328 = vmatpush1.bf16.msra.mxu0 %v8201_v4 }
 0x107   : > { %2329 = vmatprep.subr.bf16.mxu0 %v11638_v18 }
 0x10a   : > { %2330 = vmatpush1.bf16.msra.mxu0 %v8202_v54 }
 0x10b   : > { %2331 = vmatprep.subr.bf16.mxu0 %v11638_v18 }
 0x19b   : > { %v2012_v45 = vpop.f32.mrb[0].mxu1 }
 0x19c   : > { %v2014_v22 = vpop.f32.mrb[1].mxu1 }
 0x19d   : > { %v2016_v51 = vpop.f32.mrb[2].mxu1 }
 0x19e   : > { %v2051_v3 = vpack.c.bf16 %v2016_v51, %v2012_v45  ;;  %v2018_v48 = vpop.f32.mrb[3].mxu1 }
 0x19f   : > { %v2052_v19 = vpack.c.bf16 %v2018_v48, %v2014_v22 }
 0x1a1   : > { %7159 = vmatprep.mubr.msk.bf16.mxu1 %vm11539_vm13, %v2052_v19  ;;  %v8213_v19 = vld [vmem:[%s11458_s1 + $0xe8] sm:$0xff]  }
 0x1a2   : > { %2201 = vmatmul.mubr.bf16.vlgmr.msra.gmra.mrb[16].mxu1 %v2051_v3 }
 0x1a3   : > { %2432 = vmatpush1.bf16.msra.mxu1 %v9327_v38  ;;  %v2022_v57 = vpop.f32.mrb[4].mxu1 }
 0x1a4   : > { %2433 = vmatprep.subr.bf16.mxu1 %v8793_v13  ;;  %v2024_v36 = vpop.f32.mrb[5].mxu1 }
 0x1a5   : > { %v2026_v4 = vpop.f32.mrb[6].mxu1 }
 0x1a6   : > { %v2053_v25 = vpack.c.bf16 %v2026_v4, %v2022_v57  ;;  %v2028_v54 = vpop.f32.mrb[7].mxu1 }
 0x1a7   : > { %2434 = vmatpush1.bf16.msra.mxu1 %v9338_v42  ;;  %v2054_v8 = vpack.c.bf16 %v2028_v54, %v2024_v36 }
 0x1a8   : > { %2435 = vmatprep.subr.bf16.mxu1 %v8899_v34 }
 0x1a9   : > { %7160 = vmatprep.mubr.msk.bf16.mxu1 %vm11539_vm13, %v2054_v8 }
 0x1aa   : > { %2209 = vmatmul.mubr.bf16.gmra.mrb[20].mxu1 %v2053_v25 }
 0x1ab   : > { %2436 = vmatpush1.bf16.msra.mxu1 %v9349_v11  ;;  %v2032_v45 = vpop.f32.mrb[8].mxu1 }
 0x1ac   : > { %2437 = vmatprep.subr.bf16.mxu1 %v8938_v49  ;;  %v2034_v38 = vpop.f32.mrb[9].mxu1 }
 0x1ad   : > { %v2036_v22 = vpop.f32.mrb[10].mxu1 }
 0x1ae   : > { %v2055_v13 = vpack.c.bf16 %v2036_v22, %v2032_v45  ;;  %v2038_v51 = vpop.f32.mrb[11].mxu1  ;;  %v8214_v45 = vld [vmem:[%s11458_s1 + $0xf0] sm:$0xff]  }
 0x1af   : > { %2438 = vmatpush1.bf16.msra.mxu1 %v9360_v31  ;;  %v2056_v3 = vpack.c.bf16 %v2038_v51, %v2034_v38  ;;  %v8186_v31 = vld [vmem:[%s11464_s7 + $0x84] ss:$8 sps:$4 sm:$0xff]  }
 0x1b0   : > { %2439 = vmatprep.subr.bf16.mxu1 %v8983_v6  ;;  %v8189_v6 = vld [vmem:[%s11464_s7 + $0x90] ss:$8 sps:$4 sm:$0xff]  }
 0x1b1   : > { %7161 = vmatprep.mubr.msk.bf16.mxu1 %vm11539_vm13, %v2056_v3 }
 0x1b2   : > { %2217 = vmatmul.mubr.bf16.gmra.mrb[24].mxu1 %v2055_v13  ;;  %v8215_v13 = vld [vmem:[%s11458_s1 + $0xf8] sm:$0xff]  }
 0x1b3   : > { %2440 = vmatpush1.bf16.msra.mxu1 %v9371_v10  ;;  %v2042_v34 = vpop.f32.mrb[12].mxu1 }
 0x1b4   : > { %2441 = vmatprep.subr.bf16.mxu1 %v9024_v0  ;;  %v2044_v8 = vpop.f32.mrb[13].mxu1  ;;  %v8190_v0 = vld [vmem:[%s11464_s7 + $0xa4] ss:$8 sps:$4 sm:$0xff]  }
 0x1b5   : > { %v2046_v25 = vpop.f32.mrb[14].mxu1 }
 0x1b6   : > { %v2057_v49 = vpack.c.bf16 %v2046_v25, %v2042_v34  ;;  %v2048_v42 = vpop.f32.mrb[15].mxu1  ;;  %v8216_v25 = vld [vmem:[%s11458_s1 + $0x100] sm:$0xff]  }
 0x1b7   : > { %2442 = vmatpush1.bf16.msra.mxu1 %v9382_v14  ;;  %v2058_v11 = vpack.c.bf16 %v2048_v42, %v2044_v8  ;;  %v8207_v14 = vld [vmem:[%s11458_s1 + $0x58] sm:$0xff]  }
 0x1b8   : > { %2443 = vmatprep.subr.bf16.mxu1 %v9050_v21  ;;  %v8192_v21 = vld [vmem:[%s11464_s7 + $0xa0] ss:$8 sps:$4 sm:$0xff]  }
 0x1b9   : > { %7162 = vmatprep.mubr.msk.bf16.mxu1 %vm11539_vm13, %v2058_v11  ;;  %v8217_v11 = vld [vmem:[%s11458_s1 + $0x108] sm:$0xff]  }
 0x1ba   : > { %2225 = vmatmul.mubr.bf16.gmra.mrb[28].mxu1 %v2057_v49 }
 0x1bb   : > { %2444 = vmatpush1.bf16.msra.mxu1 %v9393_v23  ;;  %2463 = vmatprep.mubr.bf16.mxu1 %v8186_v31 }
 0x1bc   : > { %2445 = vmatprep.subr.bf16.mxu1 %v9091_v27  ;;  %v8187_v27 = vld [vmem:[%s11464_s7 + $0x94] ss:$8 sps:$4 sm:$0xff]  }
 0x1bf   : > { %2446 = vmatpush1.bf16.msra.mxu1 %v9404_v24 }
 0x1c0   : > { %2447 = vmatprep.subr.bf16.mxu1 %v9130_v9  ;;  %v8193_v9 = vld [vmem:[%s11464_s7 + $0xb4] ss:$8 sps:$4 sm:$0xff]  }
 0x1c3   : > { %2448 = vmatpush1.bf16.msra.mxu1 %v9415_v29 }
 0x1c4   : > { %2449 = vmatprep.subr.bf16.mxu1 %v9146_v7  ;;  %v8184_v7 = vld [vmem:[%s11464_s7 + $0x80] ss:$8 sps:$4 sm:$0xff]  }
 0x1c7   : > { %2450 = vmatpush1.bf16.msra.mxu1 %v9426_v50 }
 0x1c8   : > { %2451 = vmatprep.subr.bf16.mxu1 %v9185_v35  ;;  %v8203_v35 = vld [vmem:[%s11458_s1 + $0x38] sm:$0xff]  }
 0x1c9   : > { %2332 = vmatpush1.bf16.msra.mxu0 %v8203_v35 }
 0x1ca   : > { %2333 = vmatprep.subr.bf16.mxu0 %v11638_v18 }
 0x1cb   : > { %2452 = vmatpush1.bf16.msra.mxu1 %v9437_v12  ;;  %v8208_v12 = vld [vmem:[%s11458_s1 + $0xc0] sm:$0xff]  }
 0x1cc   : > { %2453 = vmatprep.subr.bf16.mxu1 %v9225_v40  ;;  %v8195_v40 = vld [vmem:[%s11464_s7 + $0xb0] ss:$8 sps:$4 sm:$0xff]  }
 0x1cf   : > { %2454 = vmatpush1.bf16.msra.mxu1 %v9448_v52  ;;  %v8209_v52 = vld [vmem:[%s11458_s1 + $0xc8] sm:$0xff]  }
 0x1d0   : > { %2455 = vmatprep.subr.bf16.mxu1 %v9261_v20  ;;  %v8204_v20 = vld [vmem:[%s11458_s1 + $0x40] sm:$0xff]  }
 0x1d1   : > { %2334 = vmatpush1.bf16.msra.mxu0 %v8204_v20 }
 0x1d2   : > { %2335 = vmatprep.subr.bf16.mxu0 %v11638_v18 }
 0x1d3   : > { %2456 = vmatpush1.bf16.msra.mxu1 %v9459_v46  ;;  %v8210_v46 = vld [vmem:[%s11458_s1 + $0xd0] sm:$0xff]  }
 0x1d4   : > { %2457 = vmatprep.subr.bf16.mxu1 %v9283_v30  ;;  %v8206_v30 = vld [vmem:[%s11458_s1 + $0x50] sm:$0xff]  }
 0x1d7   : > { %2458 = vmatpush1.bf16.msra.mxu1 %v9470_v41  ;;  %v8211_v41 = vld [vmem:[%s11458_s1 + $0xd8] sm:$0xff]  }
 0x1d8   : > { %2459 = vmatprep.subr.bf16.mxu1 %v9317_v15  ;;  %v1858_v15 = vpop.f32.mrb[0].mxu0 }
 0x1d9   : > { %v1860_v10 = vpop.f32.mrb[1].mxu0 }
 0x1da   : > { %v1862_v23 = vpop.f32.mrb[2].mxu0 }
 0x1db   : > { %2460 = vmatpush1.bf16.msra.mxu1 %v9481_v26  ;;  %v1897_v24 = vpack.c.bf16 %v1862_v23, %v1858_v15  ;;  %v1864_v29 = vpop.f32.mrb[3].mxu0  ;;  %v8212_v26 = vld [vmem:[%s11458_s1 + $0xe0] sm:$0xff]  }
 0x1dc   : > { %2461 = vmatprep.subr.bf16.mxu1 %v9320_v16  ;;  %v8205_v16 = vld [vmem:[%s11458_s1 + $0x48] sm:$0xff]   ;;  %v1898_v50 = vpack.c.bf16 %v1864_v29, %v1860_v10 }
 0x1dd   : > { %2336 = vmatpush1.bf16.msra.mxu0 %v8205_v16 }
 0x1de   : > { %2337 = vmatprep.subr.bf16.mxu0 %v11638_v18  ;;  %7175 = vmatprep.mubr.msk.bf16.mxu0 %vm11539_vm13, %v1898_v50 }
 0x1df   : > { %2462 = vmatpush1.bf16.msra.mxu1 %v9492_v37  ;;  %v1868_v37 = vpop.f32.mrb[4].mxu0 }
 0x1e0   : > { %3216 = vmatprep.subr.bf16.mxu1 %v11638_v18  ;;  %v1870_v48 = vpop.f32.mrb[5].mxu0 }
 0x1e1   : > { %2338 = vmatpush1.bf16.msra.mxu0 %v8206_v30  ;;  %v1872_v57 = vpop.f32.mrb[6].mxu0 }
 0x1e2   : > { %2464 = vmatmul.mubr.bf16.vlgmr.msra.gmra.mrb[32].mxu1 %v8184_v7  ;;  %2339 = vmatprep.subr.bf16.mxu0 %v11638_v18  ;;  %v1899_v36 = vpack.c.bf16 %v1872_v57, %v1868_v37  ;;  %v1874_v4 = vpop.f32.mrb[7].mxu0 }
 0x1e3   : > { %2473 = vmatprep.mubr.bf16.mxu1 %v8187_v27  ;;  %v1900_v54 = vpack.c.bf16 %v1874_v4, %v1870_v48  ;;  %v1878_v38 = vpop.f32.mrb[8].mxu0 }
 0x1e4   : > { %v1880_v22 = vpop.f32.mrb[9].mxu0 }
 0x1e5   : > { %2340 = vmatpush1.bf16.msra.mxu0 %v8207_v14  ;;  %v1882_v51 = vpop.f32.mrb[10].mxu0 }
 0x1e6   : > { %2621 = vmatprep.subr.bf16.mxu0 %v11638_v18  ;;  %v1901_v3 = vpack.c.bf16 %v1882_v51, %v1878_v38  ;;  %v1884_v34 = vpop.f32.mrb[11].mxu0 }
 0x1e7   : > { %v1902_v8 = vpack.c.bf16 %v1884_v34, %v1880_v22  ;;  %v1888_v49 = vpop.f32.mrb[12].mxu0 }
 0x1e8   : > { %2350 = vmatmul.mubr.bf16.vlgmr.msra.gmra.mrb[16].mxu0 %v1897_v24  ;;  %v1890_v42 = vpop.f32.mrb[13].mxu0 }
 0x1e9   : > { %2622 = vmatpush1.bf16.msra.mxu0 %v8208_v12  ;;  %7176 = vmatprep.mubr.msk.bf16.mxu0 %vm11539_vm13, %v1900_v54  ;;  %v1892_v31 = vpop.f32.mrb[14].mxu0 }
 0x1ea   : > { %2474 = vmatmul.mubr.bf16.gmra.mrb[36].mxu1 %v8189_v6  ;;  %2623 = vmatprep.subr.bf16.mxu0 %v11638_v18  ;;  %v1903_v7 = vpack.c.bf16 %v1892_v31, %v1888_v49  ;;  %v1894_v27 = vpop.f32.mrb[15].mxu0 }
 0x1eb   : > { %2483 = vmatprep.mubr.bf16.mxu1 %v8190_v0  ;;  %v1904_v6 = vpack.c.bf16 %v1894_v27, %v1890_v42  ;;  %v8218_v0 = vld [vmem:[%s11458_s1 + $0x110] sm:$0xff]  }
 0x1ed   : > { %2624 = vmatpush1.bf16.msra.mxu0 %v8209_v52 }
 0x1ee   : > { %2625 = vmatprep.subr.bf16.mxu0 %v11638_v18 }
 0x1f0   : > { %2358 = vmatmul.mubr.bf16.gmra.mrb[20].mxu0 %v1899_v36 }
 0x1f1   : > { %2626 = vmatpush1.bf16.msra.mxu0 %v8210_v46  ;;  %7177 = vmatprep.mubr.msk.bf16.mxu0 %vm11539_vm13, %v1902_v8 }
 0x1f2   : > { %2484 = vmatmul.mubr.bf16.gmra.mrb[40].mxu1 %v8192_v21  ;;  %2627 = vmatprep.subr.bf16.mxu0 %v11638_v18  ;;  %v8219_v21 = vld [vmem:[%s11458_s1 + $0x118] sm:$0xff]  }
 0x1f3   : > { %2493 = vmatprep.mubr.bf16.mxu1 %v8193_v9 }
 0x1f5   : > { %2628 = vmatpush1.bf16.msra.mxu0 %v8211_v41 }
 0x1f6   : > { %2629 = vmatprep.subr.bf16.mxu0 %v11638_v18 }
 0x1f8   : > { %2366 = vmatmul.mubr.bf16.gmra.mrb[24].mxu0 %v1901_v3 }
 0x1f9   : > { %2630 = vmatpush1.bf16.msra.mxu0 %v8212_v26  ;;  %7178 = vmatprep.mubr.msk.bf16.mxu0 %vm11539_vm13, %v1904_v6  ;;  %v2771_v6 = vand.u32 7, %v8492_v2 }
 0x1fa   : > { %2494 = vmatmul.mubr.bf16.gmra.mrb[44].mxu1 %v8195_v40  ;;  %2631 = vmatprep.subr.bf16.mxu0 %v11638_v18 }
 0x1fb   : > { %vm2857_vm14 = vcmp.ge.s32.totalorder %v2771_v6, 1 }
 0x1fc   : > { %vm2881_vm1 = vmpackc.low %vm2857_vm14, %vm2857_vm14 }
 0x1fd   : > { %2632 = vmatpush1.bf16.msra.mxu0 %v8213_v19 }
 0x1fe   : > { %2633 = vmatprep.subr.bf16.mxu0 %v11638_v18 }
 0x200   : > { %2374 = vmatmul.mubr.bf16.gmra.mrb[28].mxu0 %v1903_v7 }
 0x201   : > { %2634 = vmatpush1.bf16.msra.mxu0 %v8214_v45 }
 0x202   : > { %2635 = vmatprep.subr.bf16.mxu0 %v11638_v18 }
 0x205   : > { %2636 = vmatpush1.bf16.msra.mxu0 %v8215_v13 }
 0x206   : > { %2637 = vmatprep.subr.bf16.mxu0 %v11638_v18 }
 0x209   : > { %2638 = vmatpush1.bf16.msra.mxu0 %v8216_v25 }
 0x20a   : > { %2639 = vmatprep.subr.bf16.mxu0 %v11638_v18 }
 0x20d   : > { %2640 = vmatpush1.bf16.msra.mxu0 %v8217_v11 }
 0x20e   : > { %2641 = vmatprep.subr.bf16.mxu0 %v11638_v18 }
 0x211   : > { %2642 = vmatpush1.bf16.msra.mxu0 %v8218_v0  ;;  %v2764_v0 = vand.u32 7, %v8481_v1 }
 0x212   : > { %2643 = vmatprep.subr.bf16.mxu0 %v11638_v18 }
 0x213   : > { %vm2856_vm5 = vcmp.ge.s32.totalorder %v2764_v0, 1 }
 0x214   : > { %vm2880_vm15 = vmpackc.low %vm2856_vm5, %vm2856_vm5 }
 0x215   : > { %2644 = vmatpush1.bf16.msra.mxu0 %v8219_v21  ;;  %v9776_v21 = vsel %vm2880_vm15, 65537, %v11638_v18 }
 0x275   : > { %v9750_v9 = vpop.f32.mrb[16].mxu1 }
 0x276   : > { %v2204_v35 = vpop.f32.mrb[17].mxu1 }
 0x277   : > { %v9752_v40 = vpop.f32.mrb[18].mxu1  ;;  %v9779_v35 = vsel %vm2881_vm1, 65537, %v11638_v18  ;;  %vm11691_vm1 = vcmask 1040384  }
 0x278   : > { %v2207_v20 = vpop.f32.mrb[19].mxu1 }
 0x279   : > { %v7235_v20 = vcombine.low %v9776_v21, %v9779_v35 }
 0x27d   : > { %v9754_v16 = vpop.f32.mrb[20].mxu1 }
 0x27e   : > { %v2212_v30 = vpop.f32.mrb[21].mxu1 }
 0x27f   : > { %v9756_v15 = vpop.f32.mrb[22].mxu1  ;;  %v11686_v30 = vld [vmem:[#allocation3_spill] sm:$0xff] }
 0x280   : > { %v2215_v10 = vpop.f32.mrb[23].mxu1 }
 0x281   : > { %v11541_v10 = vand.u32 7, %v11686_v30 }
 0x285   : > { %v9758_v14 = vpop.f32.mrb[24].mxu1 }
 0x286   : > { %v2220_v23 = vpop.f32.mrb[25].mxu1 }
 0x287   : > { %v9760_v24 = vpop.f32.mrb[26].mxu1  ;;  %v11687_v23 = vld [vmem:[#allocation6_spill] sm:$0xff] }
 0x288   : > { %v2223_v29 = vpop.f32.mrb[27].mxu1 }
 0x289   : > { %v2792_v29 = vand.u32 7, %v11687_v23 }
 0x28b   : > { %vm2920_vm5 = vcmp.le.s32.totalorder %v2792_v29, 6 }
 0x28c   : > { %vm2944_vm7 = vmpackc.low %vm2920_vm5, %vm2920_vm5 }
 0x28d   : > { %v9762_v50 = vpop.f32.mrb[28].mxu1 }
 0x28e   : > { %v2228_v12 = vpop.f32.mrb[29].mxu1 }
 0x28f   : > { %v9764_v52 = vpop.f32.mrb[30].mxu1  ;;  %v2952_v12 = vsel %vm2944_vm7, 65537, %v11638_v18 }
 0x290   : > { %v2231_v46 = vpop.f32.mrb[31].mxu1 }
 0x2b5   : > { %v2465_v41 = vpop.f32.mrb[32].mxu1 }
 0x2b6   : > { %v2467_v26 = vpop.f32.mrb[33].mxu1 }
 0x2b7   : > { %v2469_v37 = vpop.f32.mrb[34].mxu1 }
 0x2b8   : > { %v2504_v48 = vpack.c.bf16 %v2469_v37, %v2465_v41  ;;  %v2471_v19 = vpop.f32.mrb[35].mxu1  ;;  %v11688_v37 = vld [vmem:[#allocation14_spill] sm:$0xff] }
 0x2b9   : > { %v2505_v57 = vpack.c.bf16 %v2471_v19, %v2467_v26 }
 0x2bb   : > { %7231 = vmatprep.mubr.msk.bf16.mxu0 %vm11539_vm13, %v2505_v57 }
 0x2bc   : > { %2654 = vmatmul.mubr.bf16.vlgmr.msra.gmra.mrb[16].mxu0 %v2504_v48  ;;  %v11689_v48 = vld [vmem:[#allocation12_spill] sm:$0xff] }
 0x2bd   : > { %v2475_v36 = vpop.f32.mrb[36].mxu1  ;;  %v11690_v19 = vcombine.low %v11688_v37, %v11689_v48  ;;  %v8229_v37 = vld [vmem:[%s11459_s2 + $0xa8] sm:$0xff]  }
 0x2be   : > { %v2477_v4 = vpop.f32.mrb[37].mxu1 }
 0x2bf   : > { %v2479_v54 = vpop.f32.mrb[38].mxu1  ;;  %v9796_v57 = vrot.slane %v11690_v19, 7 }
 0x2c0   : > { %v2506_v45 = vpack.c.bf16 %v2479_v54, %v2475_v36  ;;  %v2481_v38 = vpop.f32.mrb[39].mxu1 }
 0x2c1   : > { %v2507_v22 = vpack.c.bf16 %v2481_v38, %v2477_v4  ;;  %v11692_v4 = vld [vmem:[#allocation10_spill] sm:$0xff] }
 0x2c2   : > { %v11693_v54 = vand.u32 7, %v11692_v4 }
 0x2c3   : > { %7232 = vmatprep.mubr.msk.bf16.mxu0 %vm11539_vm13, %v2507_v22 }
 0x2c4   : > { %2662 = vmatmul.mubr.bf16.gmra.mrb[20].mxu0 %v2506_v45  ;;  %v11694_v45 = vld [vmem:[#allocation5_spill] sm:$0xff] }
 0x2c5   : > { %v2485_v13 = vpop.f32.mrb[40].mxu1  ;;  %v11695_v38 = vand.u32 7, %v11694_v45 }
 0x2c6   : > { %v2487_v51 = vpop.f32.mrb[41].mxu1 }
 0x2c7   : > { %v2489_v3 = vpop.f32.mrb[42].mxu1  ;;  %vm2863_vm7 = vcmp.ge.s32.totalorder %v11695_v38, 1 }
 0x2c8   : > { %v2508_v34 = vpack.c.bf16 %v2489_v3, %v2485_v13  ;;  %v2491_v8 = vpop.f32.mrb[43].mxu1  ;;  %vm2887_vm5 = vmpackc.low %vm2863_vm7, %vm2863_vm7  ;;  %v8220_v3 = vld [vmem:[%s11459_s2 + $0x60] sm:$0xff]  }
 0x2c9   : > { %v2509_v25 = vpack.c.bf16 %v2491_v8, %v2487_v51  ;;  %v9811_v13 = vsel %vm2887_vm5, 65537, %v11638_v18  ;;  %3217 = vmatpush1.bf16.msra.mxu1 %v8220_v3  ;;  %v8222_v8 = vld [vmem:[%s11459_s2 + $0x70] sm:$0xff]  }
 0x2ca   : > { %3218 = vmatprep.subr.bf16.mxu1 %v11638_v18  ;;  %v8230_v3 = vld [vmem:[%s11459_s2 + $0xb0] sm:$0xff]  }
 0x2cb   : > { %7233 = vmatprep.mubr.msk.bf16.mxu0 %vm11539_vm13, %v2509_v25  ;;  %v8223_v25 = vld [vmem:[%s11459_s2 + $0x78] sm:$0xff]  }
 0x2cc   : > { %2670 = vmatmul.mubr.bf16.gmra.mrb[24].mxu0 %v2508_v34  ;;  %v8221_v34 = vld [vmem:[%s11459_s2 + $0x68] sm:$0xff]  }
 0x2cd   : > { %v2495_v49 = vpop.f32.mrb[44].mxu1  ;;  %3219 = vmatpush1.bf16.msra.mxu1 %v8221_v34 }
 0x2ce   : > { %v2497_v42 = vpop.f32.mrb[45].mxu1  ;;  %3220 = vmatprep.subr.bf16.mxu1 %v11638_v18 }
 0x2cf   : > { %v2499_v11 = vpop.f32.mrb[46].mxu1 }
 0x2d0   : > { %v2510_v31 = vpack.c.bf16 %v2499_v11, %v2495_v49  ;;  %v2501_v7 = vpop.f32.mrb[47].mxu1  ;;  %v8224_v49 = vld [vmem:[%s11459_s2 + $0x80] sm:$0xff]   ;;  %v8226_v11 = vld [vmem:[%s11459_s2 + $0x90] sm:$0xff]  }
 0x2d1   : > { %v2511_v27 = vpack.c.bf16 %v2501_v7, %v2497_v42  ;;  %3221 = vmatpush1.bf16.msra.mxu1 %v8222_v8  ;;  %v8225_v42 = vld [vmem:[%s11459_s2 + $0x88] sm:$0xff]   ;;  %v8228_v7 = vld [vmem:[%s11459_s2 + $0xa0] sm:$0xff]  }
 0x2d2   : > { %3222 = vmatprep.subr.bf16.mxu1 %v11638_v18 }
 0x2d3   : > { %7234 = vmatprep.mubr.msk.bf16.mxu0 %vm11539_vm13, %v2511_v27  ;;  %vm2921_vm13 = vcmp.le.s32.totalorder %v11541_v10, 6  ;;  %v11696_v27 = vld [vmem:[#allocation2_spill] sm:$0xff] }
 0x2d4   : > { %2678 = vmatmul.mubr.bf16.gmra.mrb[28].mxu0 %v2510_v31  ;;  %vm2945_vm14 = vmpackc.low %vm2921_vm13, %vm2921_vm13  ;;  %vm2862_vm13 = vcmp.ge.s32.totalorder %v11693_v54, 1  ;;  %v8227_v31 = vld [vmem:[%s11459_s2 + $0x98] sm:$0xff]  }
 0x2d5   : > { %3764 = vmatprep.mubr.bf16.mxu0 %v11638_v18  ;;  %v2953_v46 = vsel %vm2945_vm14, 65537, %v11638_v18  ;;  %vm2886_vm15 = vmpackc.low %vm2862_vm13, %vm2862_vm13  ;;  %3223 = vmatpush1.bf16.msra.mxu1 %v8223_v25  ;;  %vm9869_vm13 = vcmp.le.s32.totalorder %v2764_v0, 6 }
 0x2d6   : > { %v7241_v41 = vcombine.low %v2952_v12, %v2953_v46  ;;  %v9808_v22 = vsel %vm2886_vm15, 65537, %v11638_v18  ;;  %3224 = vmatprep.subr.bf16.mxu1 %v11638_v18  ;;  %v2785_v12 = vand.u32 7, %v11696_v27  ;;  %v11697_v46 = vld [vmem:[#allocation4_spill] sm:$0xff]  ;;  %vm9882_vm15 = vcmp.le.s32.totalorder %v2771_v6, 6  ;;  %v8231_v6 = vld [vmem:[%s11459_s2 + $0xb8] sm:$0xff]  }
 0x2d7   : > { %vm2941_vm10 = vmpackc.low %vm9882_vm15, %vm9882_vm15  ;;  %v11717_v27 = vand.u32 7, %v11686_v30 }
 0x2d8   : > { %v9791_v26 = vrot.slane %v7241_v41, 7  ;;  %v2778_v41 = vand.u32 7, %v11697_v46  ;;  %vm9858_vm14 = vcmp.le.s32.totalorder %v2785_v12, 6  ;;  %v2949_v19 = vsel %vm2941_vm10, 65537, %v11638_v18 }
 0x2d9   : > { %3225 = vmatpush1.bf16.msra.mxu1 %v8224_v49  ;;  %vm2943_vm7 = vmpackc.low %vm9858_vm14, %vm9858_vm14 }
 0x2da   : > { %v9801_v36 = vsel %vm11691_vm1, %v9791_v26, %v9796_v57  ;;  %3226 = vmatprep.subr.bf16.mxu1 %v11638_v18  ;;  %vm9864_vm1 = vcmp.le.s32.totalorder %v2778_v41, 6  ;;  %vm2940_vm14 = vmpackc.low %vm9869_vm13, %vm9869_vm13 }
 0x2db   : > { %vm2942_vm5 = vmpackc.low %vm9864_vm1, %vm9864_vm1  ;;  %v2948_v48 = vsel %vm2940_vm14, 65537, %v11638_v18  ;;  %vm11706_vm1 = vcmask 1040384  }
 0x2dc   : > { %vm11708_vm14 = vmmov %vm11706_vm1 }
 0x2dd   : > { %3227 = vmatpush1.bf16.msra.mxu1 %v8225_v42 }
 0x2de   : > { %3228 = vmatprep.subr.bf16.mxu1 %v11638_v18 }
 0x2e1   : > { %3229 = vmatpush1.bf16.msra.mxu1 %v8226_v11 }
 0x2e2   : > { %3230 = vmatprep.subr.bf16.mxu1 %v11638_v18 }
 0x2e5   : > { %3231 = vmatpush1.bf16.msra.mxu1 %v8227_v31  ;;  %v2950_v31 = vsel %vm2942_vm5, 65537, %v11638_v18  ;;  %vm11707_vm5 = vsmask.f32 256 }
 0x2e6   : > { %3232 = vmatprep.subr.bf16.mxu1 %v11638_v18 }
 0x2e9   : > { %3233 = vmatpush1.bf16.msra.mxu1 %v8228_v7 }
 0x2ea   : > { %3234 = vmatprep.subr.bf16.mxu1 %v11638_v18 }
 0x2ed   : > { %3235 = vmatpush1.bf16.msra.mxu1 %v8229_v37 }
 0x2ee   : > { %3236 = vmatprep.subr.bf16.mxu1 %v11638_v18 }
 0x2f1   : > { %3237 = vmatpush1.bf16.msra.mxu1 %v8230_v3 }
 0x2f2   : > { %3238 = vmatprep.subr.bf16.mxu1 %v11638_v18 }
 0x2f5   : > { %3239 = vmatpush1.bf16.msra.mxu1 %v8231_v6 }
 0x2f6   : > { %3364 = vmatprep.subr.bf16.mxu1 %v11638_v18 }
 0x38f   : > { %v2655_v4 = vpop.f32.mrb[16].mxu0 }
 0x390   : > { %v7950_v54 = vadd.f32 %v2655_v4, %v9750_v9  ;;  %v2657_v45 = vpop.f32.mrb[17].mxu0  ;;  %v7239_v9 = vcombine.low %v2948_v48, %v2949_v19 }
 0x391   : > { %v2658_v34 = vpop.f32.mrb[18].mxu0 }
 0x392   : > { %v2702_v0 = vmul.f32 0.01, %v7950_v54  ;;  %v7951_v8 = vadd.f32 %v2658_v34, %v9752_v40  ;;  %v2660_v25 = vpop.f32.mrb[19].mxu0  ;;  %vm2694_vm2 = vcmp.ge.f32.partialorder %v7950_v54, 0.0  ;;  %v2951_v40 = vsel %vm2943_vm7, 65537, %v11638_v18 }
 0x394   : > { %vm2695_vm6 = vcmp.ge.f32.partialorder %v7951_v8, 0.0  ;;  %v2703_v49 = vmul.f32 0.01, %v7951_v8  ;;  %v2710_v42 = vsel %vm2694_vm2, %v7950_v54, %v2702_v0  ;;  %v7240_v54 = vcombine.low %v2950_v31, %v2951_v40 }
 0x396   : > { %v2711_v11 = vsel %vm2695_vm6, %v7951_v8, %v2703_v49 }
 0x397   : > { %v2663_v7 = vpop.f32.mrb[20].mxu0  ;;  %v2718_v37 = vpack.c.bf16 %v2711_v11, %v2710_v42  ;;  %v2969_v42 = vrot.slane %v7240_v54, 7 }
 0x398   : > { %v7952_v4 = vadd.f32 %v2663_v7, %v9754_v16  ;;  %v2665_v45 = vpop.f32.mrb[21].mxu0  ;;  %v9908_v16 = vrot.slane %v7239_v9, 7 }
 0x399   : > { %2989 = vrot.lane.b32.xlu0 %v2718_v37, %s8396_s14  ;;  %v2723_v38 = vshrl.u32 %v2718_v37, 16  ;;  %v2666_v3 = vpop.f32.mrb[22].mxu0  ;;  %v2726_v6 = vshll.u32 %v2718_v37, 16 }
 0x39a   : > { %v2704_v34 = vmul.f32 0.01, %v7952_v4  ;;  %v7953_v0 = vadd.f32 %v2666_v3, %v9756_v15  ;;  %v2668_v8 = vpop.f32.mrb[23].mxu0  ;;  %vm2696_vm2 = vcmp.ge.f32.partialorder %v7952_v4, 0.0  ;;  %vm11546_vm10 = vcmp.ne.s16.totalorder %v9908_v16, 0 }
 0x39b   : > { %v2725_v25 = vrot.slane %v2723_v38, 7 }
 0x39c   : > { %vm2697_vm6 = vcmp.ge.f32.partialorder %v7953_v0, 0.0  ;;  %v2705_v49 = vmul.f32 0.01, %v7953_v0  ;;  %v2712_v11 = vsel %vm2696_vm2, %v7952_v4, %v2704_v34  ;;  %v9916_v4 = vsel %vm11706_vm1, %v9908_v16, %v2969_v42 }
 0x39d   : > { %v2728_v45 = vor.u32 %v2726_v6, %v2725_v25  ;;  %vm11545_vm15 = vcmp.ne.s16.totalorder %v9916_v4, 0  ;;  %vm11743_vm0 = vcmp.ne.s16.totalorder %v9916_v4, 0 }
 0x39e   : > { %v2713_v7 = vsel %vm2697_vm6, %v7953_v0, %v2705_v49  ;;  %vm11709_vm6 = vcmask 1046528  }
 0x39f   : > { %v2671_v51 = vpop.f32.mrb[24].mxu0  ;;  %v2719_v10 = vpack.c.bf16 %v2713_v7, %v2712_v11  ;;  %v9920_v3 = vsel %vm8664_vm12, 0, %v2728_v45 }
 0x3a0   : > { %v7954_v40 = vadd.f32 %v2671_v51, %v9758_v14  ;;  %v2673_v31 = vpop.f32.mrb[25].mxu0 }
 0x3a1   : > { %2991 = vrot.lane.b32.xlu1 %v2719_v10, %s8396_s14  ;;  %v2730_v15 = vshrl.u32 %v2719_v10, 16  ;;  %v2674_v48 = vpop.f32.mrb[26].mxu0  ;;  %v2733_v51 = vshll.u32 %v2719_v10, 16 }
 0x3a2   : > { %v2706_v19 = vmul.f32 0.01, %v7954_v40  ;;  %v7955_v37 = vadd.f32 %v2674_v48, %v9760_v24  ;;  %v2676_v38 = vpop.f32.mrb[27].mxu0  ;;  %vm2698_vm13 = vcmp.ge.f32.partialorder %v7954_v40, 0.0  ;;  %v2980_v24 = vsel %vm11546_vm10, %v9920_v3, 0 }
 0x3a3   : > { %v2732_v14 = vrot.slane %v2730_v15, 7  ;;  %v3002_v45 = vrot.slane %v2980_v24, 1 }
 0x3a4   : > { %vm2699_vm7 = vcmp.ge.f32.partialorder %v7955_v37, 0.0  ;;  %v2707_v54 = vmul.f32 0.01, %v7955_v37  ;;  %v2714_v9 = vsel %vm2698_vm13, %v7954_v40, %v2706_v19 }
 0x3a5   : > { %v2735_v34 = vor.u32 %v2733_v51, %v2732_v14 }
 0x3a6   : > { %v2715_v0 = vsel %vm2699_vm7, %v7955_v37, %v2707_v54  ;;  %vm11710_vm7 = vmmov %vm11707_vm5 }
 0x3a7   : > { %v9927_v8 = vsel %vm11707_vm5, %v2725_v25, %v2735_v34  ;;  %v2679_v49 = vpop.f32.mrb[28].mxu0  ;;  %v2720_v6 = vpack.c.bf16 %v2715_v0, %v2714_v9  ;;  %v9936_v25 = vsel %vm11708_vm14, %v2969_v42, %v9791_v26  ;;  %vm11547_vm5 = vcmask 1043456  }
 0x3a8   : > { %v7956_v11 = vadd.f32 %v2679_v49, %v9762_v50  ;;  %v2681_v7 = vpop.f32.mrb[29].mxu0  ;;  %v2981_v10 = vsel %vm11545_vm15, %v9927_v8, 0  ;;  %vm11544_vm13 = vcmp.ne.s16.totalorder %v9936_v25, 0  ;;  %vm11542_vm14 = vcmp.ne.s16.totalorder %v9796_v57, 0 }
 0x3a9   : > { %2993 = vrot.lane.b32.xlu0 %v2720_v6, %s8396_s14  ;;  %v2738_v31 = vshrl.u32 %v2720_v6, 16  ;;  %v2682_v15 = vpop.f32.mrb[30].mxu0  ;;  %v3003_v48 = vrot.slane %v2981_v10, 1  ;;  %v2741_v38 = vshll.u32 %v2720_v6, 16  ;;  %vm2861_vm15 = vcmp.ge.s32.totalorder %v11717_v27, 1 }
 0x3aa   : > { %v2708_v40 = vmul.f32 0.01, %v7956_v11  ;;  %v7957_v19 = vadd.f32 %v2682_v15, %v9764_v52  ;;  %v2684_v37 = vpop.f32.mrb[31].mxu0  ;;  %vm2700_vm2 = vcmp.ge.f32.partialorder %v7956_v11, 0.0 }
 0x3ab   : > { %v2740_v50 = vrot.slane %v2738_v31, 7  ;;  %v3004_v51 = vsel %vm11709_vm6, %v3002_v45, %v3003_v48 }
 0x3ac   : > { %vm2701_vm1 = vcmp.ge.f32.partialorder %v7957_v19, 0.0  ;;  %v2709_v54 = vmul.f32 0.01, %v7957_v19  ;;  %v2716_v24 = vsel %vm2700_vm2, %v7956_v11, %v2708_v40  ;;  %v3029_v42 = vrot.slane %v3004_v51, 4  ;;  %vm11711_vm2 = vmmov %vm11709_vm6 }
 0x3ad   : > { %v2743_v34 = vor.u32 %v2741_v38, %v2740_v50  ;;  %vm11543_vm6 = vcmp.ne.s16.totalorder %v9801_v36, 0 }
 0x3ae   : > { %v2717_v9 = vsel %vm2701_vm1, %v7957_v19, %v2709_v54  ;;  %vm11712_vm1 = vmmov %vm11710_vm7 }
 0x3af   : > { %v9942_v0 = vsel %vm11710_vm7, %v2732_v14, %v2743_v34  ;;  %v2721_v26 = vpack.c.bf16 %v2717_v9, %v2716_v24  ;;  %v9951_v14 = vsel %vm11547_vm5, 0, %v3029_v42  ;;  %vm11713_vm7 = vcmask 523264  }
 0x3b0   : > { %v2982_v52 = vsel %vm11544_vm13, %v9942_v0, 0  ;;  %vm2860_vm13 = vcmp.ge.s32.totalorder %v2792_v29, 1 }
 0x3b1   : > { %v3005_v49 = vrot.slane %v2982_v52, 1  ;;  %2995 = vrot.lane.b32.xlu1 %v2721_v26, %s8396_s14  ;;  %v2746_v6 = vshrl.u32 %v2721_v26, 16  ;;  %v2749_v10 = vshll.u32 %v2721_v26, 16 }
 0x3b3   : > { %v2748_v7 = vrot.slane %v2746_v6, 7  ;;  %v3006_v11 = vsel %vm11711_vm2, %v3003_v48, %v3005_v49  ;;  %v3113_v48 = vrot.slane %v9951_v14, 4 }
 0x3b4   : > { %v3032_v45 = vrot.slane %v3006_v11, 4 }
 0x3b5   : > { %v2751_v31 = vor.u32 %v2749_v10, %v2748_v7  ;;  %v2759_v15 = vsel %vm8664_vm12, %v2748_v7, 0 }
 0x3b6   : > { %v2984_v40 = vsel %vm11542_vm14, %v2759_v15, 0  ;;  %v9959_v19 = vsel %vm11547_vm5, %v3029_v42, %v3032_v45  ;;  %vm11714_vm14 = vmmov %vm11711_vm2 }
 0x3b7   : > { %v9962_v37 = vsel %vm11712_vm1, %v2740_v50, %v2751_v31  ;;  %v3114_v38 = vrot.slane %v9959_v19, 4  ;;  %v3009_v34 = vrot.slane %v2984_v40, 1  ;;  %vm2858_vm1 = vcmp.ge.s32.totalorder %v2778_v41, 1 }
 0x3b8   : > { %v2983_v51 = vsel %vm11543_vm6, %v9962_v37, 0  ;;  %vm2882_vm6 = vmpackc.low %vm2858_vm1, %vm2858_vm1  ;;  %vm11718_vm1 = vcmask 523264  }
 0x3b9   : > { %v3007_v54 = vrot.slane %v2983_v51, 1  ;;  %v3115_v24 = vsel %vm11547_vm5, %v3113_v48, %v3114_v38  ;;  %vm11721_vm10 = vmmov %vm11718_vm1 }
 0x3ba   : > { %7279 = vmatprep.mubr.msk.bf16.mxu1 %vm11713_vm7, %v3115_v24  ;;  %vm2859_vm7 = vcmp.ge.s32.totalorder %v2785_v12, 1 }
 0x3bb   : > { %v3008_v9 = vsel %vm11711_vm2, %v3005_v49, %v3007_v54  ;;  %v9973_v26 = vsel %vm11714_vm14, %v3007_v54, %v3009_v34  ;;  %vm2883_vm2 = vmpackc.low %vm2859_vm7, %vm2859_vm7  ;;  %v2890_v49 = vsel %vm2882_vm6, 65537, %v11638_v18  ;;  %vm9991_vm14 = vcmp.ne.s16.totalorder %v7235_v20, 0 }
 0x3bc   : > { %v3036_v50 = vrot.slane %v3008_v9, 4  ;;  %v3040_v52 = vrot.slane %v9973_v26, 4  ;;  %v2891_v7 = vsel %vm2883_vm2, 65537, %v11638_v18  ;;  %v2912_v41 = vsel %vm9991_vm14, %v9920_v3, 0  ;;  %vm2884_vm6 = vmpackc.low %vm2860_vm13, %vm2860_vm13 }
 0x3bd   : > { %v7236_v12 = vcombine.low %v2890_v49, %v2891_v7  ;;  %vm2885_vm7 = vmpackc.low %vm2861_vm15, %vm2861_vm15  ;;  %v2892_v20 = vsel %vm2884_vm6, 65537, %v11638_v18  ;;  %v8233_v7 = vld [vmem:[%s11459_s2 + $0x8] sm:$0xff]  }
 0x3be   : > { %v9977_v42 = vsel %vm11547_vm5, %v3032_v45, %v3036_v50  ;;  %v9980_v6 = vsel %vm11547_vm5, %v3036_v50, %v3040_v52  ;;  %v2893_v30 = vsel %vm2885_vm7, 65537, %v11638_v18  ;;  %vm11725_vm13 = vmmov %vm11718_vm1 }
 0x3bf   : > { %vm10003_vm2 = vcmp.ne.s16.totalorder %v7236_v12, 0  ;;  %v7237_v45 = vcombine.low %v2892_v20, %v2893_v30  ;;  %v3118_v48 = vrot.slane %v9977_v42, 4  ;;  %v11726_v12 = vcombine.low %v9808_v22, %v9811_v13  ;;  %vm11729_vm7 = vmmov %vm11718_vm1  ;;  %v8235_v13 = vld [vmem:[%s11459_s2 + $0x18] sm:$0xff]  }
 0x3c0   : > { %v2913_v29 = vsel %vm10003_vm2, %v9927_v8, 0  ;;  %v8232_v8 = vld [vmem:[%s11459_s2] sm:$0xff]  }
 0x3c1   : > { %vm10023_vm15 = vcmp.ne.s16.totalorder %v7237_v45, 0  ;;  %v3119_v50 = vsel %vm11547_vm5, %v3114_v38, %v3118_v48  ;;  %v8234_v38 = vld [vmem:[%s11459_s2 + $0x10] sm:$0xff]   ;;  %vm10051_vm6 = vcmp.ne.s16.totalorder %v11726_v12, 0 }
 0x3c2   : > { %v2914_v26 = vsel %vm10023_vm15, %v9942_v0, 0  ;;  %v3122_v0 = vrot.slane %v9980_v6, 4  ;;  %v8246_v12 = vld [vmem:[%s11459_s2 + $0xd0] sm:$0xff]  }
 0x40b   : > { %v2990_v46 = vpop.permute.xlu0 %2989 }
 0x40c   : > { %v3013_v11 = vsel %vm11718_vm1, %v2912_v41, %v2990_v46 }
 0x40d   : > { %v10007_v35 = vrot.slane %v3013_v11, 4 }
 0x40f   : > { %v3048_v31 = vsel %vm11547_vm5, 0, %v10007_v35 }
 0x410   : > { %v3110_v51 = vrot.slane %v3048_v31, 4 }
 0x413   : > { %v2992_v23 = vpop.permute.xlu1 %2991 }
 0x414   : > { %v3016_v3 = vsel %vm11721_vm10, %v2913_v29, %v2992_v23  ;;  %vm11724_vm10 = vmmov %vm11718_vm1  ;;  %v2915_v23 = vsel %vm10051_vm6, %v9962_v37, 0  ;;  %v3123_v29 = vsel %vm11547_vm5, %v3118_v48, %v3122_v0  ;;  %v8236_v48 = vld [vmem:[%s11459_s2 + $0x20] sm:$0xff]  }
 0x415   : > { %v3030_v15 = vrot.slane %v3016_v3, 4  ;;  %v10068_v3 = vsel %vm11547_vm5, %v3040_v52, 0 }
 0x416   : > { %v3126_v31 = vrot.slane %v10068_v3, 4 }
 0x417   : > { %v10019_v40 = vsel %vm11547_vm5, %v10007_v35, %v3030_v15 }
 0x418   : > { %v3111_v54 = vrot.slane %v10019_v40, 4 }
 0x41a   : > { %v3112_v24 = vsel %vm11547_vm5, %v3110_v51, %v3111_v54  ;;  %v3127_v51 = vsel %vm11547_vm5, %v3122_v0, %v3126_v31  ;;  %v8244_v0 = vld [vmem:[%s11459_s2 + $0xc0] sm:$0xff]  }
 0x41b   : > { %v2994_v9 = vpop.permute.xlu0 %2993  ;;  %3249 = vmatmul.mubr.bf16.vlgmr.msra.gmra.mrb[48].mxu1 %v3112_v24 }
 0x41c   : > { %v3019_v49 = vsel %vm11724_vm10, %v2914_v26, %v2994_v9  ;;  %3365 = vmatpush1.bf16.msra.mxu1 %v8232_v8  ;;  %7280 = vmatprep.mubr.msk.bf16.mxu1 %vm11725_vm13, %v3119_v50  ;;  %vm11730_vm10 = vmmov %vm11718_vm1  ;;  %v8237_v8 = vld [vmem:[%s11459_s2 + $0x28] sm:$0xff]   ;;  %v8238_v9 = vld [vmem:[%s11459_s2 + $0x30] sm:$0xff]  }
 0x41d   : > { %v3034_v46 = vrot.slane %v3019_v49, 4  ;;  %3366 = vmatprep.subr.bf16.mxu1 %v11638_v18  ;;  %vm11731_vm13 = vmmov %vm11718_vm1  ;;  %v8239_v50 = vld [vmem:[%s11459_s2 + $0x38] sm:$0xff]   ;;  %v8240_v49 = vld [vmem:[%s11459_s2 + $0x40] sm:$0xff]  }
 0x41f   : > { %v10042_v27 = vsel %vm11547_vm5, %v3030_v15, %v3034_v46 }
 0x420   : > { %3367 = vmatpush1.bf16.msra.mxu1 %v8233_v7  ;;  %v3116_v11 = vrot.slane %v10042_v27, 4  ;;  %v8241_v7 = vld [vmem:[%s11459_s2 + $0x48] sm:$0xff]  }
 0x421   : > { %3368 = vmatprep.subr.bf16.mxu1 %v11638_v18 }
 0x422   : > { %v3117_v20 = vsel %vm11547_vm5, %v3111_v54, %v3116_v11 }
 0x423   : > { %v2996_v30 = vpop.permute.xlu1 %2995  ;;  %3257 = vmatmul.mubr.bf16.gmra.mrb[52].mxu1 %v3117_v20  ;;  %v8249_v20 = vld [vmem:[%s11459_s2 + $0xe8] sm:$0xff]  }
 0x424   : > { %3369 = vmatpush1.bf16.msra.mxu1 %v8234_v38  ;;  %v3022_v22 = vsel %vm11718_vm1, %v2915_v23, %v2996_v30  ;;  %7281 = vmatprep.mubr.msk.bf16.mxu1 %vm11729_vm7, %v3123_v29  ;;  %vm7296_vm1 = vmneg %vm11547_vm5  ;;  %v8245_v38 = vld [vmem:[%s11459_s2 + $0xc8] sm:$0xff]   ;;  %v8250_v30 = vld [vmem:[%s11459_s2 + $0xf0] sm:$0xff]  }
 0x425   : > { %v10070_v45 = vrot.slane %v3022_v22, 4  ;;  %3370 = vmatprep.subr.bf16.mxu1 %v11638_v18  ;;  %v8251_v23 = vld [vmem:[%s11459_s2 + $0xf8] sm:$0xff]   ;;  %v8252_v29 = vld [vmem:[%s11459_s2 + $0x100] sm:$0xff]   ;;  %v8253_v22 = vld [vmem:[%s11459_s2 + $0x108] sm:$0xff]  }
 0x427   : > { %v10075_v37 = vsel %vm11547_vm5, %v3034_v46, %v10070_v45  ;;  %v3053_v54 = vsel %vm11547_vm5, %v10070_v45, 0  ;;  %v8243_v46 = vld [vmem:[%s11459_s2 + $0x58] sm:$0xff]  }
 0x428   : > { %3371 = vmatpush1.bf16.msra.mxu1 %v8235_v13  ;;  %v3120_v15 = vrot.slane %v10075_v37, 4  ;;  %v3124_v24 = vrot.slane %v3053_v54, 4  ;;  %v8255_v13 = vld [vmem:[%s11459_s2 + $0x118] sm:$0xff]  }
 0x429   : > { %3372 = vmatprep.subr.bf16.mxu1 %v11638_v18 }
 0x42a   : > { %v3121_v52 = vsel %vm11547_vm5, %v3116_v11, %v3120_v15  ;;  %v3125_v26 = vsel %vm11547_vm5, %v3120_v15, %v3124_v24  ;;  %v8248_v11 = vld [vmem:[%s11459_s2 + $0xe0] sm:$0xff]  }
 0x42b   : > { %3265 = vmatmul.mubr.bf16.gmra.mrb[56].mxu1 %v3121_v52 }
 0x42c   : > { %3373 = vmatpush1.bf16.msra.mxu1 %v8236_v48  ;;  %7282 = vmatprep.mubr.msk.bf16.mxu1 %vm11730_vm10, %v3127_v51  ;;  %vm11732_vm10 = vmmov %vm11729_vm7 }
 0x42d   : > { %3374 = vmatprep.subr.bf16.mxu1 %v11638_v18 }
 0x430   : > { %3375 = vmatpush1.bf16.msra.mxu1 %v8237_v8 }
 0x431   : > { %3376 = vmatprep.subr.bf16.mxu1 %v11638_v18 }
 0x433   : > { %3273 = vmatmul.mubr.bf16.gmra.mrb[60].mxu1 %v3125_v26 }
 0x434   : > { %3377 = vmatpush1.bf16.msra.mxu1 %v8238_v9  ;;  %7295 = vmatprep.mubr.msk.bf16.mxu1 %vm11731_vm13, %v9951_v14  ;;  %v8242_v14 = vld [vmem:[%s11459_s2 + $0x50] sm:$0xff]   ;;  %vm11733_vm13 = vmmov %vm11729_vm7 }
 0x435   : > { %3378 = vmatprep.subr.bf16.mxu1 %v11638_v18 }
 0x438   : > { %3379 = vmatpush1.bf16.msra.mxu1 %v8239_v50 }
 0x439   : > { %3380 = vmatprep.subr.bf16.mxu1 %v11638_v18 }
 0x43c   : > { %3381 = vmatpush1.bf16.msra.mxu1 %v8240_v49 }
 0x43d   : > { %3382 = vmatprep.subr.bf16.mxu1 %v11638_v18 }
 0x440   : > { %3383 = vmatpush1.bf16.msra.mxu1 %v8241_v7 }
 0x441   : > { %3384 = vmatprep.subr.bf16.mxu1 %v11638_v18 }
 0x444   : > { %3385 = vmatpush1.bf16.msra.mxu1 %v8242_v14 }
 0x445   : > { %3386 = vmatprep.subr.bf16.mxu1 %v11638_v18 }
 0x448   : > { %3387 = vmatpush1.bf16.msra.mxu1 %v8243_v46 }
 0x449   : > { %3528 = vmatprep.subr.bf16.mxu1 %v11638_v18 }
 0x44b   : > { %7297 = vmatmul.mubr.msk.bf16.vlgmr.msra.gmra.mrb[48].mxu1 %vm7296_vm1, %v10007_v35  ;;  %v8247_v35 = vld [vmem:[%s11459_s2 + $0xd8] sm:$0xff]   ;;  %vm11734_vm1 = vmmov %vm11729_vm7 }
 0x44c   : > { %7298 = vmatprep.mubr.msk.bf16.mxu1 %vm11729_vm7, %v9959_v19  ;;  %3529 = vmatpush1.bf16.msra.mxu1 %v8244_v0  ;;  %vm11735_vm7 = vmmov %vm11734_vm1 }
 0x44d   : > { %3530 = vmatprep.subr.bf16.mxu1 %v11638_v18 }
 0x450   : > { %3531 = vmatpush1.bf16.msra.mxu1 %v8245_v38 }
 0x451   : > { %3532 = vmatprep.subr.bf16.mxu1 %v11638_v18 }
 0x453   : > { %3405 = vmatmul.mubr.bf16.gmra.mrb[52].mxu1 %v10019_v40 }
 0x454   : > { %7299 = vmatprep.mubr.msk.bf16.mxu1 %vm11732_vm10, %v9977_v42  ;;  %3533 = vmatpush1.bf16.msra.mxu1 %v8246_v12  ;;  %vm11736_vm10 = vmmov %vm11734_vm1 }
 0x455   : > { %3534 = vmatprep.subr.bf16.mxu1 %v11638_v18 }
 0x458   : > { %3535 = vmatpush1.bf16.msra.mxu1 %v8247_v35 }
 0x459   : > { %3536 = vmatprep.subr.bf16.mxu1 %v11638_v18 }
 0x45b   : > { %3413 = vmatmul.mubr.bf16.gmra.mrb[56].mxu1 %v10042_v27 }
 0x45c   : > { %7300 = vmatprep.mubr.msk.bf16.mxu1 %vm11733_vm13, %v9980_v6  ;;  %3537 = vmatpush1.bf16.msra.mxu1 %v8248_v11  ;;  %vm11737_vm13 = vmmov %vm11734_vm1 }
 0x45d   : > { %3538 = vmatprep.subr.bf16.mxu1 %v11638_v18 }
 0x460   : > { %3539 = vmatpush1.bf16.msra.mxu1 %v8249_v20 }
 0x461   : > { %3540 = vmatprep.subr.bf16.mxu1 %v11638_v18 }
 0x463   : > { %3421 = vmatmul.mubr.bf16.gmra.mrb[60].mxu1 %v10075_v37 }
 0x464   : > { %3541 = vmatpush1.bf16.msra.mxu1 %v8250_v30  ;;  %7337 = vmatprep.mubr.msk.bf16.mxu1 %vm11734_vm1, %v9959_v19  ;;  %v8254_v19 = vld [vmem:[%s11459_s2 + $0x110] sm:$0xff]  }
 0x465   : > { %3542 = vmatprep.subr.bf16.mxu1 %v11638_v18 }
 0x468   : > { %3543 = vmatpush1.bf16.msra.mxu1 %v8251_v23 }
 0x469   : > { %3544 = vmatprep.subr.bf16.mxu1 %v11638_v18 }
 0x46c   : > { %3545 = vmatpush1.bf16.msra.mxu1 %v8252_v29 }
 0x46d   : > { %3546 = vmatprep.subr.bf16.mxu1 %v11638_v18 }
 0x470   : > { %3547 = vmatpush1.bf16.msra.mxu1 %v8253_v22 }
 0x471   : > { %3548 = vmatprep.subr.bf16.mxu1 %v11638_v18 }
 0x474   : > { %3549 = vmatpush1.bf16.msra.mxu1 %v8254_v19 }
 0x475   : > { %3550 = vmatprep.subr.bf16.mxu1 %v11638_v18 }
 0x478   : > { %3551 = vmatpush1.bf16.msra.mxu1 %v8255_v13 }
 0x47b   : > { %3561 = vmatmul.mubr.bf16.vlgmr.msra.gmra.mrb[48].mxu1 %v10019_v40 }
 0x47c   : > { %7338 = vmatprep.mubr.msk.bf16.mxu1 %vm11735_vm7, %v9977_v42 }
 0x483   : > { %3569 = vmatmul.mubr.bf16.gmra.mrb[52].mxu1 %v10042_v27 }
 0x484   : > { %7339 = vmatprep.mubr.msk.bf16.mxu1 %vm11736_vm10, %v9980_v6 }
 0x48b   : > { %3577 = vmatmul.mubr.bf16.gmra.mrb[56].mxu1 %v10075_v37 }
 0x48c   : > { %7340 = vmatprep.mubr.msk.bf16.mxu1 %vm11737_vm13, %v10068_v3  ;;  %vm11738_vm13 = vmmov %vm11736_vm10 }
 0x493   : > { %7341 = vmatmul.mubr.msk.bf16.gmra.mrb[60].mxu1 %vm11547_vm5, %v10070_v45  ;;  %vm11741_vm5 = vmmov %vm11736_vm10 }
 0x494   : > { %4157 = vmatprep.mubr.bf16.mxu1 %v11638_v18 }
 0x54e   : > { %v3562_v40 = vpop.f32.mrb[48].mxu1 }
 0x54f   : > { %vm3601_vm1 = vcmp.ge.f32.partialorder %v3562_v40, 0.0  ;;  %v3609_v42 = vmul.f32 0.01, %v3562_v40  ;;  %v3564_v6 = vpop.f32.mrb[49].mxu1 }
 0x550   : > { %v3565_v27 = vpop.f32.mrb[50].mxu1 }
 0x551   : > { %v10200_v3 = vsel %vm3601_vm1, %v3562_v40, %v3609_v42  ;;  %vm3602_vm7 = vcmp.ge.f32.partialorder %v3565_v27, 0.0  ;;  %v3610_v45 = vmul.f32 0.01, %v3565_v27  ;;  %v3567_v37 = vpop.f32.mrb[51].mxu1 }
 0x552   : > { %6917 = vst.msk [vmem:[%s10198_s15] sm:$0xff] %vm11736_vm10, %v10200_v3 }
 0x553   : > { %v10205_v31 = vsel %vm3602_vm7, %v3565_v27, %v3610_v45 }
 0x554   : > { %6918 = vst.msk [vmem:[%s10198_s15 + $0x8] sm:$0xff] %vm11738_vm13, %v10205_v31  ;;  %v3625_v15 = vpack.c.bf16 %v10205_v31, %v10200_v3  ;;  %vm11739_vm13 = vmmov %vm11736_vm10 }
 0x556   : > { %3680 = vrot.lane.b32.xlu0 %v3625_v15, %s8396_s14  ;;  %v3630_v48 = vshrl.u32 %v3625_v15, 16  ;;  %v3570_v52 = vpop.f32.mrb[52].mxu1  ;;  %v3633_v49 = vshll.u32 %v3625_v15, 16 }
 0x557   : > { %vm3603_vm1 = vcmp.ge.f32.partialorder %v3570_v52, 0.0  ;;  %v3611_v51 = vmul.f32 0.01, %v3570_v52  ;;  %v3572_v54 = vpop.f32.mrb[53].mxu1 }
 0x558   : > { %v3632_v8 = vrot.slane %v3630_v48, 7  ;;  %v3573_v24 = vpop.f32.mrb[54].mxu1 }
 0x559   : > { %v10213_v9 = vsel %vm3603_vm1, %v3570_v52, %v3611_v51  ;;  %vm3604_vm7 = vcmp.ge.f32.partialorder %v3573_v24, 0.0  ;;  %v3612_v26 = vmul.f32 0.01, %v3573_v24  ;;  %v3575_v50 = vpop.f32.mrb[55].mxu1 }
 0x55a   : > { %6919 = vst.msk [vmem:[%s10198_s15 + $0x10] sm:$0xff] %vm11736_vm10, %v10213_v9  ;;  %v3635_v46 = vor.u32 %v3633_v49, %v3632_v8 }
 0x55b   : > { %v10218_v7 = vsel %vm3604_vm7, %v3573_v24, %v3612_v26 }
 0x55c   : > { %6920 = vst.msk [vmem:[%s10198_s15 + $0x18] sm:$0xff] %vm11739_vm13, %v10218_v7  ;;  %v3626_v14 = vpack.c.bf16 %v10218_v7, %v10213_v9  ;;  %v3665_v23 = vsel %vm8664_vm12, 0, %v3635_v46  ;;  %vm11740_vm13 = vcmp.ne.s16.totalorder %v9908_v16, 0 }
 0x55d   : > { %v3671_v42 = vsel %vm11740_vm13, %v3665_v23, 0 }
 0x55e   : > { %3682 = vrot.lane.b32.xlu1 %v3626_v14, %s8396_s14  ;;  %v3637_v0 = vshrl.u32 %v3626_v14, 16  ;;  %v3578_v38 = vpop.f32.mrb[56].mxu1  ;;  %v3640_v20 = vshll.u32 %v3626_v14, 16  ;;  %v3693_v48 = vrot.slane %v3671_v42, 1 }
 0x55f   : > { %vm3605_vm1 = vcmp.ge.f32.partialorder %v3578_v38, 0.0  ;;  %v3613_v12 = vmul.f32 0.01, %v3578_v38  ;;  %v3580_v35 = vpop.f32.mrb[57].mxu1 }
 0x560   : > { %v3639_v11 = vrot.slane %v3637_v0, 7  ;;  %v3581_v30 = vpop.f32.mrb[58].mxu1 }
 0x561   : > { %v10228_v29 = vsel %vm3605_vm1, %v3578_v38, %v3613_v12  ;;  %vm3606_vm7 = vcmp.ge.f32.partialorder %v3581_v30, 0.0  ;;  %v3614_v22 = vmul.f32 0.01, %v3581_v30  ;;  %v3583_v19 = vpop.f32.mrb[59].mxu1  ;;  %vm11742_vm1 = vsmask.f32 256 }
 0x562   : > { %v3642_v13 = vor.u32 %v3640_v20, %v3639_v11  ;;  %6921 = vst.msk [vmem:[%s10198_s15 + $0x20] sm:$0xff] %vm11736_vm10, %v10228_v29 }
 0x563   : > { %v10233_v40 = vsel %vm3606_vm7, %v3581_v30, %v3614_v22 }
 0x564   : > { %6922 = vst.msk [vmem:[%s10198_s15 + $0x28] sm:$0xff] %vm11741_vm5, %v10233_v40  ;;  %v3627_v6 = vpack.c.bf16 %v10233_v40, %v10228_v29  ;;  %v3643_v27 = vsel %vm11742_vm1, %v3632_v8, %v3642_v13  ;;  %vm11744_vm5 = vcmask 1046528  }
 0x565   : > { %v3672_v45 = vsel %vm11743_vm0, %v3643_v27, 0  ;;  %vm11745_vm0 = vcmask 523264  }
 0x566   : > { %3684 = vrot.lane.b32.xlu0 %v3627_v6, %s8396_s14  ;;  %v3645_v37 = vshrl.u32 %v3627_v6, 16  ;;  %v3586_v15 = vpop.f32.mrb[60].mxu1  ;;  %v3694_v52 = vrot.slane %v3672_v45, 1  ;;  %v3648_v26 = vshll.u32 %v3627_v6, 16  ;;  %vm11746_vm13 = vmmov %vm11745_vm0 }
 0x567   : > { %vm3607_vm7 = vcmp.ge.f32.partialorder %v3586_v15, 0.0  ;;  %v3615_v51 = vmul.f32 0.01, %v3586_v15  ;;  %v3588_v54 = vpop.f32.mrb[61].mxu1 }
 0x568   : > { %v3647_v24 = vrot.slane %v3645_v37, 7  ;;  %v3589_v50 = vpop.f32.mrb[62].mxu1  ;;  %v3695_v49 = vsel %vm11744_vm5, %v3693_v48, %v3694_v52 }
 0x569   : > { %v10247_v8 = vsel %vm3607_vm7, %v3586_v15, %v3615_v51  ;;  %vm3608_vm10 = vcmp.ge.f32.partialorder %v3589_v50, 0.0  ;;  %v3616_v14 = vmul.f32 0.01, %v3589_v50  ;;  %v3591_v46 = vpop.f32.mrb[63].mxu1  ;;  %3732 = vmatprep.subr.bf16.mxu0 %v3695_v49  ;;  %4125 = vmatprep.subr.bf16.mxu1 %v3695_v49  ;;  %vm11747_vm7 = vcmp.ne.s16.totalorder %v9936_v25, 0 }
 0x56a   : > { %v3650_v0 = vor.u32 %v3648_v26, %v3647_v24  ;;  %6923 = vst.msk [vmem:[%s10198_s15 + $0x30] sm:$0xff] %vm11745_vm0, %v10247_v8  ;;  %vm11749_vm0 = vmmov %vm11742_vm1  ;;  %v3668_v46 = vsel %vm10003_vm2, %v3643_v27, 0 }
 0x56b   : > { %v10252_v38 = vsel %vm3608_vm10, %v3589_v50, %v3616_v14  ;;  %vm11748_vm10 = vcmp.ne.s16.totalorder %v9796_v57, 0 }
 0x56c   : > { %6924 = vst.msk [vmem:[%s10198_s15 + $0x38] sm:$0xff] %vm11746_vm13, %v10252_v38  ;;  %v3628_v12 = vpack.c.bf16 %v10252_v38, %v10247_v8  ;;  %v3651_v35 = vsel %vm11742_vm1, %v3639_v11, %v3650_v0  ;;  %vm11750_vm13 = vcmp.ne.s16.totalorder %v9801_v36, 0  ;;  %vm11751_vm1 = vmmov %vm11744_vm5 }
 0x56d   : > { %v3673_v20 = vsel %vm11747_vm7, %v3651_v35, 0  ;;  %vm11752_vm7 = vmmov %vm11751_vm1 }
 0x56e   : > { %3686 = vrot.lane.b32.xlu1 %v3628_v12, %s8396_s14  ;;  %v3653_v30 = vshrl.u32 %v3628_v12, 16  ;;  %v3696_v22 = vrot.slane %v3673_v20, 1  ;;  %v3656_v13 = vshll.u32 %v3628_v12, 16 }
 0x570   : > { %v3655_v19 = vrot.slane %v3653_v30, 7  ;;  %v3697_v42 = vsel %vm11744_vm5, %v3694_v52, %v3696_v22  ;;  %v3667_v52 = vsel %vm9991_vm14, %v3665_v23, 0  ;;  %vm11753_vm5 = vcmask 523264  }
 0x571   : > { %v3669_v23 = vsel %vm10023_vm15, %v3651_v35, 0  ;;  %v8258_v35 = vld [vmem:[%s11465_s8 + $0x10] sm:$0xff]  }
 0x572   : > { %v3658_v6 = vor.u32 %v3656_v13, %v3655_v19  ;;  %v3666_v45 = vsel %vm8664_vm12, %v3655_v19, 0  ;;  %v8256_v19 = vld [vmem:[%s11465_s8] sm:$0xff]   ;;  %v8257_v13 = vld [vmem:[%s11465_s8 + $0x8] sm:$0xff]  }
 0x573   : > { %v3675_v37 = vsel %vm11748_vm10, %v3666_v45, 0  ;;  %vm11754_vm10 = vmmov %vm11753_vm5  ;;  %v8262_v45 = vld [vmem:[%s11460_s3 + $0x78] sm:$0xff]  }
 0x574   : > { %v3659_v11 = vsel %vm11749_vm0, %v3647_v24, %v3658_v6  ;;  %v3700_v51 = vrot.slane %v3675_v37, 1  ;;  %vm11755_vm0 = vmmov %vm11753_vm5  ;;  %v8261_v6 = vld [vmem:[%s11460_s3 + $0x70] sm:$0xff]   ;;  %v8263_v37 = vld [vmem:[%s11460_s3 + $0x80] sm:$0xff]  }
 0x575   : > { %v3674_v15 = vsel %vm11750_vm13, %v3659_v11, 0  ;;  %v3670_v27 = vsel %vm10051_vm6, %v3659_v11, 0  ;;  %vm11756_vm13 = vmmov %vm11755_vm0  ;;  %v8264_v11 = vld [vmem:[%s11460_s3 + $0x88] sm:$0xff]  }
 0x576   : > { %v3698_v48 = vrot.slane %v3674_v15, 1  ;;  %v8265_v15 = vld [vmem:[%s11460_s3 + $0x90] sm:$0xff]  }
 0x578   : > { %v3699_v54 = vsel %vm11751_vm1, %v3696_v22, %v3698_v48  ;;  %v3701_v26 = vsel %vm11752_vm7, %v3698_v48, %v3700_v51  ;;  %vm11757_vm1 = vmmov %vm11755_vm0  ;;  %v8266_v48 = vld [vmem:[%s11460_s3 + $0x98] sm:$0xff]   ;;  %v8267_v51 = vld [vmem:[%s11460_s3 + $0xa0] sm:$0xff]  }
 0x579   : > { %vm11758_vm7 = vmmov %vm11755_vm0 }
 0x5c8   : > { %v3681_v50 = vpop.permute.xlu0 %3680 }
 0x5c9   : > { %v3708_v14 = vsel %vm11753_vm5, %v3667_v52, %v3681_v50  ;;  %vm11759_vm5 = vmmov %vm11755_vm0  ;;  %v8270_v50 = vld [vmem:[%s11460_s3 + $0xb8] sm:$0xff]  }
 0x5ca   : > { %3733 = vmatpush1.bf16.msra.mxu0 %v3708_v14  ;;  %4126 = vmatpush1.bf16.msra.mxu1 %v3708_v14 }
 0x5cb   : > { %3734 = vmatprep.subr.bf16.mxu0 %v3697_v42  ;;  %4127 = vmatprep.subr.bf16.mxu1 %v3697_v42 }
 0x5d0   : > { %v3683_v24 = vpop.permute.xlu1 %3682 }
 0x5d1   : > { %v3712_v0 = vsel %vm11754_vm10, %v3668_v46, %v3683_v24  ;;  %vm11760_vm10 = vmmov %vm11755_vm0 }
 0x5d2   : > { %3735 = vmatpush1.bf16.msra.mxu0 %v3712_v0  ;;  %4128 = vmatpush1.bf16.msra.mxu1 %v3712_v0 }
 0x5d3   : > { %3736 = vmatprep.subr.bf16.mxu0 %v3699_v54  ;;  %4129 = vmatprep.subr.bf16.mxu1 %v3699_v54 }
 0x5d8   : > { %v3685_v12 = vpop.permute.xlu0 %3684 }
 0x5d9   : > { %v3716_v20 = vsel %vm11755_vm0, %v3669_v23, %v3685_v12 }
 0x5da   : > { %3737 = vmatpush1.bf16.msra.mxu0 %v3716_v20  ;;  %4130 = vmatpush1.bf16.msra.mxu1 %v3716_v20 }
 0x5db   : > { %3738 = vmatprep.subr.bf16.mxu0 %v3701_v26  ;;  %4131 = vmatprep.subr.bf16.mxu1 %v3701_v26 }
 0x5e0   : > { %v3687_v30 = vpop.permute.xlu1 %3686 }
 0x5e1   : > { %v3720_v22 = vsel %vm11756_vm13, %v3670_v27, %v3687_v30  ;;  %vm11761_vm13 = vmmov %vm11755_vm0 }
 0x5e2   : > { %3739 = vmatpush1.bf16.msra.mxu0 %v3720_v22  ;;  %4132 = vmatpush1.bf16.msra.mxu1 %v3720_v22 }
 0x5e3   : > { %3812 = vmatprep.subr.bf16.mxu0 %v3695_v49  ;;  %v8259_v49 = vld [vmem:[%s11460_s3 + $0x60] sm:$0xff]  }
 0x5e5   : > { %7343 = vmatmul.mubr.msk.bf16.vlgmr.msra.gmra.mrb[32].mxu0 %vm11757_vm1, %v8256_v19  ;;  %7401 = vmatmul.mubr.msk.bf16.vlgmr.msra.gmra.mrb[64].mxu1 %vm11758_vm7, %v8258_v35 }
 0x5e6   : > { %3813 = vmatpush1.bf16.msra.mxu0 %v3708_v14  ;;  %3844 = vmatprep.mubr.bf16.mxu0 %v11638_v18 }
 0x5e7   : > { %3814 = vmatprep.subr.bf16.mxu0 %v3697_v42  ;;  %v8260_v42 = vld [vmem:[%s11460_s3 + $0x68] sm:$0xff]  }
 0x5ea   : > { %3815 = vmatpush1.bf16.msra.mxu0 %v3712_v0 }
 0x5eb   : > { %3816 = vmatprep.subr.bf16.mxu0 %v3699_v54  ;;  %v8268_v54 = vld [vmem:[%s11460_s3 + $0xa8] sm:$0xff]  }
 0x5ee   : > { %3817 = vmatpush1.bf16.msra.mxu0 %v3716_v20 }
 0x5ef   : > { %3818 = vmatprep.subr.bf16.mxu0 %v3701_v26  ;;  %v8269_v26 = vld [vmem:[%s11460_s3 + $0xb0] sm:$0xff]  }
 0x5f2   : > { %3819 = vmatpush1.bf16.msra.mxu0 %v3720_v22 }
 0x5f3   : > { %3957 = vmatprep.subr.bf16.mxu0 %v11638_v18 }
 0x5f5   : > { %7347 = vmatmul.mubr.msk.bf16.vlgmr.msra.gmra.mrb[36].mxu0 %vm11759_vm5, %v8257_v13 }
 0x5f6   : > { %3958 = vmatpush1.bf16.msra.mxu0 %v8259_v49 }
 0x5f7   : > { %3959 = vmatprep.subr.bf16.mxu0 %v11638_v18 }
 0x5fa   : > { %3960 = vmatpush1.bf16.msra.mxu0 %v8260_v42 }
 0x5fb   : > { %3961 = vmatprep.subr.bf16.mxu0 %v11638_v18 }
 0x5fe   : > { %3962 = vmatpush1.bf16.msra.mxu0 %v8261_v6 }
 0x5ff   : > { %3963 = vmatprep.subr.bf16.mxu0 %v11638_v18 }
 0x602   : > { %3964 = vmatpush1.bf16.msra.mxu0 %v8262_v45 }
 0x603   : > { %3965 = vmatprep.subr.bf16.mxu0 %v11638_v18 }
 0x606   : > { %3966 = vmatpush1.bf16.msra.mxu0 %v8263_v37  ;;  %v8271_v37 = vld [vmem:[%s11460_s3] sm:$0xff]  }
 0x607   : > { %3967 = vmatprep.subr.bf16.mxu0 %v11638_v18 }
 0x60a   : > { %3968 = vmatpush1.bf16.msra.mxu0 %v8264_v11  ;;  %v8272_v11 = vld [vmem:[%s11460_s3 + $0x8] sm:$0xff]  }
 0x60b   : > { %3969 = vmatprep.subr.bf16.mxu0 %v11638_v18 }
 0x60e   : > { %3970 = vmatpush1.bf16.msra.mxu0 %v8265_v15  ;;  %v8273_v15 = vld [vmem:[%s11460_s3 + $0x10] sm:$0xff]  }
 0x60f   : > { %3971 = vmatprep.subr.bf16.mxu0 %v11638_v18 }
 0x612   : > { %3972 = vmatpush1.bf16.msra.mxu0 %v8266_v48  ;;  %v8274_v48 = vld [vmem:[%s11460_s3 + $0x18] sm:$0xff]  }
 0x613   : > { %3973 = vmatprep.subr.bf16.mxu0 %v11638_v18 }
 0x616   : > { %3974 = vmatpush1.bf16.msra.mxu0 %v8267_v51  ;;  %v8275_v51 = vld [vmem:[%s11460_s3 + $0x20] sm:$0xff]  }
 0x617   : > { %3975 = vmatprep.subr.bf16.mxu0 %v11638_v18 }
 0x61a   : > { %3976 = vmatpush1.bf16.msra.mxu0 %v8268_v54  ;;  %v8276_v54 = vld [vmem:[%s11460_s3 + $0x28] sm:$0xff]  }
 0x61b   : > { %3977 = vmatprep.subr.bf16.mxu0 %v11638_v18 }
 0x61e   : > { %3978 = vmatpush1.bf16.msra.mxu0 %v8269_v26  ;;  %v8277_v26 = vld [vmem:[%s11460_s3 + $0x30] sm:$0xff]  }
 0x61f   : > { %3979 = vmatprep.subr.bf16.mxu0 %v11638_v18 }
 0x622   : > { %3980 = vmatpush1.bf16.msra.mxu0 %v8270_v50  ;;  %v8278_v50 = vld [vmem:[%s11460_s3 + $0x38] sm:$0xff]  }
 0x623   : > { %4073 = vmatprep.subr.bf16.mxu0 %v11638_v18 }
 0x6b8   : > { %v3766_v52 = vpop.f32.mrb[32].mxu0  ;;  %v10347_v14 = vpop.f32.mrb[64].mxu1 }
 0x6b9   : > { %v3768_v24 = vpop.f32.mrb[33].mxu0  ;;  %v4161_v46 = vpop.f32.mrb[65].mxu1 }
 0x6ba   : > { %v3770_v0 = vpop.f32.mrb[34].mxu0  ;;  %v10349_v12 = vpop.f32.mrb[66].mxu1 }
 0x6bb   : > { %v3775_v23 = vpack.c.bf16 %v3770_v0, %v3766_v52  ;;  %v3772_v20 = vpop.f32.mrb[35].mxu0  ;;  %v4168_v30 = vpack.c.bf16 %v10349_v12, %v10347_v14  ;;  %v4165_v27 = vpop.f32.mrb[67].mxu1  ;;  %v8279_v52 = vld [vmem:[%s11460_s3 + $0x40] sm:$0xff]   ;;  %v8282_v0 = vld [vmem:[%s11460_s3 + $0x58] sm:$0xff]   ;;  %v8298_v14 = vld [vmem:[%s11461_s4 + $0x48] sm:$0xff]  }
 0x6bc   : > { %v3776_v22 = vpack.c.bf16 %v3772_v20, %v3768_v24  ;;  %v4169_v19 = vpack.c.bf16 %v4165_v27, %v4161_v46  ;;  %v8280_v24 = vld [vmem:[%s11460_s3 + $0x48] sm:$0xff]   ;;  %v8281_v46 = vld [vmem:[%s11460_s3 + $0x50] sm:$0xff]   ;;  %v8283_v20 = vld [vmem:[%s11460_s3 + $0xc0] sm:$0xff]  }
 0x6bd   : > { %v8284_v27 = vld [vmem:[%s11460_s3 + $0xc8] sm:$0xff]  }
 0x6c8   : > { %v3846_v35 = vpop.f32.mrb[36].mxu0 }
 0x6c9   : > { %v3848_v13 = vpop.f32.mrb[37].mxu0 }
 0x6ca   : > { %v3850_v49 = vpop.f32.mrb[38].mxu0 }
 0x6cb   : > { %v3855_v42 = vpack.c.bf16 %v3850_v49, %v3846_v35  ;;  %v3852_v6 = vpop.f32.mrb[39].mxu0  ;;  %v8288_v35 = vld [vmem:[%s11460_s3 + $0xe8] sm:$0xff]   ;;  %v8290_v49 = vld [vmem:[%s11460_s3 + $0xf8] sm:$0xff]  }
 0x6cc   : > { %v3856_v45 = vpack.c.bf16 %v3852_v6, %v3848_v13  ;;  %v8289_v13 = vld [vmem:[%s11460_s3 + $0xf0] sm:$0xff]   ;;  %v8292_v6 = vld [vmem:[%s11460_s3 + $0x108] sm:$0xff]  }
 0x6ce   : > { %7384 = vmatprep.mubr.msk.bf16.mxu0 %vm11760_vm10, %v3856_v45  ;;  %v8293_v45 = vld [vmem:[%s11460_s3 + $0x110] sm:$0xff]  }
 0x6cf   : > { %3990 = vmatmul.mubr.bf16.vlgmr.msra.gmra.mrb[40].mxu0 %v3855_v42  ;;  %v8291_v42 = vld [vmem:[%s11460_s3 + $0x100] sm:$0xff]  }
 0x6d0   : > { %4074 = vmatpush1.bf16.msra.mxu0 %v8271_v37  ;;  %7397 = vmatprep.mubr.msk.bf16.mxu0 %vm11755_vm0, %v3776_v22  ;;  %v8285_v22 = vld [vmem:[%s11460_s3 + $0xd0] sm:$0xff]   ;;  %v8294_v37 = vld [vmem:[%s11460_s3 + $0x118] sm:$0xff]  }
 0x6d1   : > { %4075 = vmatprep.subr.bf16.mxu0 %v11638_v18 }
 0x6d4   : > { %4076 = vmatpush1.bf16.msra.mxu0 %v8272_v11  ;;  %v4335_v11 = vand.u32 3, %v8481_v1  ;;  %v8296_v1 = vld [vmem:[%s11461_s4 + $0x38] sm:$0xff]  }
 0x6d5   : > { %4077 = vmatprep.subr.bf16.mxu0 %v11638_v18 }
 0x6d6   : > { %vm4355_vm1 = vcmp.ge.s32.totalorder %v4335_v11, 1  ;;  %vm4370_vm0 = vcmp.le.s32.totalorder %v4335_v11, 2 }
 0x6d7   : > { %vm4361_vm5 = vmpackc.low %vm4355_vm1, %vm4355_vm1 }
 0x6d8   : > { %4078 = vmatpush1.bf16.msra.mxu0 %v8273_v15  ;;  %v4342_v15 = vand.u32 3, %v8492_v2  ;;  %vm4376_vm1 = vmpackc.low %vm4370_vm0, %vm4370_vm0  ;;  %v8297_v2 = vld [vmem:[%s11461_s4 + $0x40] sm:$0xff]  }
 0x6d9   : > { %4079 = vmatprep.subr.bf16.mxu0 %v11638_v18  ;;  %v4378_v12 = vsel %vm4376_vm1, 65537, %v11638_v18 }
 0x6da   : > { %vm4356_vm7 = vcmp.ge.s32.totalorder %v4342_v15, 1 }
 0x6db   : > { %vm4362_vm10 = vmpackc.low %vm4356_vm7, %vm4356_vm7 }
 0x6dc   : > { %4080 = vmatpush1.bf16.msra.mxu0 %v8274_v48  ;;  %v4363_v48 = vsel %vm4361_vm5, 65537, %v11638_v18 }
 0x6dd   : > { %4081 = vmatprep.subr.bf16.mxu0 %v11638_v18 }
 0x6e0   : > { %4082 = vmatpush1.bf16.msra.mxu0 %v8275_v51  ;;  %v4364_v51 = vsel %vm4362_vm10, 65537, %v11638_v18 }
 0x6e1   : > { %4083 = vmatprep.subr.bf16.mxu0 %v11638_v18 }
 0x6e4   : > { %4084 = vmatpush1.bf16.msra.mxu0 %v8276_v54  ;;  %v7439_v54 = vcombine.low %v4363_v48, %v4364_v51 }
 0x6e5   : > { %4085 = vmatprep.subr.bf16.mxu0 %v11638_v18 }
 0x6e6   : > { %vm4368_vm1 = vcmp.ne.s16.totalorder %v7439_v54, 0 }
 0x6e8   : > { %4086 = vmatpush1.bf16.msra.mxu0 %v8277_v26  ;;  %v8295_v26 = vld [vmem:[%s11461_s4 + $0x30] sm:$0xff]  }
 0x6e9   : > { %4087 = vmatprep.subr.bf16.mxu0 %v11638_v18 }
 0x6ec   : > { %4088 = vmatpush1.bf16.msra.mxu0 %v8278_v50  ;;  %v8398_v50 = vmov 0.0  }
 0x6ed   : > { %4089 = vmatprep.subr.bf16.mxu0 %v11638_v18  ;;  %7792 = vmatprep.subr.bf16.mxu1 %v8398_v50 }
 0x6ee   : > { %7793 = vmatpush3.bf16.msra.mxu1 %v8295_v26 }
 0x6ef   : > { %7794 = vmatprep.subr.bf16.mxu1 %v8398_v50 }
 0x6f0   : > { %4090 = vmatpush1.bf16.msra.mxu0 %v8279_v52 }
 0x6f1   : > { %4091 = vmatprep.subr.bf16.mxu0 %v11638_v18 }
 0x6f2   : > { %7795 = vmatpush3.bf16.msra.mxu1 %v8296_v1 }
 0x6f3   : > { %7796 = vmatprep.subr.bf16.mxu1 %v8398_v50 }
 0x6f4   : > { %4092 = vmatpush1.bf16.msra.mxu0 %v8280_v24 }
 0x6f5   : > { %4093 = vmatprep.subr.bf16.mxu0 %v11638_v18 }
 0x6f6   : > { %7797 = vmatpush3.bf16.msra.mxu1 %v8297_v2 }
 0x6f7   : > { %7798 = vmatprep.subr.bf16.mxu1 %v8398_v50 }
 0x6f8   : > { %4094 = vmatpush1.bf16.msra.mxu0 %v8281_v46 }
 0x6f9   : > { %4095 = vmatprep.subr.bf16.mxu0 %v11638_v18 }
 0x6fa   : > { %7799 = vmatpush3.bf16.msra.mxu1 %v8298_v14 }
 0x6fb   : > { %7800 = vmatprep.subr.bf16.mxu1 %v8398_v50 }
 0x6fc   : > { %4096 = vmatpush1.bf16.msra.mxu0 %v8282_v0  ;;  %v8299_v0 = vld [vmem:[%s11461_s4 + $0x50] sm:$0xff]  }
 0x6fd   : > { %4270 = vmatprep.subr.bf16.mxu0 %v11638_v18 }
 0x6fe   : > { %7801 = vmatpush3.bf16.msra.mxu1 %v8299_v0 }
 0x6ff   : > { %4106 = vmatmul.mubr.bf16.vlgmr.msra.gmra.mrb[40].mxu0 %v3775_v23  ;;  %v8286_v23 = vld [vmem:[%s11460_s3 + $0xd8] sm:$0xff]   ;;  %7802 = vmatprep.subr.bf16.mxu1 %v8398_v50 }
 0x700   : > { %4271 = vmatpush1.bf16.msra.mxu0 %v8283_v20  ;;  %7438 = vmatprep.mubr.msk.bf16.mxu0 %vm11761_vm13, %v4169_v19  ;;  %v8287_v19 = vld [vmem:[%s11460_s3 + $0xe0] sm:$0xff]   ;;  %vm4371_vm13 = vcmp.le.s32.totalorder %v4342_v15, 2 }
 0x701   : > { %4272 = vmatprep.subr.bf16.mxu0 %v11638_v18  ;;  %vm4377_vm7 = vmpackc.low %vm4371_vm13, %vm4371_vm13  ;;  %vm11548_vm13 = vmmov 0  }
 0x702   : > { %7804 = vmatprep.mubr.msk.bf16.mxu1 %vm11548_vm13, %v8398_v50  ;;  %vm11763_vm13 = vcmask 523264  }
 0x704   : > { %4273 = vmatpush1.bf16.msra.mxu0 %v8284_v27 }
 0x705   : > { %4274 = vmatprep.subr.bf16.mxu0 %v11638_v18 }
 0x708   : > { %4275 = vmatpush1.bf16.msra.mxu0 %v8285_v22 }
 0x709   : > { %4276 = vmatprep.subr.bf16.mxu0 %v11638_v18 }
 0x70c   : > { %4277 = vmatpush1.bf16.msra.mxu0 %v8286_v23 }
 0x70d   : > { %4278 = vmatprep.subr.bf16.mxu0 %v11638_v18 }
 0x710   : > { %4279 = vmatpush1.bf16.msra.mxu0 %v8287_v19 }
 0x711   : > { %4280 = vmatprep.subr.bf16.mxu0 %v11638_v18 }
 0x714   : > { %4281 = vmatpush1.bf16.msra.mxu0 %v8288_v35 }
 0x715   : > { %4282 = vmatprep.subr.bf16.mxu0 %v11638_v18 }
 0x718   : > { %4283 = vmatpush1.bf16.msra.mxu0 %v8289_v13 }
 0x719   : > { %4284 = vmatprep.subr.bf16.mxu0 %v11638_v18 }
 0x71c   : > { %4285 = vmatpush1.bf16.msra.mxu0 %v8290_v49 }
 0x71d   : > { %4286 = vmatprep.subr.bf16.mxu0 %v11638_v18 }
 0x720   : > { %4287 = vmatpush1.bf16.msra.mxu0 %v8291_v42  ;;  %v8300_v42 = vld [vmem:[%s11461_s4 + $0x58] sm:$0xff]  }
 0x721   : > { %4288 = vmatprep.subr.bf16.mxu0 %v11638_v18  ;;  %7803 = vmatpush3.bf16.msra.mxu1 %v8300_v42  ;;  %v8305_v42 = vld [vmem:[%s11461_s4 + $0x20] sm:$0xff]  }
 0x722   : > { %7808 = vmatprep.subr.bf16.mxu1 %v8398_v50 }
 0x724   : > { %4289 = vmatpush1.bf16.msra.mxu0 %v8292_v6 }
 0x725   : > { %4290 = vmatprep.subr.bf16.mxu0 %v11638_v18 }
 0x728   : > { %4291 = vmatpush1.bf16.msra.mxu0 %v8293_v45 }
 0x729   : > { %4292 = vmatprep.subr.bf16.mxu0 %v11638_v18 }
 0x72c   : > { %4293 = vmatpush1.bf16.msra.mxu0 %v8294_v37 }
 0x72f   : > { %4303 = vmatmul.mubr.bf16.vlgmr.msra.gmra.mrb[40].mxu0 %v4168_v30  ;;  %v4379_v30 = vsel %vm4377_vm7, 65537, %v11638_v18  ;;  %vm11762_vm7 = vcmask 1046528  }
 0x730   : > { %v7440_v27 = vcombine.low %v4378_v12, %v4379_v30 }
 0x732   : > { %v4383_v49 = vrot.slane %v7440_v27, 7 }
 0x734   : > { %vm4384_vm0 = vcmp.ne.s16.totalorder %v4383_v49, 0  ;;  %v8304_v49 = vld [vmem:[%s11461_s4 + $0x18] sm:$0xff]  }
 0x802   : > { %v4304_v52 = vpop.f32.mrb[40].mxu0 }
 0x803   : > { %v4315_v24 = vmul.f32 0.01, %v4304_v52  ;;  %v4306_v46 = vpop.f32.mrb[41].mxu0  ;;  %vm4313_vm5 = vcmp.ge.f32.partialorder %v4304_v52, 0.0 }
 0x804   : > { %v4307_v20 = vpop.f32.mrb[42].mxu0 }
 0x805   : > { %vm4314_vm10 = vcmp.ge.f32.partialorder %v4307_v20, 0.0  ;;  %v4316_v22 = vmul.f32 0.01, %v4307_v20  ;;  %v4309_v23 = vpop.f32.mrb[43].mxu0  ;;  %v4317_v19 = vsel %vm4313_vm5, %v4304_v52, %v4315_v24  ;;  %vm11552_vm5 = vcmask 261120  }
 0x806   : > { %v8301_v23 = vld [vmem:[%s11461_s4] sm:$0xff]  }
 0x807   : > { %v4318_v35 = vsel %vm4314_vm10, %v4307_v20, %v4316_v22  ;;  %vm4405_vm10 = vcmask 1041408  }
 0x808   : > { %v4319_v13 = vpack.c.bf16 %v4318_v35, %v4317_v19  ;;  %v8302_v35 = vld [vmem:[%s11461_s4 + $0x8] sm:$0xff]  }
 0x80a   : > { %4388 = vrot.lane.b32.xlu0 %v4319_v13, %s8399_s22  ;;  %v4321_v6 = vshrl.u32 %v4319_v13, 16  ;;  %v4324_v37 = vshll.u32 %v4319_v13, 16  ;;  %v8303_v13 = vld [vmem:[%s11461_s4 + $0x10] sm:$0xff]  }
 0x80c   : > { %v4323_v45 = vrot.slane %v4321_v6, 7  ;;  %v8306_v6 = vld [vmem:[%s11461_s4 + $0x28] sm:$0xff]  }
 0x80e   : > { %v4326_v11 = vor.u32 %v4324_v37, %v4323_v45  ;;  %v4330_v15 = vsel %vm8664_vm12, %v4323_v45, 0  ;;  %v8307_v45 = vld [vmem:[%s11461_s4 + $0x60] sm:$0xff]   ;;  %v8308_v37 = vld [vmem:[%s11461_s4 + $0x68] sm:$0xff]  }
 0x80f   : > { %v4386_v48 = vsel %vm4384_vm0, %v4330_v15, 0  ;;  %v8310_v15 = vld [vmem:[%s11461_s4 + $0x78] sm:$0xff]  }
 0x810   : > { %v4329_v51 = vsel %vm8664_vm12, 0, %v4326_v11  ;;  %v4393_v14 = vrot.slane %v4386_v48, 1  ;;  %v8309_v11 = vld [vmem:[%s11461_s4 + $0x70] sm:$0xff]   ;;  %v8311_v48 = vld [vmem:[%s11461_s4 + $0x80] sm:$0xff]  }
 0x811   : > { %v4385_v26 = vsel %vm4384_vm0, %v4329_v51, 0  ;;  %v4369_v1 = vsel %vm4368_vm1, %v4329_v51, 0  ;;  %vm11551_vm0 = vcmask 785408   ;;  %v8312_v51 = vld [vmem:[%s11461_s4 + $0x88] sm:$0xff]   ;;  %vm4733_vm1 = vcmask 130048  }
 0x812   : > { %v4392_v2 = vrot.slane %v4385_v26, 1 }
 0x814   : > { %v4394_v12 = vsel %vm11762_vm7, %v4392_v2, %v4393_v14  ;;  %v8313_v14 = vld [vmem:[%s11466_s9] sm:$0xff]  }
 0x815   : > { %4395 = vrot.lane.b32.xlu1 %v4394_v12, %s8396_s14 }
 0x87c   : > { %v4389_v30 = vpop.permute.xlu0 %4388 }
 0x87d   : > { %v4400_v52 = vsel %vm11552_vm5, %v4369_v1, %v4389_v30 }
 0x887   : > { %v4396_v24 = vpop.permute.xlu1 %4395 }
 0x888   : > { %v4402_v54 = vsel %vm11763_vm13, %v4400_v52, %v4396_v24  ;;  %vm11764_vm13 = vmmov 0  }
 0x889   : > { %v4404_v46 = vrot.slane %v4402_v54, 6 }
 0x88b   : > { %v4407_v0 = vsel %vm4405_vm10, 0, %v4404_v46  ;;  %v4408_v20 = vsel %vm4405_vm10, %v4404_v46, 0 }
 0x88c   : > { %v4437_v27 = vrot.slane %v4407_v0, 2  ;;  %v4438_v22 = vrot.slane %v4408_v20, 2  ;;  %v4613_v26 = vrot.slane %v4407_v0, 4  ;;  %v4614_v1 = vrot.slane %v4408_v20, 4 }
 0x88e   : > { %v4439_v19 = vsel %vm4436_vm3, %v4437_v27, %v4438_v22  ;;  %vm11765_vm3 = vcmask 1043456   ;;  %v8314_v27 = vld [vmem:[%s11466_s9 + $0x8] sm:$0xff]   ;;  %v8315_v22 = vld [vmem:[%s11466_s9 + $0x10] sm:$0xff]  }
 0x88f   : > { %7805 = vmatmul.mubr.msk.bf16.vlgmr.msra.gmra.mrb[68].mxu1 %vm11551_vm0, %v4439_v19  ;;  %v4615_v2 = vsel %vm11765_vm3, %v4613_v26, %v4614_v1  ;;  %v8317_v19 = vld [vmem:[%s11462_s5 + $0x30] sm:$0xff]   ;;  %vm11767_vm3 = vcmp.ne.s16.totalorder %v9916_v4, 0 }
 0x890   : > { %7809 = vmatpush3.bf16.msra.mxu1 %v8301_v23  ;;  %7820 = vmatprep.mubr.msk.bf16.mxu1 %vm11764_vm13, %v8398_v50  ;;  %v8316_v23 = vld [vmem:[%s11466_s9 + $0x18] sm:$0xff]  }
 0x891   : > { %7810 = vmatprep.subr.bf16.mxu1 %v8398_v50 }
 0x894   : > { %7811 = vmatpush3.bf16.msra.mxu1 %v8302_v35  ;;  %v8318_v35 = vld [vmem:[%s11462_s5 + $0x38] sm:$0xff]  }
 0x895   : > { %7812 = vmatprep.subr.bf16.mxu1 %v8398_v50 }
 0x898   : > { %7813 = vmatpush3.bf16.msra.mxu1 %v8303_v13 }
 0x899   : > { %7814 = vmatprep.subr.bf16.mxu1 %v8398_v50 }
 0x89c   : > { %7815 = vmatpush3.bf16.msra.mxu1 %v8304_v49 }
 0x89d   : > { %7816 = vmatprep.subr.bf16.mxu1 %v8398_v50 }
 0x8a0   : > { %7817 = vmatpush3.bf16.msra.mxu1 %v8305_v42  ;;  %v8319_v42 = vld [vmem:[%s11462_s5 + $0x40] sm:$0xff]  }
 0x8a1   : > { %7818 = vmatprep.subr.bf16.mxu1 %v8398_v50 }
 0x8a4   : > { %7819 = vmatpush3.bf16.msra.mxu1 %v8306_v6 }
 0x8a5   : > { %7824 = vmatprep.subr.bf16.mxu1 %v8398_v50 }
 0x8a7   : > { %7821 = vmatmul.mubr.msk.bf16.vlgmr.msra.gmra.mrb[68].mxu1 %vm11551_vm0, %v4407_v0 }
 0x8a8   : > { %7825 = vmatpush3.bf16.msra.mxu1 %v8307_v45  ;;  %7836 = vmatprep.mubr.msk.bf16.mxu1 %vm11764_vm13, %v8398_v50  ;;  %vm11766_vm13 = vsmask.f32 256 }
 0x8a9   : > { %7826 = vmatprep.subr.bf16.mxu1 %v8398_v50 }
 0x8ac   : > { %7827 = vmatpush3.bf16.msra.mxu1 %v8308_v37 }
 0x8ad   : > { %7828 = vmatprep.subr.bf16.mxu1 %v8398_v50 }
 0x8b0   : > { %7829 = vmatpush3.bf16.msra.mxu1 %v8309_v11 }
 0x8b1   : > { %7830 = vmatprep.subr.bf16.mxu1 %v8398_v50 }
 0x8b4   : > { %7831 = vmatpush3.bf16.msra.mxu1 %v8310_v15 }
 0x8b5   : > { %7832 = vmatprep.subr.bf16.mxu1 %v8398_v50 }
 0x8b8   : > { %7833 = vmatpush3.bf16.msra.mxu1 %v8311_v48 }
 0x8b9   : > { %7834 = vmatprep.subr.bf16.mxu1 %v8398_v50 }
 0x8bc   : > { %7835 = vmatpush3.bf16.msra.mxu1 %v8312_v51  ;;  %v8320_v51 = vld [vmem:[%s11462_s5 + $0x48] sm:$0xff]  }
 0x8bf   : > { %7837 = vmatmul.mubr.msk.bf16.vlgmr.msra.gmra.mrb[68].mxu1 %vm11551_vm0, %v4615_v2  ;;  %vm11774_vm0 = vcmask 1046528  }
 0x8c0   : > { %7842 = vmatprep.mubr.msk.bf16.mxu1 %vm4733_vm1, %v8313_v14  ;;  %vm11776_vm5 = vmmov %vm11774_vm0 }
 0x992   : > { %v4689_v12 = vpop.f32.mrb[68].mxu1 }
 0x993   : > { %v4700_v30 = vmul.f32 0.01, %v4689_v12  ;;  %v7838_v52 = vpop.f32.mrb[69].mxu1  ;;  %vm4698_vm7 = vcmp.ge.f32.partialorder %v4689_v12, 0.0 }
 0x994   : > { %v4692_v24 = vpop.f32.mrb[70].mxu1 }
 0x995   : > { %vm4699_vm10 = vcmp.ge.f32.partialorder %v4692_v24, 0.0  ;;  %v4701_v50 = vmul.f32 0.01, %v4692_v24  ;;  %v7839_v54 = vpop.f32.mrb[71].mxu1  ;;  %v4702_v46 = vsel %vm4698_vm7, %v4689_v12, %v4700_v30  ;;  %v8321_v30 = vld [vmem:[%s11462_s5 + $0x50] sm:$0xff]   ;;  %vm11769_vm7 = vcmask 1046528  }
 0x997   : > { %v4703_v0 = vsel %vm4699_vm10, %v4692_v24, %v4701_v50  ;;  %vm11770_vm10 = vcmp.ne.s16.totalorder %v9796_v57, 0 }
 0x998   : > { %v4712_v20 = vpack.c.bf16 %v4703_v0, %v4702_v46 }
 0x99a   : > { %7840 = vmatprep.subr.bf16.mxu1 %v4712_v20 }
 0x99b   : > { %7841 = vmatpush3.bf16.msra.mxu1 %v4712_v20 }
 0x99c   : > { %7850 = vmatprep.subr.bf16.mxu1 %v8317_v19 }
 0x99e   : > { %7843 = vmatmul.mubr.msk.bf16.vlgmr.msra.gmra.mrb[72].mxu1 %vm4733_vm1, %v8314_v27 }
 0x99f   : > { %7846 = vmatprep.mubr.msk.bf16.mxu1 %vm4733_vm1, %v8315_v22  ;;  %7851 = vmatpush3.bf16.msra.mxu1 %v8317_v19 }
 0x9a0   : > { %7852 = vmatprep.subr.bf16.mxu1 %v8318_v35 }
 0x9a3   : > { %7853 = vmatpush3.bf16.msra.mxu1 %v8318_v35 }
 0x9a4   : > { %7854 = vmatprep.subr.bf16.mxu1 %v8319_v42 }
 0x9a6   : > { %7847 = vmatmul.mubr.msk.bf16.gmra.mrb[76].mxu1 %vm4733_vm1, %v8316_v23  ;;  %vm11768_vm1 = vcmp.ne.s16.totalorder %v9908_v16, 0 }
 0x9a7   : > { %7855 = vmatpush3.bf16.msra.mxu1 %v8319_v42 }
 0x9a8   : > { %7856 = vmatprep.subr.bf16.mxu1 %v8320_v51 }
 0x9ab   : > { %7857 = vmatpush3.bf16.msra.mxu1 %v8320_v51 }
 0x9ac   : > { %7858 = vmatprep.subr.bf16.mxu1 %v8321_v30 }
 0x9af   : > { %7859 = vmatpush3.bf16.msra.mxu1 %v8321_v30 }
 0xa71   : > { %v7844_v13 = vpop.f32.mrb[72].mxu1 }
 0xa72   : > { %v4780_v49 = vpop.f32.mrb[73].mxu1 }
 0xa73   : > { %v7845_v6 = vpop.f32.mrb[74].mxu1 }
 0xa74   : > { %v4812_v45 = vpack.c.bf16 %v7845_v6, %v7844_v13  ;;  %v4783_v37 = vpop.f32.mrb[75].mxu1  ;;  %v8322_v6 = vld [vmem:[%s11462_s5 + $0x58] sm:$0xff]  }
 0xa75   : > { %v4811_v11 = vpack.c.bf16 %v4783_v37, %v4780_v49  ;;  %7860 = vmatprep.subr.bf16.mxu1 %v8322_v6 }
 0xa76   : > { %v4823_v15 = vshrl.u32 %v4812_v45, 16  ;;  %4868 = vrot.lane.b32.xlu1 %v4812_v45, %s8399_s22  ;;  %v4826_v1 = vshll.u32 %v4812_v45, 16  ;;  %7861 = vmatpush3.bf16.msra.mxu1 %v8322_v6 }
 0xa77   : > { %v4816_v48 = vshrl.u32 %v4811_v11, 16  ;;  %4866 = vrot.lane.b32.xlu0 %v4811_v11, %s8399_s22  ;;  %v4819_v14 = vshll.u32 %v4811_v11, 16 }
 0xa78   : > { %v4825_v26 = vrot.slane %v4823_v15, 7 }
 0xa79   : > { %v4818_v2 = vrot.slane %v4816_v48, 7  ;;  %v7848_v12 = vpop.f32.mrb[76].mxu1 }
 0xa7a   : > { %v4828_v52 = vor.u32 %v4826_v1, %v4825_v26  ;;  %v4796_v24 = vpop.f32.mrb[77].mxu1 }
 0xa7b   : > { %v4821_v50 = vor.u32 %v4819_v14, %v4818_v2  ;;  %v7849_v54 = vpop.f32.mrb[78].mxu1 }
 0xa7c   : > { %v4814_v46 = vpack.c.bf16 %v7849_v54, %v7848_v12  ;;  %v4799_v0 = vpop.f32.mrb[79].mxu1  ;;  %v4829_v20 = vsel %vm11766_vm13, %v4818_v2, %v4828_v52  ;;  %v8323_v2 = vld [vmem:[%s11462_s5] sm:$0xff]  }
 0xa7d   : > { %v4813_v27 = vpack.c.bf16 %v4799_v0, %v4796_v24  ;;  %v4851_v22 = vsel %vm8664_vm12, 0, %v4821_v50  ;;  %v4858_v23 = vsel %vm11767_vm3, %v4829_v20, 0  ;;  %vm11771_vm3 = vmmov %vm11766_vm13  ;;  %7870 = vmatprep.subr.bf16.mxu1 %v8323_v2 }
 0xa7e   : > { %v4839_v19 = vshrl.u32 %v4814_v46, 16  ;;  %v4857_v35 = vsel %vm11768_vm1, %v4851_v22, 0  ;;  %v4880_v13 = vrot.slane %v4858_v23, 1  ;;  %v4842_v37 = vshll.u32 %v4814_v46, 16 }
 0xa7f   : > { %v4831_v49 = vshrl.u32 %v4813_v27, 16  ;;  %4870 = vrot.lane.b32.xlu0 %v4813_v27, %s8399_s22  ;;  %v4879_v42 = vrot.slane %v4857_v35, 1  ;;  %v4834_v15 = vshll.u32 %v4813_v27, 16  ;;  %vm11772_vm1 = vcmp.ne.s16.totalorder %v9801_v36, 0 }
 0xa80   : > { %v4841_v45 = vrot.slane %v4839_v19, 7  ;;  %v4853_v23 = vsel %vm9991_vm14, %v4851_v22, 0 }
 0xa81   : > { %v4833_v11 = vrot.slane %v4831_v49, 7  ;;  %v4881_v4 = vsel %vm11769_vm7, %v4879_v42, %v4880_v13  ;;  %vm11773_vm7 = vcmp.ne.s16.totalorder %v9936_v25, 0  ;;  %v4854_v42 = vsel %vm10003_vm2, %v4829_v20, 0 }
 0xa82   : > { %v4844_v48 = vor.u32 %v4842_v37, %v4841_v45  ;;  %4888 = vrot.lane.b32.xlu1 %v4881_v4, %s8396_s14  ;;  %v4852_v16 = vsel %vm8664_vm12, %v4841_v45, 0 }
 0xa83   : > { %v4836_v51 = vor.u32 %v4834_v15, %v4833_v11  ;;  %v4861_v1 = vsel %vm11770_vm10, %v4852_v16, 0  ;;  %vm11775_vm10 = vmmov %vm11774_vm0 }
 0xa84   : > { %v4845_v14 = vsel %vm11766_vm13, %v4833_v11, %v4844_v48  ;;  %v4886_v50 = vrot.slane %v4861_v1, 1  ;;  %vm11777_vm13 = vcmask 261120  }
 0xa85   : > { %v4837_v12 = vsel %vm11771_vm3, %v4825_v26, %v4836_v51  ;;  %v4860_v30 = vsel %vm11772_vm1, %v4845_v14, 0  ;;  %v4856_v16 = vsel %vm10051_vm6, %v4845_v14, 0 }
 0xa86   : > { %v4859_v52 = vsel %vm11773_vm7, %v4837_v12, 0  ;;  %v4884_v24 = vrot.slane %v4860_v30, 1  ;;  %v4855_v6 = vsel %vm10023_vm15, %v4837_v12, 0  ;;  %vm11783_vm7 = vcmask 1043456  }
 0xa87   : > { %v4882_v54 = vrot.slane %v4859_v52, 1  ;;  %vm11785_vm2 = vmmov %vm11783_vm7 }
 0xa88   : > { %v4887_v57 = vsel %vm11774_vm0, %v4884_v24, %v4886_v50  ;;  %vm11778_vm0 = vcmask 523264  }
 0xa89   : > { %v4885_v0 = vsel %vm11775_vm10, %v4882_v54, %v4884_v24  ;;  %v4883_v27 = vsel %vm11776_vm5, %v4880_v13, %v4882_v54  ;;  %vm11779_vm5 = vmmov %vm11777_vm13 }
 0xa8a   : > { %4892 = vrot.lane.b32.xlu1 %v4885_v0, %s8396_s14  ;;  %4890 = vrot.lane.b32.xlu0 %v4883_v27, %s8396_s14  ;;  %vm11780_vm3 = vmmov %vm11779_vm5  ;;  %v8324_v0 = vld [vmem:[%s11462_s5 + $0x8] sm:$0xff]  }
 0xa8b   : > { %vm11781_vm1 = vmmov %vm11778_vm0 }
 0xa8c   : > { %vm11782_vm14 = vmmov %vm11778_vm0 }
 0xa8d   : > { %vm11784_vm10 = vmmov %vm11783_vm7 }
 0xa8e   : > { %4894 = vrot.lane.b32.xlu1 %v4887_v57, %s8396_s14  ;;  %4872 = vrot.lane.b32.xlu0 %v4814_v46, %s8399_s22  ;;  %vm11786_vm15 = vmmov %vm11780_vm3 }
 0xae8   : > { %v4869_v36 = vpop.permute.xlu1 %4868 }
 0xae9   : > { %v4867_v25 = vpop.permute.xlu0 %4866  ;;  %v4901_v46 = vsel %vm11779_vm5, %v4854_v42, %v4869_v36  ;;  %v8331_v42 = vld [vmem:[%s11462_s5 + $0x70] sm:$0xff]  }
 0xaea   : > { %v4898_v19 = vsel %vm11777_vm13, %v4853_v23, %v4867_v25  ;;  %vm11787_vm13 = vmmov %vm11778_vm0  ;;  %v8325_v25 = vld [vmem:[%s11462_s5 + $0x10] sm:$0xff]  }
 0xaf1   : > { %v4871_v49 = vpop.permute.xlu0 %4870 }
 0xaf2   : > { %v4904_v45 = vsel %vm11780_vm3, %v4855_v6, %v4871_v49  ;;  %vm11790_vm3 = vcmask 785408   ;;  %v8329_v49 = vld [vmem:[%s11462_s5 + $0x60] sm:$0xff]   ;;  %v8332_v6 = vld [vmem:[%s11462_s5 + $0x78] sm:$0xff]  }
 0xaf4   : > { %v4889_v26 = vpop.permute.xlu1 %4888 }
 0xaf5   : > { %v4909_v35 = vsel %vm11778_vm0, %v4898_v19, %v4889_v26  ;;  %vm11788_vm0 = vmmov %vm11785_vm2  ;;  %v8326_v19 = vld [vmem:[%s11462_s5 + $0x18] sm:$0xff]  }
 0xaf6   : > { %v4920_v13 = vrot.slane %v4909_v35, 4  ;;  %vm11789_vm5 = vmmov %vm11788_vm0  ;;  %v8328_v35 = vld [vmem:[%s11462_s5 + $0x28] sm:$0xff]  }
 0xaf7   : > { %vm11791_vm6 = vmmov %vm11788_vm0 }
 0xaf8   : > { %v4928_v15 = vsel %vm11783_vm7, 0, %v4920_v13  ;;  %vm11794_vm7 = vmmov %vm11788_vm0 }
 0xaf9   : > { %v4958_v1 = vrot.slane %v4928_v15, 4 }
 0xafc   : > { %v4893_v37 = vpop.permute.xlu1 %4892  ;;  %v4891_v11 = vpop.permute.xlu0 %4890 }
 0xafd   : > { %v4913_v10 = vsel %vm11781_vm1, %v4904_v45, %v4893_v37  ;;  %v4911_v22 = vsel %vm11782_vm14, %v4901_v46, %v4891_v11  ;;  %vm11792_vm1 = vmmov %vm11788_vm0  ;;  %v8333_v46 = vld [vmem:[%s11462_s5 + $0x80] sm:$0xff]   ;;  %v8334_v45 = vld [vmem:[%s11462_s5 + $0x88] sm:$0xff]  }
 0xafe   : > { %v4923_v4 = vrot.slane %v4913_v10, 4  ;;  %v4921_v48 = vrot.slane %v4911_v22, 4  ;;  %vm11793_vm14 = vmmov %vm11790_vm3  ;;  %v8335_v37 = vld [vmem:[%s11467_s10] sm:$0xff]  }
 0xb00   : > { %v4922_v21 = vsel %vm11784_vm10, %v4920_v13, %v4921_v48  ;;  %v4924_v20 = vsel %vm11785_vm2, %v4921_v48, %v4923_v4  ;;  %v4895_v34 = vpop.permute.xlu1 %4894  ;;  %v4873_v51 = vpop.permute.xlu0 %4872  ;;  %vm11795_vm10 = vmmov %vm11788_vm0  ;;  %v8330_v13 = vld [vmem:[%s11462_s5 + $0x68] sm:$0xff]  }
 0xb01   : > { %v4961_v12 = vrot.slane %v4924_v20, 4  ;;  %v4907_v30 = vsel %vm11786_vm15, %v4856_v16, %v4873_v51  ;;  %v4959_v52 = vrot.slane %v4922_v21, 4  ;;  %vm11796_vm2 = vmmov %vm11790_vm3 }
 0xb02   : > { %v4915_v24 = vsel %vm11787_vm13, %v4907_v30, %v4895_v34  ;;  %vm11797_vm15 = vmmov %vm11796_vm2 }
 0xb03   : > { %v4925_v50 = vrot.slane %v4915_v24, 4  ;;  %v4960_v54 = vsel %vm11788_vm0, %v4958_v1, %v4959_v52  ;;  %v4962_v57 = vsel %vm11789_vm5, %v4959_v52, %v4961_v12  ;;  %vm11798_vm13 = vmmov %vm11796_vm2 }
 0xb04   : > { %7862 = vmatprep.mubr.msk.bf16.mxu1 %vm11790_vm3, %v4960_v54  ;;  %vm11799_vm0 = vmmov %vm11796_vm2 }
 0xb05   : > { %v4926_v41 = vsel %vm11791_vm6, %v4923_v4, %v4925_v50  ;;  %v4930_v14 = vsel %vm11792_vm1, %v4925_v50, 0  ;;  %7863 = vmatmul.mubr.msk.bf16.vlgmr.msra.gmra.mrb[80].mxu1 %vm11793_vm14, %v4962_v57  ;;  %vm11800_vm5 = vmmov %vm11799_vm0 }
 0xb06   : > { %v4965_v27 = vrot.slane %v4930_v14, 4  ;;  %7871 = vmatpush3.bf16.msra.mxu1 %v8323_v2  ;;  %v4963_v36 = vrot.slane %v4926_v41, 4  ;;  %v8327_v2 = vld [vmem:[%s11462_s5 + $0x20] sm:$0xff]   ;;  %vm11801_vm3 = vmmov %vm11799_vm0 }
 0xb07   : > { %7872 = vmatprep.subr.bf16.mxu1 %v8324_v0  ;;  %vm11802_vm6 = vmmov %vm11799_vm0 }
 0xb08   : > { %v4964_v26 = vsel %vm11794_vm7, %v4961_v12, %v4963_v36  ;;  %v4966_v23 = vsel %vm11795_vm10, %v4963_v36, %v4965_v27  ;;  %vm11803_vm1 = vmmov %vm11799_vm0  ;;  %vm11806_vm10 = vcmask 523264  }
 0xb09   : > { %7866 = vmatprep.mubr.msk.bf16.mxu1 %vm11796_vm2, %v4964_v26  ;;  %vm11804_vm14 = vmmov %vm11799_vm0  ;;  %7918 = vmatprep.mubr.msk.bf16.mxu0 %vm11806_vm10, %v8335_v37  ;;  %v8340_v37 = vld [vmem:[%s11467_s10 + $0x28] sm:$0xff]  }
 0xb0a   : > { %7873 = vmatpush3.bf16.msra.mxu1 %v8324_v0  ;;  %vm11805_vm7 = vmmov %vm11799_vm0 }
 0xb0b   : > { %7874 = vmatprep.subr.bf16.mxu1 %v8325_v25 }
 0xb0d   : > { %7867 = vmatmul.mubr.msk.bf16.gmra.mrb[84].mxu1 %vm11797_vm15, %v4966_v23 }
 0xb0e   : > { %7875 = vmatpush3.bf16.msra.mxu1 %v8325_v25  ;;  %7882 = vmatprep.mubr.msk.bf16.mxu1 %vm11798_vm13, %v4928_v15 }
 0xb0f   : > { %7876 = vmatprep.subr.bf16.mxu1 %v8326_v19 }
 0xb12   : > { %7877 = vmatpush3.bf16.msra.mxu1 %v8326_v19 }
 0xb13   : > { %7878 = vmatprep.subr.bf16.mxu1 %v8327_v2 }
 0xb16   : > { %7879 = vmatpush3.bf16.msra.mxu1 %v8327_v2  ;;  %v8336_v2 = vld [vmem:[%s11467_s10 + $0x8] sm:$0xff]  }
 0xb17   : > { %7880 = vmatprep.subr.bf16.mxu1 %v8328_v35 }
 0xb1a   : > { %7881 = vmatpush3.bf16.msra.mxu1 %v8328_v35  ;;  %v8337_v35 = vld [vmem:[%s11467_s10 + $0x10] sm:$0xff]  }
 0xb1b   : > { %7890 = vmatprep.subr.bf16.mxu1 %v8329_v49 }
 0xb1d   : > { %7883 = vmatmul.mubr.msk.bf16.vlgmr.msra.gmra.mrb[80].mxu1 %vm11799_vm0, %v4922_v21 }
 0xb1e   : > { %7886 = vmatprep.mubr.msk.bf16.mxu1 %vm11800_vm5, %v4924_v20  ;;  %7891 = vmatpush3.bf16.msra.mxu1 %v8329_v49  ;;  %vm11807_vm5 = vmmov %vm11806_vm10  ;;  %v8351_v49 = vld [vmem:[%s11463_s6] sm:$0xff]  }
 0xb1f   : > { %7892 = vmatprep.subr.bf16.mxu1 %v8330_v13 }
 0xb22   : > { %7893 = vmatpush3.bf16.msra.mxu1 %v8330_v13  ;;  %v8352_v13 = vld [vmem:[%s11463_s6 + $0x8] sm:$0xff]  }
 0xb23   : > { %7894 = vmatprep.subr.bf16.mxu1 %v8331_v42 }
 0xb25   : > { %7887 = vmatmul.mubr.msk.bf16.gmra.mrb[84].mxu1 %vm11801_vm3, %v4926_v41  ;;  %vm11808_vm3 = vmmov %vm11807_vm5 }
 0xb26   : > { %7895 = vmatpush3.bf16.msra.mxu1 %v8331_v42  ;;  %7902 = vmatprep.mubr.msk.bf16.mxu1 %vm11802_vm6, %v4922_v21  ;;  %vm11809_vm6 = vmmov %vm11808_vm3  ;;  %v8338_v42 = vld [vmem:[%s11467_s10 + $0x18] sm:$0xff]  }
 0xb27   : > { %7896 = vmatprep.subr.bf16.mxu1 %v8332_v6 }
 0xb2a   : > { %7897 = vmatpush3.bf16.msra.mxu1 %v8332_v6  ;;  %v8339_v6 = vld [vmem:[%s11467_s10 + $0x20] sm:$0xff]  }
 0xb2b   : > { %7898 = vmatprep.subr.bf16.mxu1 %v8333_v46 }
 0xb2e   : > { %7899 = vmatpush3.bf16.msra.mxu1 %v8333_v46  ;;  %v8353_v46 = vld [vmem:[%s11463_s6 + $0x10] sm:$0xff]  }
 0xb2f   : > { %7900 = vmatprep.subr.bf16.mxu1 %v8334_v45 }
 0xb32   : > { %7901 = vmatpush3.bf16.msra.mxu1 %v8334_v45  ;;  %v8354_v45 = vld [vmem:[%s11463_s6 + $0x18] sm:$0xff]  }
 0xb33   : > { %6199 = vmatprep.subr.bf16.mxu1 %v11638_v18 }
 0xb35   : > { %7903 = vmatmul.mubr.msk.bf16.vlgmr.msra.gmra.mrb[80].mxu1 %vm11803_vm1, %v4924_v20  ;;  %vm11810_vm1 = vmmov %vm11808_vm3 }
 0xb36   : > { %7906 = vmatprep.mubr.msk.bf16.mxu1 %vm11804_vm14, %v4926_v41 }
 0xb3d   : > { %7907 = vmatmul.mubr.msk.bf16.gmra.mrb[84].mxu1 %vm11805_vm7, %v4930_v14 }
 0xc08   : > { %v7904_v11 = vpop.f32.mrb[80].mxu1 }
 0xc09   : > { %v5318_v10 = vadd.f32 %v7904_v11, %v10213_v9  ;;  %v5277_v22 = vpop.f32.mrb[81].mxu1  ;;  %v8341_v11 = vld [vmem:[%s11467_s10 + $0x30] sm:$0xff]  }
 0xc0a   : > { %v5316_v15 = vadd.f32 %v5277_v22, %v10200_v3  ;;  %v7905_v4 = vpop.f32.mrb[82].mxu1  ;;  %v8356_v22 = vld [vmem:[%s11463_s6 + $0x28] sm:$0xff]  }
 0xc0b   : > { %vm5326_vm2 = vcmp.ge.f32.partialorder %v5318_v10, 0.0  ;;  %v5334_v48 = vmul.f32 0.01, %v5318_v10  ;;  %v5319_v21 = vadd.f32 %v7905_v4, %v10218_v7  ;;  %v5280_v20 = vpop.f32.mrb[83].mxu1  ;;  %v8343_v4 = vld [vmem:[%s11467_s10 + $0x40] sm:$0xff]  }
 0xc0c   : > { %vm5324_vm15 = vcmp.ge.f32.partialorder %v5316_v15, 0.0  ;;  %v5332_v9 = vmul.f32 0.01, %v5316_v15  ;;  %v5317_v34 = vadd.f32 %v5280_v20, %v10205_v31  ;;  %v8344_v20 = vld [vmem:[%s11467_s10 + $0x48] sm:$0xff]  }
 0xc0d   : > { %vm5327_vm13 = vcmp.ge.f32.partialorder %v5319_v21, 0.0  ;;  %v5335_v3 = vmul.f32 0.01, %v5319_v21  ;;  %v5342_v16 = vsel %vm5326_vm2, %v5318_v10, %v5334_v48  ;;  %v8355_v10 = vld [vmem:[%s11463_s6 + $0x20] sm:$0xff]   ;;  %v8357_v48 = vld [vmem:[%s11463_s6 + $0x30] sm:$0xff]  }
 0xc0e   : > { %vm5325_vm0 = vcmp.ge.f32.partialorder %v5317_v34, 0.0  ;;  %v5333_v7 = vmul.f32 0.01, %v5317_v34  ;;  %v5340_v51 = vsel %vm5324_vm15, %v5316_v15, %v5332_v9  ;;  %6927 = vst.msk [vmem:[%s10700_s30 + $0x10] sm:$0xff] %vm11807_vm5, %v5342_v16  ;;  %vm11811_vm15 = vmmov %vm11810_vm1  ;;  %v8342_v15 = vld [vmem:[%s11467_s10 + $0x38] sm:$0xff]   ;;  %v8345_v9 = vld [vmem:[%s11467_s10 + $0x50] sm:$0xff]  }
 0xc0f   : > { %6925 = vst.msk [vmem:[%s10700_s30] sm:$0xff] %vm11808_vm3, %v5340_v51  ;;  %v5343_v1 = vsel %vm5327_vm13, %v5319_v21, %v5335_v3  ;;  %vm11812_vm13 = vmmov %vm11810_vm1  ;;  %v8358_v21 = vld [vmem:[%s11463_s6 + $0x38] sm:$0xff]   ;;  %v8347_v3 = vld [vmem:[%s11467_s10 + $0x60] sm:$0xff]  }
 0xc10   : > { %v7908_v12 = vpop.f32.mrb[84].mxu1  ;;  %v5341_v30 = vsel %vm5325_vm0, %v5317_v34, %v5333_v7  ;;  %v5381_v52 = vpack.c.bf16 %v5343_v1, %v5342_v16  ;;  %6928 = vst.msk [vmem:[%s10700_s30 + $0x18] sm:$0xff] %vm11809_vm6, %v5343_v1  ;;  %vm11813_vm0 = vmmov %vm11810_vm1  ;;  %v8346_v34 = vld [vmem:[%s11467_s10 + $0x58] sm:$0xff]   ;;  %v8348_v16 = vld [vmem:[%s11467_s10 + $0x68] sm:$0xff]  }
 0xc11   : > { %v5322_v24 = vadd.f32 %v7908_v12, %v10247_v8  ;;  %v5293_v31 = vpop.f32.mrb[85].mxu1  ;;  %v5380_v50 = vpack.c.bf16 %v5341_v30, %v5340_v51  ;;  %6926 = vst.msk [vmem:[%s10700_s30 + $0x8] sm:$0xff] %vm11810_vm1, %v5341_v30  ;;  %vm11814_vm5 = vmmov %vm11813_vm0  ;;  %v8349_v7 = vld [vmem:[%s11467_s10 + $0x70] sm:$0xff]   ;;  %v8350_v51 = vld [vmem:[%s11467_s10 + $0x78] sm:$0xff]  }
 0xc12   : > { %v5320_v54 = vadd.f32 %v5293_v31, %v10228_v29  ;;  %v7909_v57 = vpop.f32.mrb[86].mxu1  ;;  %vm11815_vm3 = vmmov %vm11813_vm0  ;;  %v8359_v1 = vld [vmem:[%s11463_s6 + $0x40] sm:$0xff]   ;;  %v8360_v12 = vld [vmem:[%s11463_s6 + $0x48] sm:$0xff]  }
 0xc13   : > { %vm5330_vm14 = vcmp.ge.f32.partialorder %v5322_v24, 0.0  ;;  %v5338_v0 = vmul.f32 0.01, %v5322_v24  ;;  %v5323_v41 = vadd.f32 %v7909_v57, %v10252_v38  ;;  %v5296_v14 = vpop.f32.mrb[87].mxu1  ;;  %7910 = vmatprep.subr.bf16.mxu0 %v5380_v50  ;;  %vm11816_vm6 = vmmov %vm11813_vm0  ;;  %v8361_v30 = vld [vmem:[%s11463_s6 + $0x50] sm:$0xff]   ;;  %v8364_v31 = vld [vmem:[%s11463_s6 + $0x68] sm:$0xff]  }
 0xc14   : > { %vm5328_vm7 = vcmp.ge.f32.partialorder %v5320_v54, 0.0  ;;  %v5336_v27 = vmul.f32 0.01, %v5320_v54  ;;  %v5321_v8 = vadd.f32 %v5296_v14, %v10233_v40  ;;  %7911 = vmatpush3.bf16.msra.mxu0 %v5380_v50  ;;  %vm11817_vm1 = vmmov %vm11813_vm0  ;;  %v8375_v50 = vld [vmem:[%s11463_s6 + $0xc0] sm:$0xff]   ;;  %v8366_v57 = vld [vmem:[%s11463_s6 + $0x78] sm:$0xff]  }
 0xc15   : > { %vm5331_vm10 = vcmp.ge.f32.partialorder %v5323_v41, 0.0  ;;  %v5339_v36 = vmul.f32 0.01, %v5323_v41  ;;  %7912 = vmatprep.subr.bf16.mxu0 %v5381_v52  ;;  %v5346_v29 = vsel %vm5330_vm14, %v5322_v24, %v5338_v0  ;;  %vm11818_vm14 = vmmov %vm11813_vm0  ;;  %v8363_v24 = vld [vmem:[%s11463_s6 + $0x60] sm:$0xff]   ;;  %v8369_v14 = vld [vmem:[%s11463_s6 + $0x90] sm:$0xff]  }
 0xc16   : > { %vm5329_vm2 = vcmp.ge.f32.partialorder %v5321_v8, 0.0  ;;  %v5337_v25 = vmul.f32 0.01, %v5321_v8  ;;  %v5344_v26 = vsel %vm5328_vm7, %v5320_v54, %v5336_v27  ;;  %6931 = vst.msk [vmem:[%s10700_s30 + $0x30] sm:$0xff] %vm11811_vm15, %v5346_v29  ;;  %vm11819_vm7 = vmmov %vm11813_vm0  ;;  %6200 = vmatpush1.bf16.msra.mxu1 %v8363_v24  ;;  %v8365_v54 = vld [vmem:[%s11463_s6 + $0x70] sm:$0xff]   ;;  %v8367_v0 = vld [vmem:[%s11463_s6 + $0x80] sm:$0xff]  }
 0xc17   : > { %6929 = vst.msk [vmem:[%s10700_s30 + $0x20] sm:$0xff] %vm11812_vm13, %v5344_v26  ;;  %v5347_v38 = vsel %vm5331_vm10, %v5323_v41, %v5339_v36  ;;  %vm11820_vm10 = vmmov %vm11813_vm0  ;;  %6201 = vmatprep.subr.bf16.mxu1 %v11638_v18  ;;  %v8368_v41 = vld [vmem:[%s11463_s6 + $0x88] sm:$0xff]   ;;  %v8370_v27 = vld [vmem:[%s11463_s6 + $0x98] sm:$0xff]  }
 0xc18   : > { %7913 = vmatpush3.bf16.msra.mxu0 %v5381_v52  ;;  %v5345_v23 = vsel %vm5329_vm2, %v5321_v8, %v5337_v25  ;;  %v5383_v19 = vpack.c.bf16 %v5347_v38, %v5346_v29  ;;  %6932 = vst.msk [vmem:[%s10700_s30 + $0x38] sm:$0xff] %vm11813_vm0, %v5347_v38  ;;  %vm11821_vm2 = vmmov %vm11813_vm0  ;;  %v8362_v52 = vld [vmem:[%s11463_s6 + $0x58] sm:$0xff]   ;;  %v8371_v8 = vld [vmem:[%s11463_s6 + $0xa0] sm:$0xff]  }
 0xc19   : > { %v5382_v40 = vpack.c.bf16 %v5345_v23, %v5344_v26  ;;  %6930 = vst.msk [vmem:[%s10700_s30 + $0x28] sm:$0xff] %vm11814_vm5, %v5345_v23  ;;  %vm11822_vm15 = vmmov %vm11813_vm0  ;;  %v8372_v36 = vld [vmem:[%s11463_s6 + $0xa8] sm:$0xff]   ;;  %v8373_v29 = vld [vmem:[%s11463_s6 + $0xb0] sm:$0xff]   ;;  %s11354_s30 = scalar_lea.vmem %s11468_s11, %s7712_s27 }
 0xc1a   : > { %vm11823_vm13 = vmmov %vm11813_vm0  ;;  %6202 = vmatpush1.bf16.msra.mxu1 %v8364_v31  ;;  %v8374_v25 = vld [vmem:[%s11463_s6 + $0xb8] sm:$0xff]  }
 0xc1b   : > { %7914 = vmatprep.subr.bf16.mxu0 %v5382_v40  ;;  %vm11824_vm5 = vmmov %vm11813_vm0  ;;  %6203 = vmatprep.subr.bf16.mxu1 %v11638_v18 }
 0xc1c   : > { %7915 = vmatpush3.bf16.msra.mxu0 %v5382_v40 }
 0xc1d   : > { %7916 = vmatprep.subr.bf16.mxu0 %v5383_v19 }
 0xc1e   : > { %6204 = vmatpush1.bf16.msra.mxu1 %v8365_v54 }
 0xc1f   : > { %6205 = vmatprep.subr.bf16.mxu1 %v11638_v18 }
 0xc20   : > { %7917 = vmatpush3.bf16.msra.mxu0 %v5383_v19  ;;  %v8376_v19 = vld [vmem:[%s11463_s6 + $0xc8] sm:$0xff]  }
 0xc21   : > { %6434 = vmatprep.subr.bf16.mxu0 %v11638_v18 }
 0xc22   : > { %6206 = vmatpush1.bf16.msra.mxu1 %v8366_v57 }
 0xc23   : > { %7919 = vmatmul.mubr.msk.bf16.vlgmr.msra.gmra.mrb[44].mxu0 %vm11815_vm3, %v8336_v2  ;;  %vm11825_vm3 = vmmov %vm11813_vm0  ;;  %6207 = vmatprep.subr.bf16.mxu1 %v11638_v18 }
 0xc24   : > { %7922 = vmatprep.mubr.msk.bf16.mxu0 %vm11816_vm6, %v8337_v35  ;;  %6435 = vmatpush1.bf16.msra.mxu0 %v8351_v49  ;;  %vm11826_vm6 = vmmov %vm11813_vm0 }
 0xc25   : > { %6436 = vmatprep.subr.bf16.mxu0 %v11638_v18 }
 0xc26   : > { %6208 = vmatpush1.bf16.msra.mxu1 %v8367_v0 }
 0xc27   : > { %6209 = vmatprep.subr.bf16.mxu1 %v11638_v18 }
 0xc28   : > { %6437 = vmatpush1.bf16.msra.mxu0 %v8352_v13 }
 0xc29   : > { %6438 = vmatprep.subr.bf16.mxu0 %v11638_v18 }
 0xc2a   : > { %6210 = vmatpush1.bf16.msra.mxu1 %v8368_v41 }
 0xc2b   : > { %7923 = vmatmul.mubr.msk.bf16.gmra.mrb[48].mxu0 %vm11817_vm1, %v8338_v42  ;;  %vm11827_vm1 = vmmov %vm11813_vm0  ;;  %6211 = vmatprep.subr.bf16.mxu1 %v11638_v18 }
 0xc2c   : > { %7926 = vmatprep.mubr.msk.bf16.mxu0 %vm11818_vm14, %v8339_v6  ;;  %6439 = vmatpush1.bf16.msra.mxu0 %v8353_v46  ;;  %vm11828_vm14 = vmmov %vm11813_vm0 }
 0xc2d   : > { %6440 = vmatprep.subr.bf16.mxu0 %v11638_v18 }
 0xc2e   : > { %6212 = vmatpush1.bf16.msra.mxu1 %v8369_v14 }
 0xc2f   : > { %6213 = vmatprep.subr.bf16.mxu1 %v11638_v18 }
 0xc30   : > { %6441 = vmatpush1.bf16.msra.mxu0 %v8354_v45 }
 0xc31   : > { %6442 = vmatprep.subr.bf16.mxu0 %v11638_v18 }
 0xc32   : > { %6214 = vmatpush1.bf16.msra.mxu1 %v8370_v27 }
 0xc33   : > { %7927 = vmatmul.mubr.msk.bf16.gmra.mrb[52].mxu0 %vm11819_vm7, %v8340_v37  ;;  %6215 = vmatprep.subr.bf16.mxu1 %v11638_v18  ;;  %vm11829_vm7 = vsmask.f32 256 }
 0xc34   : > { %7930 = vmatprep.mubr.msk.bf16.mxu0 %vm11820_vm10, %v8341_v11  ;;  %6443 = vmatpush1.bf16.msra.mxu0 %v8355_v10 }
 0xc35   : > { %6444 = vmatprep.subr.bf16.mxu0 %v11638_v18 }
 0xc36   : > { %6216 = vmatpush1.bf16.msra.mxu1 %v8371_v8 }
 0xc37   : > { %6217 = vmatprep.subr.bf16.mxu1 %v11638_v18 }
 0xc38   : > { %6445 = vmatpush1.bf16.msra.mxu0 %v8356_v22 }
 0xc39   : > { %6446 = vmatprep.subr.bf16.mxu0 %v11638_v18 }
 0xc3a   : > { %6218 = vmatpush1.bf16.msra.mxu1 %v8372_v36 }
 0xc3b   : > { %7931 = vmatmul.mubr.msk.bf16.gmra.mrb[56].mxu0 %vm11821_vm2, %v8342_v15  ;;  %6219 = vmatprep.subr.bf16.mxu1 %v11638_v18 }
 0xc3c   : > { %7934 = vmatprep.mubr.msk.bf16.mxu0 %vm11822_vm15, %v8343_v4  ;;  %6447 = vmatpush1.bf16.msra.mxu0 %v8357_v48  ;;  %vm11834_vm15 = vcmask 1046528  }
 0xc3d   : > { %6448 = vmatprep.subr.bf16.mxu0 %v11638_v18 }
 0xc3e   : > { %6220 = vmatpush1.bf16.msra.mxu1 %v8373_v29 }
 0xc3f   : > { %6221 = vmatprep.subr.bf16.mxu1 %v11638_v18 }
 0xc40   : > { %6449 = vmatpush1.bf16.msra.mxu0 %v8358_v21 }
 0xc41   : > { %6450 = vmatprep.subr.bf16.mxu0 %v11638_v18 }
 0xc42   : > { %6222 = vmatpush1.bf16.msra.mxu1 %v8374_v25 }
 0xc43   : > { %7935 = vmatmul.mubr.msk.bf16.gmra.mrb[60].mxu0 %vm11823_vm13, %v8344_v20  ;;  %v8377_v20 = vld [vmem:[%s11463_s6 + $0xd0] sm:$0xff]   ;;  %vm11835_vm13 = vmmov %vm11813_vm0 }
 0xc44   : > { %7938 = vmatprep.mubr.msk.bf16.mxu0 %vm11813_vm0, %v8345_v9  ;;  %6451 = vmatpush1.bf16.msra.mxu0 %v8359_v1  ;;  %v11832_v1 = vld [vmem:[#allocation7_spill] sm:$0xff] }
 0xc45   : > { %6452 = vmatprep.subr.bf16.mxu0 %v11638_v18  ;;  %vm11833_vm2 = vcmp.ne.s16.totalorder %v11832_v1, 0 }
 0xc48   : > { %6453 = vmatpush1.bf16.msra.mxu0 %v8360_v12 }
 0xc49   : > { %6454 = vmatprep.subr.bf16.mxu0 %v11638_v18 }
 0xc4b   : > { %7939 = vmatmul.mubr.msk.bf16.gmra.mrb[64].mxu0 %vm11824_vm5, %v8346_v34  ;;  %vm11836_vm5 = vmmov %vm11829_vm7 }
 0xc4c   : > { %7942 = vmatprep.mubr.msk.bf16.mxu0 %vm11825_vm3, %v8347_v3  ;;  %6455 = vmatpush1.bf16.msra.mxu0 %v8361_v30  ;;  %v11830_v3 = vld [vmem:[#allocation8_spill] sm:$0xff]  ;;  %vm11837_vm3 = vmmov %vm11836_vm5 }
 0xc4d   : > { %6456 = vmatprep.subr.bf16.mxu0 %v11638_v18  ;;  %vm11831_vm10 = vcmp.ne.s16.totalorder %v11830_v3, 0 }
 0xc50   : > { %6457 = vmatpush1.bf16.msra.mxu0 %v8362_v52 }
 0xc51   : > { %6692 = vmatprep.subr.bf16.mxu0 %v11638_v18 }
 0xc53   : > { %7943 = vmatmul.mubr.msk.bf16.gmra.mrb[68].mxu0 %vm11826_vm6, %v8348_v16 }
 0xc54   : > { %7946 = vmatprep.mubr.msk.bf16.mxu0 %vm11827_vm1, %v8349_v7 }
 0xc5b   : > { %7947 = vmatmul.mubr.msk.bf16.gmra.mrb[72].mxu0 %vm11828_vm14, %v8350_v51  ;;  %vm11842_vm14 = vmmov %vm11834_vm15 }
 0xc5c   : > { %6466 = vmatprep.mubr.bf16.mxu0 %v11638_v18 }
 0xc63   : > { %6467 = vmatmul.mubr.bf16.vlgmr.msra.gmra.mrb[76].mxu0 %v11638_v18 }
 0xc64   : > { %6693 = vmatpush1.bf16.msra.mxu0 %v8375_v50 }
 0xc65   : > { %6694 = vmatprep.subr.bf16.mxu0 %v11638_v18 }
 0xc68   : > { %6695 = vmatpush1.bf16.msra.mxu0 %v8376_v19  ;;  %v11838_v19 = vld [vmem:[#allocation11_spill] sm:$0xff] }
 0xc69   : > { %6696 = vmatprep.subr.bf16.mxu0 %v11638_v18  ;;  %vm11839_vm6 = vcmp.ne.s16.totalorder %v11838_v19, 0 }
 0xc6c   : > { %6697 = vmatpush1.bf16.msra.mxu0 %v8377_v20 }
 0xc6d   : > { %6698 = vmatprep.subr.bf16.mxu0 %v11638_v18 }
 0xcf6   : > { %v7920_v26 = vpop.f32.mrb[44].mxu0 }
 0xcf7   : > { %v5546_v38 = vpop.f32.mrb[45].mxu0 }
 0xcf8   : > { %v7921_v23 = vpop.f32.mrb[46].mxu0 }
 0xcf9   : > { %v5674_v40 = vpack.c.bf16 %v7921_v23, %v7920_v26  ;;  %v5549_v2 = vpop.f32.mrb[47].mxu0  ;;  %v8378_v26 = vld [vmem:[%s11463_s6 + $0xd8] sm:$0xff]  }
 0xcfa   : > { %v5673_v35 = vpack.c.bf16 %v5549_v2, %v5546_v38  ;;  %6699 = vmatpush1.bf16.msra.mxu0 %v8378_v26 }
 0xcfb   : > { %v5697_v49 = vshrl.u32 %v5674_v40, 16  ;;  %5886 = vrot.lane.b32.xlu1 %v5674_v40, %s8396_s14  ;;  %v5700_v6 = vshll.u32 %v5674_v40, 16  ;;  %6700 = vmatprep.subr.bf16.mxu0 %v11638_v18 }
 0xcfc   : > { %v5690_v13 = vshrl.u32 %v5673_v35, 16  ;;  %5884 = vrot.lane.b32.xlu0 %v5673_v35, %s8396_s14  ;;  %v5693_v45 = vshll.u32 %v5673_v35, 16 }
 0xcfd   : > { %v5699_v42 = vrot.slane %v5697_v49, 7  ;;  %v11840_v49 = vld [vmem:[#allocation9_spill] sm:$0xff] }
 0xcfe   : > { %v5692_v46 = vrot.slane %v5690_v13, 7  ;;  %v7924_v37 = vpop.f32.mrb[48].mxu0  ;;  %vm11841_vm1 = vcmp.ne.s16.totalorder %v11840_v49, 0 }
 0xcff   : > { %v5702_v11 = vor.u32 %v5700_v6, %v5699_v42  ;;  %v5562_v10 = vpop.f32.mrb[49].mxu0 }
 0xd00   : > { %v5695_v22 = vor.u32 %v5693_v45, %v5692_v46  ;;  %v7925_v15 = vpop.f32.mrb[50].mxu0 }
 0xd01   : > { %v5676_v4 = vpack.c.bf16 %v7925_v15, %v7924_v37  ;;  %v5565_v48 = vpop.f32.mrb[51].mxu0  ;;  %v10892_v21 = vsel %vm11829_vm7, %v5692_v46, %v5702_v11  ;;  %vm11843_vm7 = vmmov %vm11842_vm14 }
 0xd02   : > { %v10899_v9 = vsel %vm8664_vm12, 0, %v5695_v22  ;;  %v5675_v34 = vpack.c.bf16 %v5565_v48, %v5562_v10  ;;  %v5852_v16 = vsel %vm11831_vm10, %v10892_v21, 0  ;;  %vm11844_vm10 = vmmov %vm11837_vm3 }
 0xd03   : > { %v5713_v7 = vshrl.u32 %v5676_v4, 16  ;;  %v5716_v51 = vshll.u32 %v5676_v4, 16  ;;  %5890 = vrot.lane.b32.xlu1 %v5676_v4, %s8396_s14  ;;  %v5851_v12 = vsel %vm11833_vm2, %v10899_v9, 0  ;;  %v5934_v30 = vrot.slane %v5852_v16, 1  ;;  %vm11845_vm2 = vmmov %vm11837_vm3 }
 0xd04   : > { %v5705_v52 = vshrl.u32 %v5675_v34, 16  ;;  %v5708_v24 = vshll.u32 %v5675_v34, 16  ;;  %5888 = vrot.lane.b32.xlu0 %v5675_v34, %s8396_s14  ;;  %v5933_v31 = vrot.slane %v5851_v12, 1  ;;  %v11846_v12 = vld [vmem:[#allocation15_spill] sm:$0xff] }
 0xd05   : > { %v5715_v50 = vrot.slane %v5713_v7, 7 }
 0xd06   : > { %v5707_v54 = vrot.slane %v5705_v52, 7  ;;  %v7928_v57 = vpop.f32.mrb[52].mxu0  ;;  %v5935_v0 = vsel %vm11834_vm15, %v5933_v31, %v5934_v30  ;;  %vm11847_vm15 = vcmp.ne.s16.totalorder %v11846_v12, 0  ;;  %v11848_v31 = vld [vmem:[#allocation13_spill] sm:$0xff] }
 0xd07   : > { %v5718_v41 = vor.u32 %v5716_v51, %v5715_v50  ;;  %v5578_v14 = vpop.f32.mrb[53].mxu0  ;;  %7616 = vmatprep.mubr.msk.bf16.mxu1 %vm11835_vm13, %v5935_v0  ;;  %7644 = vmatprep.mubr.msk.bf16.mxu0 %vm11813_vm0, %v5935_v0  ;;  %vm11849_vm13 = vcmp.ne.s16.totalorder %v11848_v31, 0  ;;  %vm11850_vm0 = vmmov %vm11843_vm7 }
 0xd08   : > { %v5710_v27 = vor.u32 %v5708_v24, %v5707_v54  ;;  %v7929_v8 = vpop.f32.mrb[54].mxu0 }
 0xd09   : > { %v5678_v36 = vpack.c.bf16 %v7929_v8, %v7928_v57  ;;  %v5581_v29 = vpop.f32.mrb[55].mxu0  ;;  %v10914_v25 = vsel %vm11836_vm5, %v5707_v54, %v5718_v41  ;;  %vm11851_vm5 = vmmov %vm11850_vm0 }
 0xd0a   : > { %v5677_v38 = vpack.c.bf16 %v5581_v29, %v5578_v14  ;;  %v10920_v23 = vsel %vm11837_vm3, %v5699_v42, %v5710_v27  ;;  %v5854_v40 = vsel %vm11839_vm6, %v10914_v25, 0  ;;  %vm11852_vm3 = vmmov %vm11845_vm2 }
 0xd0b   : > { %v5729_v2 = vshrl.u32 %v5678_v36, 16  ;;  %v5732_v35 = vshll.u32 %v5678_v36, 16  ;;  %5894 = vrot.lane.b32.xlu1 %v5678_v36, %s8396_s14  ;;  %v5853_v13 = vsel %vm11841_vm1, %v10920_v23, 0  ;;  %v5938_v6 = vrot.slane %v5854_v40, 1  ;;  %vm11853_vm6 = vmmov %vm11845_vm2 }
 0xd0c   : > { %v5721_v46 = vshrl.u32 %v5677_v38, 16  ;;  %v5724_v45 = vshll.u32 %v5677_v38, 16  ;;  %5892 = vrot.lane.b32.xlu0 %v5677_v38, %s8396_s14  ;;  %v5936_v42 = vrot.slane %v5853_v13, 1 }
 0xd0d   : > { %v5731_v37 = vrot.slane %v5729_v2, 7  ;;  %v8379_v2 = vld [vmem:[%s11463_s6 + $0xe0] sm:$0xff]  }
 0xd0e   : > { %v5723_v11 = vrot.slane %v5721_v46, 7  ;;  %v7932_v10 = vpop.f32.mrb[56].mxu0  ;;  %v10932_v22 = vsel %vm11842_vm14, %v5934_v30, %v5936_v42  ;;  %v10935_v15 = vsel %vm11843_vm7, %v5936_v42, %v5938_v6  ;;  %6701 = vmatpush1.bf16.msra.mxu0 %v8379_v2  ;;  %vm11858_vm7 = vmmov %vm11850_vm0 }
 0xd0f   : > { %v5734_v4 = vor.u32 %v5732_v35, %v5731_v37  ;;  %v5594_v48 = vpop.f32.mrb[57].mxu0  ;;  %6702 = vmatprep.subr.bf16.mxu0 %v11638_v18 }
 0xd10   : > { %v5726_v20 = vor.u32 %v5724_v45, %v5723_v11  ;;  %v7933_v34 = vpop.f32.mrb[58].mxu0  ;;  %v11854_v45 = vld [vmem:[#allocation17_spill] sm:$0xff] }
 0xd11   : > { %v5680_v3 = vpack.c.bf16 %v7933_v34, %v7932_v10  ;;  %v5597_v16 = vpop.f32.mrb[59].mxu0  ;;  %v10938_v7 = vsel %vm11844_vm10, %v5723_v11, %v5734_v4  ;;  %vm11855_vm1 = vcmp.ne.s16.totalorder %v11854_v45, 0  ;;  %v11856_v4 = vld [vmem:[#allocation16_spill] sm:$0xff]  ;;  %vm11859_vm10 = vmmov %vm11850_vm0 }
 0xd12   : > { %v5679_v51 = vpack.c.bf16 %v5597_v16, %v5594_v48  ;;  %v10941_v1 = vsel %vm11845_vm2, %v5715_v50, %v5726_v20  ;;  %v5856_v30 = vsel %vm11847_vm15, %v10938_v7, 0  ;;  %vm11857_vm14 = vcmp.ne.s16.totalorder %v11856_v4, 0  ;;  %vm11860_vm15 = vmmov %vm11845_vm2 }
 0xd13   : > { %v5745_v52 = vshrl.u32 %v5680_v3, 16  ;;  %v5748_v24 = vshll.u32 %v5680_v3, 16  ;;  %5898 = vrot.lane.b32.xlu1 %v5680_v3, %s8396_s14  ;;  %v5855_v54 = vsel %vm11849_vm13, %v10941_v1, 0  ;;  %v5942_v57 = vrot.slane %v5856_v30, 1 }
 0xd14   : > { %v5737_v0 = vshrl.u32 %v5679_v51, 16  ;;  %v5740_v41 = vshll.u32 %v5679_v51, 16  ;;  %5896 = vrot.lane.b32.xlu0 %v5679_v51, %s8396_s14  ;;  %v5940_v14 = vrot.slane %v5855_v54, 1 }
 0xd15   : > { %v5747_v50 = vrot.slane %v5745_v52, 7 }
 0xd16   : > { %v5739_v27 = vrot.slane %v5737_v0, 7  ;;  %v7936_v8 = vpop.f32.mrb[60].mxu0  ;;  %v10952_v36 = vsel %vm11850_vm0, %v5938_v6, %v5940_v14  ;;  %v10955_v29 = vsel %vm11851_vm5, %v5940_v14, %v5942_v57 }
 0xd17   : > { %v5750_v26 = vor.u32 %v5748_v24, %v5747_v50  ;;  %v5610_v38 = vpop.f32.mrb[61].mxu0 }
 0xd18   : > { %v5742_v19 = vor.u32 %v5740_v41, %v5739_v27  ;;  %v7937_v40 = vpop.f32.mrb[62].mxu0 }
 0xd19   : > { %v5682_v35 = vpack.c.bf16 %v7937_v40, %v7936_v8  ;;  %v5613_v49 = vpop.f32.mrb[63].mxu0  ;;  %v10961_v13 = vsel %vm11852_vm3, %v5739_v27, %v5750_v26  ;;  %v8380_v27 = vld [vmem:[%s11463_s6 + $0xe8] sm:$0xff]   ;;  %vm11865_vm3 = vmmov %vm11851_vm5 }
 0xd1a   : > { %v5681_v46 = vpack.c.bf16 %v5613_v49, %v5610_v38  ;;  %v10964_v6 = vsel %vm11853_vm6, %v5731_v37, %v5742_v19  ;;  %v5858_v42 = vsel %vm11855_vm1, %v10961_v13, 0  ;;  %v11861_v38 = vld [vmem:[#allocation19_spill] sm:$0xff]  ;;  %6703 = vmatpush1.bf16.msra.mxu0 %v8380_v27  ;;  %vm11866_vm6 = vmmov %vm11845_vm2 }
 0xd1b   : > { %v5761_v11 = vshrl.u32 %v5682_v35, 16  ;;  %v5764_v10 = vshll.u32 %v5682_v35, 16  ;;  %5902 = vrot.lane.b32.xlu1 %v5682_v35, %s8396_s14  ;;  %v5857_v48 = vsel %vm11857_vm14, %v10964_v6, 0  ;;  %v5946_v20 = vrot.slane %v5858_v42, 1  ;;  %v11863_v35 = vld [vmem:[#allocation18_spill] sm:$0xff]  ;;  %6704 = vmatprep.subr.bf16.mxu0 %v11638_v18  ;;  %vm11867_vm1 = vmmov %vm11845_vm2 }
 0xd1c   : > { %v5753_v34 = vshrl.u32 %v5681_v46, 16  ;;  %v5756_v3 = vshll.u32 %v5681_v46, 16  ;;  %5900 = vrot.lane.b32.xlu0 %v5681_v46, %s8396_s14  ;;  %v5944_v37 = vrot.slane %v5857_v48, 1  ;;  %vm11862_vm13 = vcmp.ne.s16.totalorder %v11861_v38, 0 }
 0xd1d   : > { %v5763_v16 = vrot.slane %v5761_v11, 7  ;;  %vm11864_vm0 = vcmp.ne.s16.totalorder %v11863_v35, 0 }
 0xd1e   : > { %v5755_v51 = vrot.slane %v5753_v34, 7  ;;  %v7940_v12 = vpop.f32.mrb[64].mxu0  ;;  %v10976_v30 = vsel %vm11858_vm7, %v5942_v57, %v5944_v37  ;;  %v10979_v52 = vsel %vm11859_vm10, %v5944_v37, %v5946_v20  ;;  %vm11872_vm10 = vmmov %vm11865_vm3 }
 0xd1f   : > { %v5766_v24 = vor.u32 %v5764_v10, %v5763_v16  ;;  %v5626_v31 = vpop.f32.mrb[65].mxu0 }
 0xd20   : > { %v5758_v54 = vor.u32 %v5756_v3, %v5755_v51  ;;  %v7941_v0 = vpop.f32.mrb[66].mxu0 }
 0xd21   : > { %v5684_v41 = vpack.c.bf16 %v7941_v0, %v7940_v12  ;;  %v5629_v14 = vpop.f32.mrb[67].mxu0  ;;  %v10985_v8 = vsel %vm11845_vm2, %v5755_v51, %v5766_v24  ;;  %vm11873_vm2 = vmmov %vm11865_vm3 }
 0xd22   : > { %v5683_v26 = vpack.c.bf16 %v5629_v14, %v5626_v31  ;;  %v10988_v57 = vsel %vm11860_vm15, %v5747_v50, %v5758_v54  ;;  %v5860_v19 = vsel %vm11862_vm13, %v10985_v8, 0  ;;  %v8381_v54 = vld [vmem:[%s11463_s6 + $0xf0] sm:$0xff]   ;;  %v11868_v14 = vld [vmem:[#allocation21_spill] sm:$0xff]  ;;  %vm11874_vm15 = vmmov %vm11867_vm1 }
 0xd23   : > { %v5777_v40 = vshrl.u32 %v5684_v41, 16  ;;  %v5780_v2 = vshll.u32 %v5684_v41, 16  ;;  %5906 = vrot.lane.b32.xlu1 %v5684_v41, %s8396_s14  ;;  %v5859_v49 = vsel %vm11864_vm0, %v10988_v57, 0  ;;  %v5950_v46 = vrot.slane %v5860_v19, 1  ;;  %6705 = vmatpush1.bf16.msra.mxu0 %v8381_v54  ;;  %v11870_v19 = vld [vmem:[#allocation20_spill] sm:$0xff]  ;;  %vm11875_vm13 = vmmov %vm11867_vm1 }
 0xd24   : > { %v5769_v45 = vshrl.u32 %v5683_v26, 16  ;;  %v5772_v42 = vshll.u32 %v5683_v26, 16  ;;  %5904 = vrot.lane.b32.xlu0 %v5683_v26, %s8396_s14  ;;  %v5948_v50 = vrot.slane %v5859_v49, 1  ;;  %vm11869_vm14 = vcmp.ne.s16.totalorder %v11868_v14, 0  ;;  %6706 = vmatprep.subr.bf16.mxu0 %v11638_v18 }
 0xd25   : > { %v5779_v11 = vrot.slane %v5777_v40, 7  ;;  %vm11871_vm7 = vcmp.ne.s16.totalorder %v11870_v19, 0  ;;  %vm11876_vm0 = vcmp.ne.s16.totalorder %v9236_v43, 0 }
 0xd26   : > { %v5771_v10 = vrot.slane %v5769_v45, 7  ;;  %v7944_v4 = vpop.f32.mrb[68].mxu0  ;;  %v11000_v48 = vsel %vm11851_vm5, %v5946_v20, %v5948_v50  ;;  %v11003_v34 = vsel %vm11865_vm3, %v5948_v50, %v5950_v46  ;;  %vm11879_vm3 = vmmov %vm11873_vm2 }
 0xd27   : > { %v5782_v3 = vor.u32 %v5780_v2, %v5779_v11  ;;  %v5642_v37 = vpop.f32.mrb[69].mxu0 }
 0xd28   : > { %v5774_v51 = vor.u32 %v5772_v42, %v5771_v10  ;;  %v7945_v12 = vpop.f32.mrb[70].mxu0 }
 0xd29   : > { %v5686_v24 = vpack.c.bf16 %v7945_v12, %v7944_v4  ;;  %v5645_v31 = vpop.f32.mrb[71].mxu0  ;;  %v11009_v0 = vsel %vm11866_vm6, %v5771_v10, %v5782_v3  ;;  %vm11880_vm6 = vmmov %vm11873_vm2 }
 0xd2a   : > { %v5685_v41 = vpack.c.bf16 %v5645_v31, %v5642_v37  ;;  %v11012_v20 = vsel %vm11867_vm1, %v5763_v16, %v5774_v51  ;;  %v5862_v27 = vsel %vm11869_vm14, %v11009_v0, 0  ;;  %vm11881_vm1 = vcmp.ne.s16.totalorder %v9276_v55, 0  ;;  %vm11882_vm14 = vmmov %vm11875_vm13 }
 0xd2b   : > { %v5793_v26 = vshrl.u32 %v5686_v24, 16  ;;  %v5796_v38 = vshll.u32 %v5686_v24, 16  ;;  %5910 = vrot.lane.b32.xlu1 %v5686_v24, %s8396_s14  ;;  %v5861_v40 = vsel %vm11871_vm7, %v11012_v20, 0  ;;  %v5954_v2 = vrot.slane %v5862_v27, 1  ;;  %vm11883_vm7 = vmmov %vm11875_vm13 }
 0xd2c   : > { %v5785_v35 = vshrl.u32 %v5685_v41, 16  ;;  %v5788_v49 = vshll.u32 %v5685_v41, 16  ;;  %5908 = vrot.lane.b32.xlu0 %v5685_v41, %s8396_s14  ;;  %v5952_v16 = vrot.slane %v5861_v40, 1 }
 0xd2d   : > { %v5795_v45 = vrot.slane %v5793_v26, 7 }
 0xd2e   : > { %v5787_v42 = vrot.slane %v5785_v35, 7  ;;  %v7948_v50 = vpop.f32.mrb[72].mxu0  ;;  %v11024_v10 = vsel %vm11872_vm10, %v5950_v46, %v5952_v16  ;;  %v11027_v4 = vsel %vm11873_vm2, %v5952_v16, %v5954_v2  ;;  %vm11884_vm10 = vcmp.ne.s16.totalorder %v9294_v47, 0  ;;  %v8383_v47 = vld [vmem:[%s11463_s6 + $0x100] sm:$0xff]  }
 0xd2f   : > { %v5798_v3 = vor.u32 %v5796_v38, %v5795_v45  ;;  %v5658_v37 = vpop.f32.mrb[73].mxu0  ;;  %v11877_v38 = vld [vmem:[#allocation22_spill] sm:$0xff] }
 0xd30   : > { %v5790_v51 = vor.u32 %v5788_v49, %v5787_v42  ;;  %v7949_v12 = vpop.f32.mrb[74].mxu0  ;;  %vm11878_vm5 = vcmp.ne.s16.totalorder %v11877_v38, 0 }
 0xd31   : > { %v5688_v24 = vpack.c.bf16 %v7949_v12, %v7948_v50  ;;  %v5661_v31 = vpop.f32.mrb[75].mxu0  ;;  %v11030_v54 = vsel %vm11874_vm15, %v5787_v42, %v5798_v3  ;;  %v8382_v12 = vld [vmem:[%s11463_s6 + $0xf8] sm:$0xff]   ;;  %vm11887_vm15 = vmmov %vm11873_vm2 }
 0xd32   : > { %v5687_v41 = vpack.c.bf16 %v5661_v31, %v5658_v37  ;;  %v11033_v14 = vsel %vm11875_vm13, %v5779_v11, %v5790_v51  ;;  %v5864_v46 = vsel %vm11876_vm0, %v11030_v54, 0  ;;  %6707 = vmatpush1.bf16.msra.mxu0 %v8382_v12  ;;  %vm11888_vm13 = vmmov %vm11873_vm2  ;;  %vm11889_vm0 = vcmask 523264  }
 0xd33   : > { %v5809_v27 = vshrl.u32 %v5688_v24, 16  ;;  %v5812_v26 = vshll.u32 %v5688_v24, 16  ;;  %5914 = vrot.lane.b32.xlu1 %v5688_v24, %s8396_s14  ;;  %v5863_v19 = vsel %vm11878_vm5, %v11033_v14, 0  ;;  %v5958_v40 = vrot.slane %v5864_v46, 1  ;;  %6708 = vmatprep.subr.bf16.mxu0 %v11638_v18  ;;  %v11885_v46 = vld [vmem:[#allocation23_spill] sm:$0xff]  ;;  %vm11890_vm5 = vmmov %vm11889_vm0 }
 0xd34   : > { %v5801_v35 = vshrl.u32 %v5687_v41, 16  ;;  %v5804_v49 = vshll.u32 %v5687_v41, 16  ;;  %5912 = vrot.lane.b32.xlu0 %v5687_v41, %s8396_s14  ;;  %v5956_v16 = vrot.slane %v5863_v19, 1  ;;  %v5838_v12 = vsel %vm8949_vm11, %v10914_v25, 0  ;;  %vm11903_vm11 = vmmov %vm11889_vm0 }
 0xd35   : > { %v5811_v11 = vrot.slane %v5809_v27, 7 }
 0xd36   : > { %v5803_v42 = vrot.slane %v5801_v35, 7  ;;  %v11044_v50 = vsel %vm11879_vm3, %v5954_v2, %v5956_v16  ;;  %v11047_v43 = vsel %vm11880_vm6, %v5956_v16, %v5958_v40  ;;  %6709 = vmatpush1.bf16.msra.mxu0 %v8383_v47  ;;  %v8384_v35 = vld [vmem:[%s11463_s6 + $0x108] sm:$0xff]   ;;  %vm11891_vm3 = vmmov %vm11889_vm0 }
 0xd37   : > { %v5814_v3 = vor.u32 %v5812_v26, %v5811_v11  ;;  %v5834_v37 = vsel %vm8664_vm12, %v5811_v11, 0  ;;  %vm11886_vm12 = vcmp.ne.s16.totalorder %v11885_v46, 0  ;;  %6710 = vmatprep.subr.bf16.mxu0 %v11638_v18  ;;  %v5835_v11 = vsel %vm8806_vm8, %v10899_v9, 0  ;;  %vm11892_vm6 = vmmov %vm11889_vm0 }
 0xd38   : > { %v5806_v51 = vor.u32 %v5804_v49, %v5803_v42  ;;  %v5867_v24 = vsel %vm11881_vm1, %v5834_v37, 0  ;;  %v8386_v49 = vld [vmem:[%s11463_s6 + $0x118] sm:$0xff]   ;;  %v5836_v37 = vsel %vm8920_vm4, %v10892_v21, 0  ;;  %vm11893_vm8 = vmmov %vm11889_vm0  ;;  %v5837_v9 = vsel %vm8933_vm9, %v10920_v23, 0 }
 0xd39   : > { %v11057_v31 = vsel %vm11882_vm14, %v5803_v42, %v5814_v3  ;;  %v5964_v2 = vrot.slane %v5867_v24, 1  ;;  %vm11894_vm1 = vmmov %vm11889_vm0 }
 0xd3a   : > { %v11060_v41 = vsel %vm11883_vm7, %v5795_v45, %v5806_v51  ;;  %v5866_v63 = vsel %vm11884_vm10, %v11057_v31, 0  ;;  %6711 = vmatpush1.bf16.msra.mxu0 %v8384_v35  ;;  %vm11895_vm14 = vmmov %vm11889_vm0 }
 0xd3b   : > { %v5865_v27 = vsel %vm11886_vm12, %v11060_v41, 0  ;;  %v5962_v55 = vrot.slane %v5866_v63, 1  ;;  %6712 = vmatprep.subr.bf16.mxu0 %v11638_v18  ;;  %vm11896_vm4 = vmmov %vm11889_vm0 }
 0xd3c   : > { %v5960_v26 = vrot.slane %v5865_v27, 1  ;;  %vm11897_vm7 = vmmov %vm11889_vm0 }
 0xd3d   : > { %v11070_v38 = vsel %vm11873_vm2, %v5962_v55, %v5964_v2  ;;  %vm11898_vm10 = vmmov %vm11889_vm0  ;;  %vm11901_vm2 = vnez %v11606_v56 }
 0xd3e   : > { %v11073_v19 = vsel %vm11887_vm15, %v5958_v40, %v5960_v26  ;;  %v11076_v45 = vsel %vm11888_vm13, %v5960_v26, %v5962_v55  ;;  %v8385_v40 = vld [vmem:[%s11463_s6 + $0x110] sm:$0xff]   ;;  %vm11899_vm9 = vmmov %vm11889_vm0  ;;  %v5839_v24 = vsel %vm11901_vm2, %v10941_v1, 0  ;;  %vm11916_vm2 = vnez %v11629_v33 }
 0xd3f   : > { %6713 = vmatpush1.bf16.msra.mxu0 %v8385_v40  ;;  %vm11900_vm12 = vmmov %vm11889_vm0  ;;  %v5843_v27 = vsel %vm11916_vm2, %v10988_v57, 0  ;;  %vm11931_vm2 = vnez %v11650_v28 }
 0xd40   : > { %6714 = vmatprep.subr.bf16.mxu0 %v11638_v18  ;;  %vm11902_vm15 = vmmov %vm11889_vm0 }
 0xd41   : > { %vm11904_vm13 = vmmov %vm11889_vm0 }
 0xd43   : > { %6715 = vmatpush1.bf16.msra.mxu0 %v8386_v49 }
 0xd6d   : > { %v5887_v3 = vpop.permute.xlu1 %5886 }
 0xd6e   : > { %v5885_v16 = vpop.permute.xlu0 %5884  ;;  %v11105_v51 = vsel %vm11892_vm6, %v5836_v37, %v5887_v3  ;;  %vm11908_vm6 = vmmov %vm11894_vm1 }
 0xd6f   : > { %v5968_v42 = vsel %vm11889_vm0, %v5835_v11, %v5885_v16  ;;  %vm11905_vm0 = vnez %v11609_v58 }
 0xd70   : > { %6232 = vmatmul.mubr.bf16.vlgmr.msra.gmra.mrb[88].mxu1 %v5968_v42  ;;  %6475 = vmatmul.mubr.bf16.gmra.mrb[80].mxu0 %v5968_v42  ;;  %v5840_v2 = vsel %vm11905_vm0, %v10938_v7, 0  ;;  %vm11920_vm0 = vnez %v11640_v61 }
 0xd71   : > { %7617 = vmatprep.mubr.msk.bf16.mxu1 %vm11890_vm5, %v10932_v22  ;;  %7645 = vmatprep.mubr.msk.bf16.mxu0 %vm11891_vm3, %v10932_v22  ;;  %vm11906_vm5 = vmmov %vm11894_vm1  ;;  %v5844_v55 = vsel %vm11920_vm0, %v10985_v8, 0  ;;  %vm11935_vm0 = vnez %v11655_v62 }
 0xd72   : > { %vm11907_vm3 = vmmov %vm11894_vm1 }
 0xd75   : > { %v5891_v21 = vpop.permute.xlu1 %5890 }
 0xd76   : > { %v5889_v60 = vpop.permute.xlu0 %5888  ;;  %v11129_v59 = vsel %vm11898_vm10, %v5838_v12, %v5891_v21  ;;  %vm11913_vm10 = vmmov %vm11894_vm1 }
 0xd77   : > { %v11117_v53 = vsel %vm11895_vm14, %v5837_v9, %v5889_v60  ;;  %vm11910_vm14 = vmmov %vm11894_vm1 }
 0xd78   : > { %6240 = vmatmul.mubr.bf16.gmra.mrb[92].mxu1 %v11105_v51  ;;  %6483 = vmatmul.mubr.bf16.gmra.mrb[84].mxu0 %v11105_v51 }
 0xd79   : > { %7618 = vmatprep.mubr.msk.bf16.mxu1 %vm11893_vm8, %v10935_v15  ;;  %7646 = vmatprep.mubr.msk.bf16.mxu0 %vm11894_vm1, %v10935_v15  ;;  %vm11909_vm8 = vnez %v11613_v39 }
 0xd7a   : > { %v5841_v63 = vsel %vm11909_vm8, %v10964_v6, 0  ;;  %vm11924_vm8 = vnez %v11642_v17 }
 0xd7b   : > { %v5845_v26 = vsel %vm11924_vm8, %v11012_v20, 0  ;;  %v5847_v20 = vsel %vm11931_vm2, %v11033_v14, 0  ;;  %v11939_v14 = vld [vmem:[#allocation24_spill] sm:$0xff]  ;;  %vm11948_vm2 = vmmov %vm11894_vm1 }
 0xd7c   : > { %vm11940_vm8 = vnez %v11939_v14 }
 0xd7d   : > { %v5895_v25 = vpop.permute.xlu1 %5894  ;;  %v5849_v16 = vsel %vm11940_vm8, %v11060_v41, 0 }
 0xd7e   : > { %v5893_v23 = vpop.permute.xlu0 %5892  ;;  %v11153_v56 = vsel %vm11906_vm5, %v5840_v2, %v5895_v25  ;;  %vm11921_vm5 = vmmov %vm11894_vm1 }
 0xd7f   : > { %v11141_v5 = vsel %vm11902_vm15, %v5839_v24, %v5893_v23  ;;  %vm11917_vm15 = vmmov %vm11894_vm1 }
 0xd80   : > { %6248 = vmatmul.mubr.bf16.gmra.mrb[96].mxu1 %v11117_v53  ;;  %6491 = vmatmul.mubr.bf16.gmra.mrb[88].mxu0 %v11117_v53 }
 0xd81   : > { %7619 = vmatprep.mubr.msk.bf16.mxu1 %vm11896_vm4, %v10952_v36  ;;  %7647 = vmatprep.mubr.msk.bf16.mxu0 %vm11897_vm7, %v10952_v36  ;;  %vm11911_vm4 = vmmov %vm11894_vm1  ;;  %vm11912_vm7 = vnez %v11616_v44 }
 0xd82   : > { %v5842_v46 = vsel %vm11912_vm7, %v10961_v13, 0  ;;  %vm11927_vm7 = vnez %v11648_v32 }
 0xd83   : > { %v5846_v8 = vsel %vm11927_vm7, %v11009_v0, 0  ;;  %v5848_v0 = vsel %vm11935_vm0, %v11030_v54, 0  ;;  %v11943_v54 = vld [vmem:[#allocation25_spill] sm:$0xff]  ;;  %vm11952_vm0 = vmmov %vm11894_vm1 }
 0xd84   : > { %vm11944_vm7 = vnez %v11943_v54  ;;  %vm11956_vm8 = vmmov %vm11952_vm0 }
 0xd85   : > { %v5899_v7 = vpop.permute.xlu1 %5898  ;;  %v5850_v42 = vsel %vm11944_vm7, %v11057_v31, 0  ;;  %vm11960_vm7 = vmmov %vm11952_vm0 }
 0xd86   : > { %v5897_v1 = vpop.permute.xlu0 %5896  ;;  %v11177_v39 = vsel %vm11913_vm10, %v5842_v46, %v5899_v7  ;;  %vm11928_vm10 = vmmov %vm11894_vm1 }
 0xd87   : > { %v11165_v58 = vsel %vm11894_vm1, %v5841_v63, %v5897_v1 }
 0xd88   : > { %6256 = vmatmul.mubr.bf16.gmra.mrb[100].mxu1 %v11129_v59  ;;  %6499 = vmatmul.mubr.bf16.gmra.mrb[92].mxu0 %v11129_v59 }
 0xd89   : > { %7620 = vmatprep.mubr.msk.bf16.mxu1 %vm11899_vm9, %v10955_v29  ;;  %7648 = vmatprep.mubr.msk.bf16.mxu0 %vm11900_vm12, %v10955_v29  ;;  %vm11914_vm9 = vmmov %vm11894_vm1 }
 0xd8a   : > { %vm11915_vm12 = vmmov %vm11894_vm1 }
 0xd8d   : > { %v5903_v13 = vpop.permute.xlu1 %5902 }
 0xd8e   : > { %v5901_v6 = vpop.permute.xlu0 %5900  ;;  %v6004_v33 = vsel %vm11921_vm5, %v5844_v55, %v5903_v13  ;;  %vm11936_vm5 = vmmov %vm11894_vm1 }
 0xd8f   : > { %v11189_v44 = vsel %vm11917_vm15, %v5843_v27, %v5901_v6  ;;  %vm11932_vm15 = vmmov %vm11894_vm1 }
 0xd90   : > { %6264 = vmatmul.mubr.bf16.gmra.mrb[104].mxu1 %v11141_v5  ;;  %6507 = vmatmul.mubr.bf16.gmra.mrb[96].mxu0 %v11141_v5 }
 0xd91   : > { %7621 = vmatprep.mubr.msk.bf16.mxu1 %vm11903_vm11, %v10976_v30  ;;  %7649 = vmatprep.mubr.msk.bf16.mxu0 %vm11904_vm13, %v10976_v30  ;;  %vm11918_vm11 = vmmov %vm11894_vm1 }
 0xd92   : > { %vm11919_vm13 = vmmov %vm11894_vm1 }
 0xd95   : > { %v5907_v61 = vpop.permute.xlu1 %5906 }
 0xd96   : > { %v5905_v57 = vpop.permute.xlu0 %5904  ;;  %v6012_v35 = vsel %vm11928_vm10, %v5846_v8, %v5907_v61  ;;  %vm11945_vm10 = vmmov %vm11894_vm1 }
 0xd97   : > { %v6008_v47 = vsel %vm11894_vm1, %v5845_v26, %v5905_v57 }
 0xd98   : > { %6272 = vmatmul.mubr.bf16.gmra.mrb[108].mxu1 %v11153_v56  ;;  %6515 = vmatmul.mubr.bf16.gmra.mrb[100].mxu0 %v11153_v56 }
 0xd99   : > { %7622 = vmatprep.mubr.msk.bf16.mxu1 %vm11907_vm3, %v10979_v52  ;;  %7650 = vmatprep.mubr.msk.bf16.mxu0 %vm11908_vm6, %v10979_v52  ;;  %vm11922_vm3 = vmmov %vm11894_vm1 }
 0xd9a   : > { %vm11923_vm6 = vmmov %vm11894_vm1 }
 0xd9d   : > { %v5911_v32 = vpop.permute.xlu1 %5910 }
 0xd9e   : > { %v5909_v17 = vpop.permute.xlu0 %5908  ;;  %v6020_v49 = vsel %vm11936_vm5, %v5848_v0, %v5911_v32  ;;  %vm11953_vm5 = vmmov %vm11952_vm0 }
 0xd9f   : > { %v6016_v40 = vsel %vm11932_vm15, %v5847_v20, %v5909_v17  ;;  %vm11949_vm15 = vmmov %vm11894_vm1 }
 0xda0   : > { %6280 = vmatmul.mubr.bf16.gmra.mrb[112].mxu1 %v11165_v58  ;;  %6523 = vmatmul.mubr.bf16.gmra.mrb[104].mxu0 %v11165_v58 }
 0xda1   : > { %7623 = vmatprep.mubr.msk.bf16.mxu1 %vm11910_vm14, %v11000_v48  ;;  %7651 = vmatprep.mubr.msk.bf16.mxu0 %vm11911_vm4, %v11000_v48  ;;  %vm11925_vm14 = vmmov %vm11894_vm1 }
 0xda2   : > { %vm11926_vm4 = vmmov %vm11894_vm1 }
 0xda5   : > { %v5915_v62 = vpop.permute.xlu1 %5914 }
 0xda6   : > { %v5913_v28 = vpop.permute.xlu0 %5912  ;;  %v6028_v3 = vsel %vm11945_vm10, %v5850_v42, %v5915_v62  ;;  %vm11961_vm10 = vmmov %vm11952_vm0 }
 0xda7   : > { %v6024_v11 = vsel %vm11894_vm1, %v5849_v16, %v5913_v28 }
 0xda8   : > { %6288 = vmatmul.mubr.bf16.gmra.mrb[116].mxu1 %v11177_v39  ;;  %6531 = vmatmul.mubr.bf16.gmra.mrb[108].mxu0 %v11177_v39 }
 0xda9   : > { %7624 = vmatprep.mubr.msk.bf16.mxu1 %vm11914_vm9, %v11003_v34  ;;  %7652 = vmatprep.mubr.msk.bf16.mxu0 %vm11915_vm12, %v11003_v34  ;;  %vm11929_vm9 = vmmov %vm11894_vm1 }
 0xdaa   : > { %vm11930_vm12 = vmmov %vm11894_vm1 }
 0xdb0   : > { %6296 = vmatmul.mubr.bf16.gmra.mrb[120].mxu1 %v11189_v44  ;;  %6539 = vmatmul.mubr.bf16.gmra.mrb[112].mxu0 %v11189_v44 }
 0xdb1   : > { %7625 = vmatprep.mubr.msk.bf16.mxu1 %vm11918_vm11, %v11024_v10  ;;  %7653 = vmatprep.mubr.msk.bf16.mxu0 %vm11919_vm13, %v11024_v10  ;;  %vm11933_vm11 = vmmov %vm11894_vm1 }
 0xdb2   : > { %vm11934_vm13 = vmmov %vm11894_vm1 }
 0xdb8   : > { %6304 = vmatmul.mubr.bf16.gmra.mrb[124].mxu1 %v6004_v33  ;;  %6547 = vmatmul.mubr.bf16.gmra.mrb[116].mxu0 %v6004_v33 }
 0xdb9   : > { %7626 = vmatprep.mubr.msk.bf16.mxu1 %vm11922_vm3, %v11027_v4  ;;  %7654 = vmatprep.mubr.msk.bf16.mxu0 %vm11923_vm6, %v11027_v4  ;;  %vm11937_vm3 = vmmov %vm11894_vm1 }
 0xdba   : > { %vm11938_vm6 = vmmov %vm11894_vm1 }
 0xdc0   : > { %6312 = vmatmul.mubr.bf16.gmra.mrb[128].mxu1 %v6008_v47  ;;  %6555 = vmatmul.mubr.bf16.gmra.mrb[120].mxu0 %v6008_v47 }
 0xdc1   : > { %7627 = vmatprep.mubr.msk.bf16.mxu1 %vm11925_vm14, %v11044_v50  ;;  %7655 = vmatprep.mubr.msk.bf16.mxu0 %vm11926_vm4, %v11044_v50  ;;  %vm11941_vm14 = vmmov %vm11894_vm1 }
 0xdc2   : > { %vm11942_vm4 = vmmov %vm11894_vm1 }
 0xdc8   : > { %6320 = vmatmul.mubr.bf16.gmra.mrb[132].mxu1 %v6012_v35  ;;  %6563 = vmatmul.mubr.bf16.gmra.mrb[124].mxu0 %v6012_v35 }
 0xdc9   : > { %7628 = vmatprep.mubr.msk.bf16.mxu1 %vm11929_vm9, %v11047_v43  ;;  %7656 = vmatprep.mubr.msk.bf16.mxu0 %vm11930_vm12, %v11047_v43  ;;  %vm11946_vm9 = vmmov %vm11894_vm1 }
 0xdca   : > { %vm11947_vm12 = vmmov %vm11894_vm1 }
 0xdd0   : > { %6328 = vmatmul.mubr.bf16.gmra.mrb[136].mxu1 %v6016_v40  ;;  %6571 = vmatmul.mubr.bf16.gmra.mrb[128].mxu0 %v6016_v40 }
 0xdd1   : > { %7629 = vmatprep.mubr.msk.bf16.mxu1 %vm11933_vm11, %v11073_v19  ;;  %7657 = vmatprep.mubr.msk.bf16.mxu0 %vm11934_vm13, %v11073_v19  ;;  %vm11950_vm11 = vmmov %vm11894_vm1 }
 0xdd2   : > { %vm11951_vm13 = vmmov %vm11894_vm1 }
 0xdd3   : > { %vm11957_vm1 = vmmov %vm11952_vm0 }
 0xdd8   : > { %6336 = vmatmul.mubr.bf16.gmra.mrb[140].mxu1 %v6020_v49  ;;  %6579 = vmatmul.mubr.bf16.gmra.mrb[132].mxu0 %v6020_v49 }
 0xdd9   : > { %7630 = vmatprep.mubr.msk.bf16.mxu1 %vm11937_vm3, %v11076_v45  ;;  %7658 = vmatprep.mubr.msk.bf16.mxu0 %vm11938_vm6, %v11076_v45  ;;  %vm11954_vm3 = vmmov %vm11952_vm0 }
 0xdda   : > { %vm11955_vm6 = vmmov %vm11952_vm0 }
 0xde0   : > { %6344 = vmatmul.mubr.bf16.gmra.mrb[144].mxu1 %v6024_v11  ;;  %6587 = vmatmul.mubr.bf16.gmra.mrb[136].mxu0 %v6024_v11 }
 0xde1   : > { %7631 = vmatprep.mubr.msk.bf16.mxu1 %vm11941_vm14, %v11070_v38  ;;  %7695 = vmatprep.mubr.msk.bf16.mxu0 %vm11942_vm4, %v10932_v22  ;;  %vm11958_vm14 = vmmov %vm11952_vm0 }
 0xde2   : > { %vm11959_vm4 = vmmov %vm11952_vm0 }
 0xde8   : > { %6352 = vmatmul.mubr.bf16.gmra.mrb[148].mxu1 %v6028_v3  ;;  %6725 = vmatmul.mubr.bf16.vlgmr.msra.gmra.mrb[76].mxu0 %v11105_v51 }
 0xde9   : > { %7696 = vmatprep.mubr.msk.bf16.mxu0 %vm11946_vm9, %v10935_v15  ;;  %vm11962_vm9 = vmmov %vm11952_vm0 }
 0xdf0   : > { %6733 = vmatmul.mubr.bf16.gmra.mrb[80].mxu0 %v11117_v53 }
 0xdf1   : > { %7697 = vmatprep.mubr.msk.bf16.mxu0 %vm11947_vm12, %v10952_v36  ;;  %vm11963_vm12 = vmmov %vm11952_vm0 }
 0xdf8   : > { %6741 = vmatmul.mubr.bf16.gmra.mrb[84].mxu0 %v11129_v59 }
 0xdf9   : > { %7698 = vmatprep.mubr.msk.bf16.mxu0 %vm11948_vm2, %v10955_v29  ;;  %vm11964_vm2 = vmmov %vm11952_vm0 }
 0xe00   : > { %6749 = vmatmul.mubr.bf16.gmra.mrb[88].mxu0 %v11141_v5 }
 0xe01   : > { %7699 = vmatprep.mubr.msk.bf16.mxu0 %vm11949_vm15, %v10976_v30  ;;  %vm11965_vm15 = vmmov %vm11952_vm0 }
 0xe08   : > { %6757 = vmatmul.mubr.bf16.gmra.mrb[92].mxu0 %v11153_v56 }
 0xe09   : > { %7700 = vmatprep.mubr.msk.bf16.mxu0 %vm11950_vm11, %v10979_v52  ;;  %vm11966_vm11 = vmmov %vm11952_vm0 }
 0xe10   : > { %6765 = vmatmul.mubr.bf16.gmra.mrb[96].mxu0 %v11165_v58 }
 0xe11   : > { %7701 = vmatprep.mubr.msk.bf16.mxu0 %vm11951_vm13, %v11000_v48  ;;  %vm11967_vm13 = vmmov %vm11952_vm0 }
 0xe18   : > { %6773 = vmatmul.mubr.bf16.gmra.mrb[100].mxu0 %v11177_v39 }
 0xe19   : > { %7702 = vmatprep.mubr.msk.bf16.mxu0 %vm11952_vm0, %v11003_v34 }
 0xe20   : > { %6781 = vmatmul.mubr.bf16.gmra.mrb[104].mxu0 %v11189_v44 }
 0xe21   : > { %7703 = vmatprep.mubr.msk.bf16.mxu0 %vm11953_vm5, %v11024_v10  ;;  %vm11968_vm5 = vmmov %vm11952_vm0 }
 0xe28   : > { %6789 = vmatmul.mubr.bf16.gmra.mrb[108].mxu0 %v6004_v33 }
 0xe29   : > { %7704 = vmatprep.mubr.msk.bf16.mxu0 %vm11954_vm3, %v11027_v4  ;;  %vm11969_vm3 = vmmov %vm11952_vm0 }
 0xe30   : > { %6797 = vmatmul.mubr.bf16.gmra.mrb[112].mxu0 %v6008_v47 }
 0xe31   : > { %7705 = vmatprep.mubr.msk.bf16.mxu0 %vm11955_vm6, %v11044_v50  ;;  %vm11970_vm6 = vmmov %vm11952_vm0 }
 0xe38   : > { %6805 = vmatmul.mubr.bf16.gmra.mrb[116].mxu0 %v6012_v35 }
 0xe39   : > { %7706 = vmatprep.mubr.msk.bf16.mxu0 %vm11956_vm8, %v11047_v43  ;;  %vm11971_vm8 = vmmov %vm11952_vm0 }
 0xe40   : > { %6813 = vmatmul.mubr.bf16.gmra.mrb[120].mxu0 %v6016_v40 }
 0xe41   : > { %7707 = vmatprep.mubr.msk.bf16.mxu0 %vm11957_vm1, %v11073_v19  ;;  %vm11972_vm1 = vmmov %vm11952_vm0 }
 0xe43   : > { %v11281_v22 = vpop.f32.mrb[88].mxu1 }
 0xe44   : > { %v6235_v15 = vpop.f32.mrb[89].mxu1 }
 0xe45   : > { %v11283_v36 = vpop.f32.mrb[90].mxu1 }
 0xe46   : > { %v6238_v29 = vpop.f32.mrb[91].mxu1 }
 0xe48   : > { %6821 = vmatmul.mubr.bf16.gmra.mrb[124].mxu0 %v6020_v49 }
 0xe49   : > { %7708 = vmatprep.mubr.msk.bf16.mxu0 %vm11958_vm14, %v11076_v45  ;;  %vm11973_vm14 = vmmov %vm11952_vm0 }
 0xe4b   : > { %v11287_v30 = vpop.f32.mrb[92].mxu1 }
 0xe4c   : > { %v6243_v52 = vpop.f32.mrb[93].mxu1 }
 0xe4d   : > { %v11289_v48 = vpop.f32.mrb[94].mxu1 }
 0xe4e   : > { %v6246_v34 = vpop.f32.mrb[95].mxu1 }
 0xe50   : > { %6829 = vmatmul.mubr.bf16.gmra.mrb[128].mxu0 %v6024_v11 }
 0xe51   : > { %7709 = vmatprep.mubr.msk.bf16.mxu0 %vm11959_vm4, %v11070_v38  ;;  %vm11974_vm4 = vmmov %vm11952_vm0 }
 0xe53   : > { %v11293_v10 = vpop.f32.mrb[96].mxu1 }
 0xe54   : > { %v6251_v4 = vpop.f32.mrb[97].mxu1 }
 0xe55   : > { %v11295_v50 = vpop.f32.mrb[98].mxu1 }
 0xe56   : > { %v6254_v43 = vpop.f32.mrb[99].mxu1 }
 0xe58   : > { %6837 = vmatmul.mubr.bf16.gmra.mrb[132].mxu0 %v6028_v3 }
 0xe59   : > { %6844 = vmatprep.mubr.bf16.mxu0 %v11638_v18 }
 0xe5b   : > { %v11298_v31 = vpop.f32.mrb[100].mxu1 }
 0xe5c   : > { %v6259_v41 = vpop.f32.mrb[101].mxu1 }
 0xe5d   : > { %v11300_v19 = vpop.f32.mrb[102].mxu1 }
 0xe5e   : > { %v6262_v45 = vpop.f32.mrb[103].mxu1 }
 0xe60   : > { %6845 = vmatmul.mubr.bf16.gmra.mrb[136].mxu0 %v11638_v18 }
 0xe63   : > { %v11303_v37 = vpop.f32.mrb[104].mxu1 }
 0xe64   : > { %v6267_v38 = vpop.f32.mrb[105].mxu1 }
 0xe65   : > { %v11305_v51 = vpop.f32.mrb[106].mxu1 }
 0xe66   : > { %v6270_v60 = vpop.f32.mrb[107].mxu1 }
 0xe6b   : > { %v11307_v9 = vpop.f32.mrb[108].mxu1 }
 0xe6c   : > { %v6275_v53 = vpop.f32.mrb[109].mxu1 }
 0xe6d   : > { %v11309_v21 = vpop.f32.mrb[110].mxu1 }
 0xe6e   : > { %v6278_v12 = vpop.f32.mrb[111].mxu1 }
 0xe73   : > { %v11311_v59 = vpop.f32.mrb[112].mxu1 }
 0xe74   : > { %v6283_v23 = vpop.f32.mrb[113].mxu1 }
 0xe75   : > { %v11313_v24 = vpop.f32.mrb[114].mxu1 }
 0xe76   : > { %v6286_v5 = vpop.f32.mrb[115].mxu1 }
 0xe7b   : > { %v11315_v25 = vpop.f32.mrb[116].mxu1 }
 0xe7c   : > { %v6291_v18 = vpop.f32.mrb[117].mxu1 }
 0xe7d   : > { %v11317_v2 = vpop.f32.mrb[118].mxu1 }
 0xe7e   : > { %v6294_v56 = vpop.f32.mrb[119].mxu1 }
 0xe83   : > { %v11319_v1 = vpop.f32.mrb[120].mxu1 }
 0xe84   : > { %v6299_v63 = vpop.f32.mrb[121].mxu1 }
 0xe85   : > { %v11321_v58 = vpop.f32.mrb[122].mxu1 }
 0xe86   : > { %v6302_v7 = vpop.f32.mrb[123].mxu1 }
 0xe8b   : > { %v11323_v46 = vpop.f32.mrb[124].mxu1 }
 0xe8c   : > { %v6307_v39 = vpop.f32.mrb[125].mxu1 }
 0xe8d   : > { %v11325_v6 = vpop.f32.mrb[126].mxu1 }
 0xe8e   : > { %v6310_v27 = vpop.f32.mrb[127].mxu1 }
 0xe93   : > { %v11327_v44 = vpop.f32.mrb[128].mxu1 }
 0xe94   : > { %v6315_v13 = vpop.f32.mrb[129].mxu1 }
 0xe95   : > { %v11329_v55 = vpop.f32.mrb[130].mxu1 }
 0xe96   : > { %v6318_v33 = vpop.f32.mrb[131].mxu1 }
 0xe9b   : > { %v11331_v57 = vpop.f32.mrb[132].mxu1 }
 0xe9c   : > { %v6323_v26 = vpop.f32.mrb[133].mxu1 }
 0xe9d   : > { %v11333_v47 = vpop.f32.mrb[134].mxu1 }
 0xe9e   : > { %v6326_v61 = vpop.f32.mrb[135].mxu1 }
 0xea3   : > { %v11335_v8 = vpop.f32.mrb[136].mxu1 }
 0xea4   : > { %v6331_v35 = vpop.f32.mrb[137].mxu1 }
 0xea5   : > { %v11337_v17 = vpop.f32.mrb[138].mxu1 }
 0xea6   : > { %v6334_v20 = vpop.f32.mrb[139].mxu1 }
 0xeab   : > { %v11339_v40 = vpop.f32.mrb[140].mxu1 }
 0xeac   : > { %v6339_v32 = vpop.f32.mrb[141].mxu1 }
 0xead   : > { %v11341_v0 = vpop.f32.mrb[142].mxu1 }
 0xeae   : > { %v6342_v49 = vpop.f32.mrb[143].mxu1 }
 0xeb3   : > { %v11343_v28 = vpop.f32.mrb[144].mxu1 }
 0xeb4   : > { %v6347_v14 = vpop.f32.mrb[145].mxu1 }
 0xeb5   : > { %v11345_v16 = vpop.f32.mrb[146].mxu1 }
 0xeb6   : > { %v6350_v11 = vpop.f32.mrb[147].mxu1 }
 0xebb   : > { %v11347_v62 = vpop.f32.mrb[148].mxu1  ;;  %v6726_v54 = vpop.f32.mrb[76].mxu0 }
 0xebc   : > { %v7958_v42 = vadd.f32 %v6726_v54, %v11281_v22  ;;  %v6355_v3 = vpop.f32.mrb[149].mxu1  ;;  %v6728_v15 = vpop.f32.mrb[77].mxu0 }
 0xebd   : > { %v11357_v29 = vpop.f32.mrb[150].mxu1  ;;  %v6729_v52 = vpop.f32.mrb[78].mxu0 }
 0xebe   : > { %6885 = vst.msk [vmem:[%s11354_s30] sm:$0xff] %vm11960_vm7, %v7958_v42  ;;  %v7959_v34 = vadd.f32 %v6729_v52, %v11283_v36  ;;  %v6358_v4 = vpop.f32.mrb[151].mxu1  ;;  %v6731_v43 = vpop.f32.mrb[79].mxu0  ;;  %vm11975_vm7 = vmmov %vm11952_vm0 }
 0xec0   : > { %6886 = vst.msk [vmem:[%s11354_s30 + $0x8] sm:$0xff] %vm11961_vm10, %v7959_v34  ;;  %vm11976_vm10 = vmmov %vm11952_vm0 }
 0xec3   : > { %v6734_v41 = vpop.f32.mrb[80].mxu0 }
 0xec4   : > { %v7960_v45 = vadd.f32 %v6734_v41, %v11287_v30  ;;  %v6736_v22 = vpop.f32.mrb[81].mxu0 }
 0xec5   : > { %v6737_v38 = vpop.f32.mrb[82].mxu0 }
 0xec6   : > { %6887 = vst.msk [vmem:[%s11354_s30 + $0x10] sm:$0xff] %vm11962_vm9, %v7960_v45  ;;  %v7961_v60 = vadd.f32 %v6737_v38, %v11289_v48  ;;  %v6739_v53 = vpop.f32.mrb[83].mxu0  ;;  %vm11977_vm9 = vmmov %vm11952_vm0 }
 0xec8   : > { %6888 = vst.msk [vmem:[%s11354_s30 + $0x18] sm:$0xff] %vm11963_vm12, %v7961_v60  ;;  %vm11978_vm12 = vmmov %vm11952_vm0 }
 0xecb   : > { %v6742_v36 = vpop.f32.mrb[84].mxu0 }
 0xecc   : > { %v7962_v12 = vadd.f32 %v6742_v36, %v11293_v10  ;;  %v6744_v23 = vpop.f32.mrb[85].mxu0 }
 0xecd   : > { %v6745_v5 = vpop.f32.mrb[86].mxu0 }
 0xece   : > { %6889 = vst.msk [vmem:[%s11354_s30 + $0x20] sm:$0xff] %vm11964_vm2, %v7962_v12  ;;  %v7963_v30 = vadd.f32 %v6745_v5, %v11295_v50  ;;  %v6747_v18 = vpop.f32.mrb[87].mxu0  ;;  %vm11979_vm2 = vmmov %vm11952_vm0 }
 0xed0   : > { %6890 = vst.msk [vmem:[%s11354_s30 + $0x28] sm:$0xff] %vm11965_vm15, %v7963_v30  ;;  %vm11980_vm15 = vmmov %vm11952_vm0 }
 0xed3   : > { %v6750_v56 = vpop.f32.mrb[88].mxu0 }
 0xed4   : > { %v7964_v48 = vadd.f32 %v6750_v56, %v11298_v31  ;;  %v6752_v63 = vpop.f32.mrb[89].mxu0 }
 0xed5   : > { %v6753_v7 = vpop.f32.mrb[90].mxu0 }
 0xed6   : > { %6891 = vst.msk [vmem:[%s11354_s30 + $0x30] sm:$0xff] %vm11966_vm11, %v7964_v48  ;;  %v7965_v10 = vadd.f32 %v6753_v7, %v11300_v19  ;;  %v6755_v39 = vpop.f32.mrb[91].mxu0  ;;  %vm11981_vm11 = vmmov %vm11952_vm0 }
 0xed8   : > { %6892 = vst.msk [vmem:[%s11354_s30 + $0x38] sm:$0xff] %vm11967_vm13, %v7965_v10  ;;  %vm11982_vm13 = vmmov %vm11952_vm0 }
 0xedb   : > { %v6758_v27 = vpop.f32.mrb[92].mxu0 }
 0xedc   : > { %v7966_v50 = vadd.f32 %v6758_v27, %v11303_v37  ;;  %v6760_v13 = vpop.f32.mrb[93].mxu0 }
 0xedd   : > { %v6761_v33 = vpop.f32.mrb[94].mxu0 }
 0xede   : > { %6893 = vst.msk [vmem:[%s11354_s30 + $0x40] sm:$0xff] %vm11952_vm0, %v7966_v50  ;;  %v7967_v31 = vadd.f32 %v6761_v33, %v11305_v51  ;;  %v6763_v26 = vpop.f32.mrb[95].mxu0 }
 0xee0   : > { %6894 = vst.msk [vmem:[%s11354_s30 + $0x48] sm:$0xff] %vm11968_vm5, %v7967_v31  ;;  %vm11983_vm5 = vmmov %vm11952_vm0 }
 0xee3   : > { %v6766_v61 = vpop.f32.mrb[96].mxu0 }
 0xee4   : > { %v7968_v19 = vadd.f32 %v6766_v61, %v11307_v9  ;;  %v6768_v35 = vpop.f32.mrb[97].mxu0 }
 0xee5   : > { %v6769_v20 = vpop.f32.mrb[98].mxu0 }
 0xee6   : > { %6895 = vst.msk [vmem:[%s11354_s30 + $0x50] sm:$0xff] %vm11969_vm3, %v7968_v19  ;;  %v7969_v37 = vadd.f32 %v6769_v20, %v11309_v21  ;;  %v6771_v32 = vpop.f32.mrb[99].mxu0  ;;  %vm11984_vm3 = vmmov %vm11952_vm0 }
 0xee8   : > { %6896 = vst.msk [vmem:[%s11354_s30 + $0x58] sm:$0xff] %vm11970_vm6, %v7969_v37  ;;  %vm11985_vm6 = vmmov %vm11952_vm0 }
 0xeeb   : > { %v6774_v49 = vpop.f32.mrb[100].mxu0 }
 0xeec   : > { %v7970_v51 = vadd.f32 %v6774_v49, %v11311_v59  ;;  %v6776_v14 = vpop.f32.mrb[101].mxu0 }
 0xeed   : > { %v6777_v11 = vpop.f32.mrb[102].mxu0 }
 0xeee   : > { %6897 = vst.msk [vmem:[%s11354_s30 + $0x60] sm:$0xff] %vm11971_vm8, %v7970_v51  ;;  %v7971_v9 = vadd.f32 %v6777_v11, %v11313_v24  ;;  %v6779_v54 = vpop.f32.mrb[103].mxu0  ;;  %vm11986_vm8 = vmmov %vm11952_vm0 }
 0xef0   : > { %6898 = vst.msk [vmem:[%s11354_s30 + $0x68] sm:$0xff] %vm11972_vm1, %v7971_v9  ;;  %vm11987_vm1 = vmmov %vm11952_vm0 }
 0xef3   : > { %v6782_v42 = vpop.f32.mrb[104].mxu0 }
 0xef4   : > { %v7972_v21 = vadd.f32 %v6782_v42, %v11315_v25  ;;  %v6784_v3 = vpop.f32.mrb[105].mxu0 }
 0xef5   : > { %v6785_v15 = vpop.f32.mrb[106].mxu0 }
 0xef6   : > { %6899 = vst.msk [vmem:[%s11354_s30 + $0x70] sm:$0xff] %vm11973_vm14, %v7972_v21  ;;  %v7973_v59 = vadd.f32 %v6785_v15, %v11317_v2  ;;  %v6787_v52 = vpop.f32.mrb[107].mxu0  ;;  %vm11988_vm14 = vmmov %vm11952_vm0 }
 0xef8   : > { %6900 = vst.msk [vmem:[%s11354_s30 + $0x78] sm:$0xff] %vm11974_vm4, %v7973_v59  ;;  %vm11989_vm4 = vmmov %vm11952_vm0 }
 0xefb   : > { %v6790_v34 = vpop.f32.mrb[108].mxu0 }
 0xefc   : > { %v7974_v24 = vadd.f32 %v6790_v34, %v11319_v1  ;;  %v6792_v4 = vpop.f32.mrb[109].mxu0 }
 0xefd   : > { %v6793_v43 = vpop.f32.mrb[110].mxu0 }
 0xefe   : > { %6901 = vst.msk [vmem:[%s11354_s30 + $0x80] sm:$0xff] %vm11975_vm7, %v7974_v24  ;;  %v7975_v25 = vadd.f32 %v6793_v43, %v11321_v58  ;;  %v6795_v41 = vpop.f32.mrb[111].mxu0 }
 0xf00   : > { %6902 = vst.msk [vmem:[%s11354_s30 + $0x88] sm:$0xff] %vm11976_vm10, %v7975_v25 }
 0xf03   : > { %v6798_v45 = vpop.f32.mrb[112].mxu0 }
 0xf04   : > { %v7976_v2 = vadd.f32 %v6798_v45, %v11323_v46  ;;  %v6800_v22 = vpop.f32.mrb[113].mxu0 }
 0xf05   : > { %v6801_v38 = vpop.f32.mrb[114].mxu0 }
 0xf06   : > { %6903 = vst.msk [vmem:[%s11354_s30 + $0x90] sm:$0xff] %vm11977_vm9, %v7976_v2  ;;  %v7977_v1 = vadd.f32 %v6801_v38, %v11325_v6  ;;  %v6803_v60 = vpop.f32.mrb[115].mxu0 }
 0xf08   : > { %6904 = vst.msk [vmem:[%s11354_s30 + $0x98] sm:$0xff] %vm11978_vm12, %v7977_v1 }
 0xf0b   : > { %v6806_v53 = vpop.f32.mrb[116].mxu0 }
 0xf0c   : > { %v7978_v58 = vadd.f32 %v6806_v53, %v11327_v44  ;;  %v6808_v36 = vpop.f32.mrb[117].mxu0 }
 0xf0d   : > { %v6809_v12 = vpop.f32.mrb[118].mxu0 }
 0xf0e   : > { %6905 = vst.msk [vmem:[%s11354_s30 + $0xa0] sm:$0xff] %vm11979_vm2, %v7978_v58  ;;  %v7979_v46 = vadd.f32 %v6809_v12, %v11329_v55  ;;  %v6811_v23 = vpop.f32.mrb[119].mxu0 }
 0xf10   : > { %6906 = vst.msk [vmem:[%s11354_s30 + $0xa8] sm:$0xff] %vm11980_vm15, %v7979_v46 }
 0xf13   : > { %v6814_v5 = vpop.f32.mrb[120].mxu0 }
 0xf14   : > { %v7980_v6 = vadd.f32 %v6814_v5, %v11331_v57  ;;  %v6816_v30 = vpop.f32.mrb[121].mxu0 }
 0xf15   : > { %v6817_v18 = vpop.f32.mrb[122].mxu0 }
 0xf16   : > { %6907 = vst.msk [vmem:[%s11354_s30 + $0xb0] sm:$0xff] %vm11981_vm11, %v7980_v6  ;;  %v7981_v44 = vadd.f32 %v6817_v18, %v11333_v47  ;;  %v6819_v56 = vpop.f32.mrb[123].mxu0 }
 0xf18   : > { %6908 = vst.msk [vmem:[%s11354_s30 + $0xb8] sm:$0xff] %vm11982_vm13, %v7981_v44 }
 0xf1b   : > { %v6822_v48 = vpop.f32.mrb[124].mxu0 }
 0xf1c   : > { %v7982_v55 = vadd.f32 %v6822_v48, %v11335_v8  ;;  %v6824_v63 = vpop.f32.mrb[125].mxu0 }
 0xf1d   : > { %v6825_v7 = vpop.f32.mrb[126].mxu0 }
 0xf1e   : > { %6909 = vst.msk [vmem:[%s11354_s30 + $0xc0] sm:$0xff] %vm11952_vm0, %v7982_v55  ;;  %v7983_v57 = vadd.f32 %v6825_v7, %v11337_v17  ;;  %v6827_v10 = vpop.f32.mrb[127].mxu0 }
 0xf20   : > { %6910 = vst.msk [vmem:[%s11354_s30 + $0xc8] sm:$0xff] %vm11983_vm5, %v7983_v57 }
 0xf23   : > { %v6830_v39 = vpop.f32.mrb[128].mxu0 }
 0xf24   : > { %v7984_v47 = vadd.f32 %v6830_v39, %v11339_v40  ;;  %v6832_v27 = vpop.f32.mrb[129].mxu0 }
 0xf25   : > { %v6833_v50 = vpop.f32.mrb[130].mxu0 }
 0xf26   : > { %6911 = vst.msk [vmem:[%s11354_s30 + $0xd0] sm:$0xff] %vm11984_vm3, %v7984_v47  ;;  %v7985_v8 = vadd.f32 %v6833_v50, %v11341_v0  ;;  %v6835_v13 = vpop.f32.mrb[131].mxu0 }
 0xf28   : > { %6912 = vst.msk [vmem:[%s11354_s30 + $0xd8] sm:$0xff] %vm11985_vm6, %v7985_v8 }
 0xf2b   : > { %v6838_v33 = vpop.f32.mrb[132].mxu0 }
 0xf2c   : > { %v7986_v17 = vadd.f32 %v6838_v33, %v11343_v28  ;;  %v6840_v31 = vpop.f32.mrb[133].mxu0 }
 0xf2d   : > { %v6841_v26 = vpop.f32.mrb[134].mxu0 }
 0xf2e   : > { %6913 = vst.msk [vmem:[%s11354_s30 + $0xe0] sm:$0xff] %vm11986_vm8, %v7986_v17  ;;  %v7987_v40 = vadd.f32 %v6841_v26, %v11345_v16  ;;  %v6843_v61 = vpop.f32.mrb[135].mxu0 }
 0xf30   : > { %6914 = vst.msk [vmem:[%s11354_s30 + $0xe8] sm:$0xff] %vm11987_vm1, %v7987_v40 }
 0xf33   : > { %v6846_v19 = vpop.f32.mrb[136].mxu0 }
 0xf34   : > { %v7988_v35 = vadd.f32 %v6846_v19, %v11347_v62  ;;  %v6848_v0 = vpop.f32.mrb[137].mxu0 }
 0xf35   : > { %v6849_v20 = vpop.f32.mrb[138].mxu0 }
 0xf36   : > { %6915 = vst.msk [vmem:[%s11354_s30 + $0xf0] sm:$0xff] %vm11988_vm14, %v7988_v35  ;;  %v7989_v37 = vadd.f32 %v6849_v20, %v11357_v29  ;;  %v6851_v32 = vpop.f32.mrb[139].mxu0 }
 0xf38   : > { %6916 = vst.msk [vmem:[%s11354_s30 + $0xf8] sm:$0xff] %vm11989_vm4, %v7989_v37 }
 0xf39 PF: > { %s24_s25 = sadd.s32 1, %s8393_s25  }
 0xf3a   : > { %p21_p4 = scmp.ge.s32.totalorder %s24_s25, 4  }
 0xf3c   :  { %23 = sbr.rel (!%p21_p4) target bundleno = 1 (0x1), region = 134 }

</bundles_post_ra>
